<compile_context>
chip_gen: v7x
topology: tpu7x:2x2x1
jax: 0.10.0
libtpu: 0.0.40
codegen_flags: <defaults>
</compile_context>

<pallas_src>
import functools
import math

import jax
import jax.numpy as jnp
from jax.experimental import pallas as pl
from jax.experimental.pallas import tpu as pltpu


# --------------------------------------------------------------------------
# BlockSpec helper: whole-array block, constant index map (everything stays
# resident in VMEM for the single grid step).
# --------------------------------------------------------------------------
def _const_spec(shape):
    nd = len(shape)
    return pl.BlockSpec(shape, lambda i, _n=nd: (0,) * _n)


# --------------------------------------------------------------------------
# Fused forward kernel: one invocation processes the whole (B*S, P) input
# through embedding, all encoder layers, and the output head.
# --------------------------------------------------------------------------
def _fused_forward_kernel(
    x_ref,          # (BS, P)      f32
    emb_w_ref,      # (P, D)       bf16
    emb_b_ref,      # (1, D)       f32
    qkv_w_ref,      # (L, D, 3D)   bf16   in_proj weight (Q|K|V along lanes)
    qkv_b_ref,      # (L, 1, 3D)   f32
    out_w_ref,      # (L, D, D)    bf16   out_proj weight
    out_b_ref,      # (L, 1, D)    f32
    ln1_g_ref,      # (L, 1, D)    f32
    ln1_b_ref,      # (L, 1, D)    f32
    ff1_w_ref,      # (L, D, Hd)   bf16
    ff1_b_ref,      # (L, 1, Hd)   f32
    ff2_w_ref,      # (L, Hd, D)   bf16
    ff2_b_ref,      # (L, 1, D)    f32
    ln2_g_ref,      # (L, 1, D)    f32
    ln2_b_ref,      # (L, 1, D)    f32
    fc_w_ref,       # (1, D)       f32
    fc_b_ref,       # (1, 1)       f32
    o_ref,          # (1, BS)      f32
    attn_sc,        # scratch (BS, D) f32 — concatenated head outputs
    *,
    batch, seq, num_heads,
):
    num_layers = qkv_w_ref.shape[0]
    d_model = qkv_w_ref.shape[1]
    head_dim = d_model // num_heads
    scale = 1.0 / math.sqrt(head_dim)

    def layer_norm(y, g, b, eps=1e-5):
        mu = jnp.mean(y, axis=-1, keepdims=True)
        var = jnp.mean(jnp.square(y - mu), axis=-1, keepdims=True)
        return (y - mu) * jax.lax.rsqrt(var + eps) * g + b

    def bdot(act_f32, w_bf16):
        # bf16 x bf16 MXU matmul with f32 accumulation.
        return jnp.dot(act_f32.astype(jnp.bfloat16), w_bf16,
                       preferred_element_type=jnp.float32)

    # Embedding (K=P contraction fused into the same kernel).
    h = bdot(x_ref[...], emb_w_ref[...]) + emb_b_ref[...]          # (BS, D)

    for l in range(num_layers):
        # ---------------- self-attention -----------------------------------
        # One lane-dense QKV projection for the whole flattened batch.
        qkv = bdot(h, qkv_w_ref[l]) + qkv_b_ref[l]                 # (BS, 3D)

        for b in range(batch):
            r0, r1 = b * seq, (b + 1) * seq
            qkv_b = qkv[r0:r1]                                     # (S, 3D)
            for hh in range(num_heads):
                c0 = hh * head_dim
                q = qkv_b[:, c0:c0 + head_dim]                     # (S, Dh)
                k = qkv_b[:, d_model + c0:d_model + c0 + head_dim]
                v = qkv_b[:, 2 * d_model + c0:2 * d_model + c0 + head_dim]

                # scores: contract last dims directly (no explicit k.T)
                s = jax.lax.dot_general(
                    q, k, (((1,), (1,)), ((), ())),
                    preferred_element_type=jnp.float32) * scale    # (S, S)

                m = jnp.max(s, axis=-1, keepdims=True)
                p = jnp.exp(s - m)
                p = p / jnp.sum(p, axis=-1, keepdims=True)         # exact

                oh = jnp.dot(p, v, preferred_element_type=jnp.float32)
                # concat(heads) lives in the scratch; out_proj applied once.
                attn_sc[r0:r1, c0:c0 + head_dim] = oh

        attn = jnp.dot(attn_sc[...].astype(jnp.bfloat16), out_w_ref[l],
                       preferred_element_type=jnp.float32) + out_b_ref[l]

        # post-norm residual 1
        h = layer_norm(h + attn, ln1_g_ref[l], ln1_b_ref[l])

        # ---------------- feed-forward (ReLU) ------------------------------
        ff = bdot(h, ff1_w_ref[l]) + ff1_b_ref[l]
        ff = jnp.maximum(ff, 0.0)
        ff = bdot(ff, ff2_w_ref[l]) + ff2_b_ref[l]

        # post-norm residual 2
        h = layer_norm(h + ff, ln2_g_ref[l], ln2_b_ref[l])

    # fc_out (d_model -> 1): lane-dense (1, BS) result via dot_general
    # contracting d_model — avoids a lane-dim-1 masked column store.
    out = jax.lax.dot_general(
        fc_w_ref[...], h, (((1,), (1,)), ((), ())),
        preferred_element_type=jnp.float32) + fc_b_ref[...]        # (1, BS)
    o_ref[...] = out


# --------------------------------------------------------------------------
# Full model forward (host wrapper): restructure weights once, one pallas_call
# --------------------------------------------------------------------------
def modulo_transformer_forward(x, params, num_heads):
    S, B, P = x.shape
    D = params["emb_w"].shape[1]
    layers = params["layers"]
    L = len(layers)
    Dh = D // num_heads
    Hd = layers[0]["lin1_w"].shape[1]
    BS = B * S

    stack = lambda name: jnp.stack([lp[name] for lp in layers])
    wdt = jnp.bfloat16   # matmul weights in bf16 (f32 accumulation in-kernel)

    emb_w = params["emb_w"].astype(wdt)                        # (P, D)
    emb_b = params["emb_b"].reshape(1, D)
    qkv_w = stack("in_proj_w").astype(wdt)                     # (L, D, 3D)
    qkv_b = stack("in_proj_b").reshape(L, 1, 3 * D)
    out_w = stack("out_proj_w").astype(wdt)                    # (L, D, D)
    out_b = stack("out_proj_b").reshape(L, 1, D)
    ln1_g = stack("ln1_g").reshape(L, 1, D)
    ln1_b = stack("ln1_b").reshape(L, 1, D)
    ff1_w = stack("lin1_w").astype(wdt)                        # (L, D, Hd)
    ff1_b = stack("lin1_b").reshape(L, 1, Hd)
    ff2_w = stack("lin2_w").astype(wdt)                        # (L, Hd, D)
    ff2_b = stack("lin2_b").reshape(L, 1, D)
    ln2_g = stack("ln2_g").reshape(L, 1, D)
    ln2_b = stack("ln2_b").reshape(L, 1, D)
    fc_w = params["fc_w"].reshape(1, D)                        # row form
    fc_b = params["fc_b"].reshape(1, 1)

    # (S, B, P) -> (B*S, P): batch-major rows so per-batch attention operates
    # on clean sublane-multiple row slices inside the kernel.
    xr = jnp.transpose(x, (1, 0, 2)).reshape(BS, P)

    weight_args = (emb_w, emb_b, qkv_w, qkv_b, out_w, out_b,
                   ln1_g, ln1_b, ff1_w, ff1_b, ff2_w, ff2_b,
                   ln2_g, ln2_b, fc_w, fc_b)

    # Advisory cost estimate (matmul flops, softmax transcendentals, HBM bytes)
    flops = 2 * BS * P * D + 2 * BS * D
    flops += L * (2 * BS * D * 3 * D          # QKV projection
                  + 2 * B * num_heads * 2 * S * S * Dh   # scores + PV
                  + 2 * BS * D * D            # out_proj
                  + 4 * BS * D * Hd)          # FFN (two matmuls)
    transcendentals = L * B * num_heads * S * S + 4 * L * BS
    bytes_accessed = (xr.size * xr.dtype.itemsize
                      + sum(int(w.size) * w.dtype.itemsize for w in weight_args)
                      + BS * 4)

    kernel = functools.partial(_fused_forward_kernel,
                               batch=B, seq=S, num_heads=num_heads)

    out = pl.pallas_call(
        kernel,
        out_shape=jax.ShapeDtypeStruct((1, BS), jnp.float32),
        grid=(1,),
        in_specs=[_const_spec(xr.shape)]
                 + [_const_spec(w.shape) for w in weight_args],
        out_specs=_const_spec((1, BS)),
        scratch_shapes=[pltpu.VMEM((BS, D), jnp.float32)],
        cost_estimate=pl.CostEstimate(flops=int(flops),
                                      transcendentals=int(transcendentals),
                                      bytes_accessed=int(bytes_accessed)),
        compiler_params=pltpu.CompilerParams(
            dimension_semantics=("arbitrary",)),
    )(xr, *weight_args)

    return out.reshape(B, S).T                                 # (S, B)


# --------------------------------------------------------------------------
# Deterministic parameter init (synthetic, not a checkpoint)
# --------------------------------------------------------------------------
def init_params(key, num_primes, d_model, num_layers, hidden_dim):
    def lin_init(k, fan_in, fan_out):
        kw, kb = jax.random.split(k)
        w = jax.random.normal(kw, (fan_in, fan_out), jnp.float32) * 0.02
        b = jax.random.normal(kb, (fan_out,), jnp.float32) * 0.02
        return w, b

    keys = jax.random.split(key, 2 + num_layers)
    emb_w, emb_b = lin_init(keys[0], num_primes, d_model)
    fc_w, fc_b = lin_init(keys[1], d_model, 1)

    layers = []
    for li in range(num_layers):
        lk = jax.random.split(keys[2 + li], 4)
        in_proj_w, in_proj_b = lin_init(lk[0], d_model, 3 * d_model)
        out_proj_w, out_proj_b = lin_init(lk[1], d_model, d_model)
        lin1_w, lin1_b = lin_init(lk[2], d_model, hidden_dim)
        lin2_w, lin2_b = lin_init(lk[3], hidden_dim, d_model)
        layers.append(dict(
            in_proj_w=in_proj_w, in_proj_b=in_proj_b,
            out_proj_w=out_proj_w, out_proj_b=out_proj_b,
            lin1_w=lin1_w, lin1_b=lin1_b,
            lin2_w=lin2_w, lin2_b=lin2_b,
            ln1_g=jnp.ones((d_model,), jnp.float32),
            ln1_b=jnp.zeros((d_model,), jnp.float32),
            ln2_g=jnp.ones((d_model,), jnp.float32),
            ln2_b=jnp.zeros((d_model,), jnp.float32),
        ))
    return dict(emb_w=emb_w, emb_b=emb_b, fc_w=fc_w, fc_b=fc_b, layers=layers)


if __name__ == "__main__":
    # Small shapes consistent with the module defaults.
    num_primes = 8
    d_model = 128
    num_heads = 4
    num_layers = 2
    hidden_dim = 256
    seq, batch = 8, 2

    key = jax.random.PRNGKey(0)
    kx, kp = jax.random.split(key)
    x = jax.random.normal(kx, (seq, batch, num_primes), jnp.float32)
    params = init_params(kp, num_primes, d_model, num_layers, hidden_dim)

    fwd = jax.jit(functools.partial(modulo_transformer_forward,
                                    num_heads=num_heads))
    out = fwd(x, params)
    jax.block_until_ready(out)
    assert out.shape == (seq, batch), out.shape
    assert bool(jnp.all(jnp.isfinite(out)))
    print("KERNEL_OK")
</pallas_src>

<mosaic_0001>
module attributes {stable_mosaic.version = 11 : i64} {
  func.func @_fused_forward_kernel(%arg0: i32, %arg1: memref<16x8xf32, #tpu.memory_space<vmem>>, %arg2: memref<8x128xbf16, #tpu.memory_space<vmem>>, %arg3: memref<1x128xf32, #tpu.memory_space<vmem>>, %arg4: memref<2x128x384xbf16, #tpu.memory_space<vmem>>, %arg5: memref<2x1x384xf32, #tpu.memory_space<vmem>>, %arg6: memref<2x128x128xbf16, #tpu.memory_space<vmem>>, %arg7: memref<2x1x128xf32, #tpu.memory_space<vmem>>, %arg8: memref<2x1x128xf32, #tpu.memory_space<vmem>>, %arg9: memref<2x1x128xf32, #tpu.memory_space<vmem>>, %arg10: memref<2x128x256xbf16, #tpu.memory_space<vmem>>, %arg11: memref<2x1x256xf32, #tpu.memory_space<vmem>>, %arg12: memref<2x256x128xbf16, #tpu.memory_space<vmem>>, %arg13: memref<2x1x128xf32, #tpu.memory_space<vmem>>, %arg14: memref<2x1x128xf32, #tpu.memory_space<vmem>>, %arg15: memref<2x1x128xf32, #tpu.memory_space<vmem>>, %arg16: memref<1x128xf32, #tpu.memory_space<vmem>>, %arg17: memref<1x1xf32, #tpu.memory_space<vmem>>, %arg18: memref<1x16xf32, #tpu.memory_space<vmem>>, %arg19: memref<16x128xf32, #tpu.memory_space<vmem>>) attributes {dimension_semantics = [#tpu.dimension_semantics<arbitrary>], iteration_bounds = array<i64: 1>, scalar_prefetch = 0 : i64, scratch_operands = 1 : i64, tpu.core_type = #tpu.core_type<tc>, window_params = [{pipeline_mode = #tpu.pipeline_mode<synchronous>, transform_indices = @transform_0, window_bounds = array<i64: 16, 8>}, {pipeline_mode = #tpu.pipeline_mode<synchronous>, transform_indices = @transform_1, window_bounds = array<i64: 8, 128>}, {pipeline_mode = #tpu.pipeline_mode<synchronous>, transform_indices = @transform_2, window_bounds = array<i64: 1, 128>}, {pipeline_mode = #tpu.pipeline_mode<synchronous>, transform_indices = @transform_3, window_bounds = array<i64: 2, 128, 384>}, {pipeline_mode = #tpu.pipeline_mode<synchronous>, transform_indices = @transform_4, window_bounds = array<i64: 2, 1, 384>}, {pipeline_mode = #tpu.pipeline_mode<synchronous>, transform_indices = @transform_5, window_bounds = array<i64: 2, 128, 128>}, {pipeline_mode = #tpu.pipeline_mode<synchronous>, transform_indices = @transform_6, window_bounds = array<i64: 2, 1, 128>}, {pipeline_mode = #tpu.pipeline_mode<synchronous>, transform_indices = @transform_7, window_bounds = array<i64: 2, 1, 128>}, {pipeline_mode = #tpu.pipeline_mode<synchronous>, transform_indices = @transform_8, window_bounds = array<i64: 2, 1, 128>}, {pipeline_mode = #tpu.pipeline_mode<synchronous>, transform_indices = @transform_9, window_bounds = array<i64: 2, 128, 256>}, {pipeline_mode = #tpu.pipeline_mode<synchronous>, transform_indices = @transform_10, window_bounds = array<i64: 2, 1, 256>}, {pipeline_mode = #tpu.pipeline_mode<synchronous>, transform_indices = @transform_11, window_bounds = array<i64: 2, 256, 128>}, {pipeline_mode = #tpu.pipeline_mode<synchronous>, transform_indices = @transform_12, window_bounds = array<i64: 2, 1, 128>}, {pipeline_mode = #tpu.pipeline_mode<synchronous>, transform_indices = @transform_13, window_bounds = array<i64: 2, 1, 128>}, {pipeline_mode = #tpu.pipeline_mode<synchronous>, transform_indices = @transform_14, window_bounds = array<i64: 2, 1, 128>}, {pipeline_mode = #tpu.pipeline_mode<synchronous>, transform_indices = @transform_15, window_bounds = array<i64: 1, 128>}, {pipeline_mode = #tpu.pipeline_mode<synchronous>, transform_indices = @transform_16, window_bounds = array<i64: 1, 1>}, {pipeline_mode = #tpu.pipeline_mode<synchronous>, transform_indices = @transform_17, window_bounds = array<i64: 1, 16>}]} {
    %c0 = arith.constant 0 : index
    %c0_0 = arith.constant 0 : index
    %0 = vector.load %arg1[%c0, %c0_0] : memref<16x8xf32, #tpu.memory_space<vmem>>, vector<16x8xf32>
    %c0_1 = arith.constant 0 : index
    %c0_2 = arith.constant 0 : index
    %1 = vector.load %arg2[%c0_1, %c0_2] : memref<8x128xbf16, #tpu.memory_space<vmem>>, vector<8x128xbf16>
    %2 = arith.truncf %0 : vector<16x8xf32> to vector<16x8xbf16>
    %cst = arith.constant dense<0.000000e+00> : vector<16x128xf32>
    %3 = tpu.matmul %2, %1, %cst {dimension_numbers = #tpu.dot_dimension_numbers<[1], [0], [0], [1], [0, 0, 1, 1], [], []>} : vector<16x8xbf16>, vector<8x128xbf16>, vector<16x128xf32> -> vector<16x128xf32>
    %c0_3 = arith.constant 0 : index
    %c0_4 = arith.constant 0 : index
    %4 = vector.load %arg3[%c0_3, %c0_4] : memref<1x128xf32, #tpu.memory_space<vmem>>, vector<1x128xf32>
    %5 = vector.broadcast %4 : vector<1x128xf32> to vector<16x128xf32>
    %6 = arith.addf %3, %5 : vector<16x128xf32>
    %c0_5 = arith.constant 0 : index
    %c0_6 = arith.constant 0 : index
    %c0_7 = arith.constant 0 : index
    %7 = vector.load %arg4[%c0_5, %c0_6, %c0_7] : memref<2x128x384xbf16, #tpu.memory_space<vmem>>, vector<1x128x384xbf16>
    %8 = vector.shape_cast %7 : vector<1x128x384xbf16> to vector<128x384xbf16>
    %9 = arith.truncf %6 : vector<16x128xf32> to vector<16x128xbf16>
    %cst_8 = arith.constant dense<0.000000e+00> : vector<16x384xf32>
    %10 = tpu.matmul %9, %8, %cst_8 {dimension_numbers = #tpu.dot_dimension_numbers<[1], [0], [0], [1], [0, 0, 1, 1], [], []>} : vector<16x128xbf16>, vector<128x384xbf16>, vector<16x384xf32> -> vector<16x384xf32>
    %c0_9 = arith.constant 0 : index
    %c0_10 = arith.constant 0 : index
    %c0_11 = arith.constant 0 : index
    %11 = vector.load %arg5[%c0_9, %c0_10, %c0_11] : memref<2x1x384xf32, #tpu.memory_space<vmem>>, vector<1x1x384xf32>
    %12 = vector.shape_cast %11 : vector<1x1x384xf32> to vector<1x384xf32>
    %13 = vector.broadcast %12 : vector<1x384xf32> to vector<16x384xf32>
    %14 = arith.addf %10, %13 : vector<16x384xf32>
    %15 = vector.extract_strided_slice %14 {offsets = [0, 0], sizes = [8, 384], strides = [1, 1]} : vector<16x384xf32> to vector<8x384xf32>
    %16 = vector.extract_strided_slice %15 {offsets = [0, 0], sizes = [8, 32], strides = [1, 1]} : vector<8x384xf32> to vector<8x32xf32>
    %17 = vector.extract_strided_slice %15 {offsets = [0, 128], sizes = [8, 32], strides = [1, 1]} : vector<8x384xf32> to vector<8x32xf32>
    %18 = vector.extract_strided_slice %15 {offsets = [0, 256], sizes = [8, 32], strides = [1, 1]} : vector<8x384xf32> to vector<8x32xf32>
    %cst_12 = arith.constant dense<0.000000e+00> : vector<8x8xf32>
    %19 = tpu.matmul %16, %17, %cst_12 {dimension_numbers = #tpu.dot_dimension_numbers<[1], [1], [0], [0], [0, 0, 1, 0], [], []>} : vector<8x32xf32>, vector<8x32xf32>, vector<8x8xf32> -> vector<8x8xf32>
    %cst_13 = arith.constant 0.176776692 : f32
    %20 = vector.broadcast %cst_13 : f32 to vector<8x8xf32>
    %21 = arith.mulf %19, %20 : vector<8x8xf32>
    %cst_14 = arith.constant dense<0xFF800000> : vector<8xf32>
    %22 = vector.multi_reduction <maximumf>, %21, %cst_14 [1] : vector<8x8xf32> to vector<8xf32>
    %23 = vector.shape_cast %22 : vector<8xf32> to vector<8x1xf32>
    %24 = vector.broadcast %23 : vector<8x1xf32> to vector<8x8xf32>
    %25 = arith.subf %21, %24 : vector<8x8xf32>
    %26 = math.exp %25 : vector<8x8xf32>
    %cst_15 = arith.constant dense<0.000000e+00> : vector<8xf32>
    %27 = vector.multi_reduction <add>, %26, %cst_15 [1] : vector<8x8xf32> to vector<8xf32>
    %28 = vector.shape_cast %27 : vector<8xf32> to vector<8x1xf32>
    %29 = vector.broadcast %28 : vector<8x1xf32> to vector<8x8xf32>
    %30 = arith.divf %26, %29 : vector<8x8xf32>
    %cst_16 = arith.constant dense<0.000000e+00> : vector<8x32xf32>
    %31 = tpu.matmul %30, %18, %cst_16 {dimension_numbers = #tpu.dot_dimension_numbers<[1], [0], [0], [1], [0, 0, 1, 1], [], []>} : vector<8x8xf32>, vector<8x32xf32>, vector<8x32xf32> -> vector<8x32xf32>
    %c0_17 = arith.constant 0 : index
    %c0_18 = arith.constant 0 : index
    %32 = vector.load %arg19[%c0_17, %c0_18] : memref<16x128xf32, #tpu.memory_space<vmem>>, vector<8x32xf32>
    tpu.vector_store %arg19[%c0_17, %c0_18], %31 {strides = array<i32>} : memref<16x128xf32, #tpu.memory_space<vmem>>, vector<8x32xf32>,
    %33 = vector.extract_strided_slice %15 {offsets = [0, 32], sizes = [8, 32], strides = [1, 1]} : vector<8x384xf32> to vector<8x32xf32>
    %34 = vector.extract_strided_slice %15 {offsets = [0, 160], sizes = [8, 32], strides = [1, 1]} : vector<8x384xf32> to vector<8x32xf32>
    %35 = vector.extract_strided_slice %15 {offsets = [0, 288], sizes = [8, 32], strides = [1, 1]} : vector<8x384xf32> to vector<8x32xf32>
    %cst_19 = arith.constant dense<0.000000e+00> : vector<8x8xf32>
    %36 = tpu.matmul %33, %34, %cst_19 {dimension_numbers = #tpu.dot_dimension_numbers<[1], [1], [0], [0], [0, 0, 1, 0], [], []>} : vector<8x32xf32>, vector<8x32xf32>, vector<8x8xf32> -> vector<8x8xf32>
    %cst_20 = arith.constant 0.176776692 : f32
    %37 = vector.broadcast %cst_20 : f32 to vector<8x8xf32>
    %38 = arith.mulf %36, %37 : vector<8x8xf32>
    %cst_21 = arith.constant dense<0xFF800000> : vector<8xf32>
    %39 = vector.multi_reduction <maximumf>, %38, %cst_21 [1] : vector<8x8xf32> to vector<8xf32>
    %40 = vector.shape_cast %39 : vector<8xf32> to vector<8x1xf32>
    %41 = vector.broadcast %40 : vector<8x1xf32> to vector<8x8xf32>
    %42 = arith.subf %38, %41 : vector<8x8xf32>
    %43 = math.exp %42 : vector<8x8xf32>
    %cst_22 = arith.constant dense<0.000000e+00> : vector<8xf32>
    %44 = vector.multi_reduction <add>, %43, %cst_22 [1] : vector<8x8xf32> to vector<8xf32>
    %45 = vector.shape_cast %44 : vector<8xf32> to vector<8x1xf32>
    %46 = vector.broadcast %45 : vector<8x1xf32> to vector<8x8xf32>
    %47 = arith.divf %43, %46 : vector<8x8xf32>
    %cst_23 = arith.constant dense<0.000000e+00> : vector<8x32xf32>
    %48 = tpu.matmul %47, %35, %cst_23 {dimension_numbers = #tpu.dot_dimension_numbers<[1], [0], [0], [1], [0, 0, 1, 1], [], []>} : vector<8x8xf32>, vector<8x32xf32>, vector<8x32xf32> -> vector<8x32xf32>
    %c0_24 = arith.constant 0 : index
    %c32 = arith.constant 32 : index
    %49 = vector.load %arg19[%c0_24, %c32] : memref<16x128xf32, #tpu.memory_space<vmem>>, vector<8x32xf32>
    tpu.vector_store %arg19[%c0_24, %c32], %48 {strides = array<i32>} : memref<16x128xf32, #tpu.memory_space<vmem>>, vector<8x32xf32>,
    %50 = vector.extract_strided_slice %15 {offsets = [0, 64], sizes = [8, 32], strides = [1, 1]} : vector<8x384xf32> to vector<8x32xf32>
    %51 = vector.extract_strided_slice %15 {offsets = [0, 192], sizes = [8, 32], strides = [1, 1]} : vector<8x384xf32> to vector<8x32xf32>
    %52 = vector.extract_strided_slice %15 {offsets = [0, 320], sizes = [8, 32], strides = [1, 1]} : vector<8x384xf32> to vector<8x32xf32>
    %cst_25 = arith.constant dense<0.000000e+00> : vector<8x8xf32>
    %53 = tpu.matmul %50, %51, %cst_25 {dimension_numbers = #tpu.dot_dimension_numbers<[1], [1], [0], [0], [0, 0, 1, 0], [], []>} : vector<8x32xf32>, vector<8x32xf32>, vector<8x8xf32> -> vector<8x8xf32>
    %cst_26 = arith.constant 0.176776692 : f32
    %54 = vector.broadcast %cst_26 : f32 to vector<8x8xf32>
    %55 = arith.mulf %53, %54 : vector<8x8xf32>
    %cst_27 = arith.constant dense<0xFF800000> : vector<8xf32>
    %56 = vector.multi_reduction <maximumf>, %55, %cst_27 [1] : vector<8x8xf32> to vector<8xf32>
    %57 = vector.shape_cast %56 : vector<8xf32> to vector<8x1xf32>
    %58 = vector.broadcast %57 : vector<8x1xf32> to vector<8x8xf32>
    %59 = arith.subf %55, %58 : vector<8x8xf32>
    %60 = math.exp %59 : vector<8x8xf32>
    %cst_28 = arith.constant dense<0.000000e+00> : vector<8xf32>
    %61 = vector.multi_reduction <add>, %60, %cst_28 [1] : vector<8x8xf32> to vector<8xf32>
    %62 = vector.shape_cast %61 : vector<8xf32> to vector<8x1xf32>
    %63 = vector.broadcast %62 : vector<8x1xf32> to vector<8x8xf32>
    %64 = arith.divf %60, %63 : vector<8x8xf32>
    %cst_29 = arith.constant dense<0.000000e+00> : vector<8x32xf32>
    %65 = tpu.matmul %64, %52, %cst_29 {dimension_numbers = #tpu.dot_dimension_numbers<[1], [0], [0], [1], [0, 0, 1, 1], [], []>} : vector<8x8xf32>, vector<8x32xf32>, vector<8x32xf32> -> vector<8x32xf32>
    %c0_30 = arith.constant 0 : index
    %c64 = arith.constant 64 : index
    %66 = vector.load %arg19[%c0_30, %c64] : memref<16x128xf32, #tpu.memory_space<vmem>>, vector<8x32xf32>
    tpu.vector_store %arg19[%c0_30, %c64], %65 {strides = array<i32>} : memref<16x128xf32, #tpu.memory_space<vmem>>, vector<8x32xf32>,
    %67 = vector.extract_strided_slice %15 {offsets = [0, 96], sizes = [8, 32], strides = [1, 1]} : vector<8x384xf32> to vector<8x32xf32>
    %68 = vector.extract_strided_slice %15 {offsets = [0, 224], sizes = [8, 32], strides = [1, 1]} : vector<8x384xf32> to vector<8x32xf32>
    %69 = vector.extract_strided_slice %15 {offsets = [0, 352], sizes = [8, 32], strides = [1, 1]} : vector<8x384xf32> to vector<8x32xf32>
    %cst_31 = arith.constant dense<0.000000e+00> : vector<8x8xf32>
    %70 = tpu.matmul %67, %68, %cst_31 {dimension_numbers = #tpu.dot_dimension_numbers<[1], [1], [0], [0], [0, 0, 1, 0], [], []>} : vector<8x32xf32>, vector<8x32xf32>, vector<8x8xf32> -> vector<8x8xf32>
    %cst_32 = arith.constant 0.176776692 : f32
    %71 = vector.broadcast %cst_32 : f32 to vector<8x8xf32>
    %72 = arith.mulf %70, %71 : vector<8x8xf32>
    %cst_33 = arith.constant dense<0xFF800000> : vector<8xf32>
    %73 = vector.multi_reduction <maximumf>, %72, %cst_33 [1] : vector<8x8xf32> to vector<8xf32>
    %74 = vector.shape_cast %73 : vector<8xf32> to vector<8x1xf32>
    %75 = vector.broadcast %74 : vector<8x1xf32> to vector<8x8xf32>
    %76 = arith.subf %72, %75 : vector<8x8xf32>
    %77 = math.exp %76 : vector<8x8xf32>
    %cst_34 = arith.constant dense<0.000000e+00> : vector<8xf32>
    %78 = vector.multi_reduction <add>, %77, %cst_34 [1] : vector<8x8xf32> to vector<8xf32>
    %79 = vector.shape_cast %78 : vector<8xf32> to vector<8x1xf32>
    %80 = vector.broadcast %79 : vector<8x1xf32> to vector<8x8xf32>
    %81 = arith.divf %77, %80 : vector<8x8xf32>
    %cst_35 = arith.constant dense<0.000000e+00> : vector<8x32xf32>
    %82 = tpu.matmul %81, %69, %cst_35 {dimension_numbers = #tpu.dot_dimension_numbers<[1], [0], [0], [1], [0, 0, 1, 1], [], []>} : vector<8x8xf32>, vector<8x32xf32>, vector<8x32xf32> -> vector<8x32xf32>
    %c0_36 = arith.constant 0 : index
    %c96 = arith.constant 96 : index
    %83 = vector.load %arg19[%c0_36, %c96] : memref<16x128xf32, #tpu.memory_space<vmem>>, vector<8x32xf32>
    tpu.vector_store %arg19[%c0_36, %c96], %82 {strides = array<i32>} : memref<16x128xf32, #tpu.memory_space<vmem>>, vector<8x32xf32>,
    %84 = vector.extract_strided_slice %14 {offsets = [8, 0], sizes = [8, 384], strides = [1, 1]} : vector<16x384xf32> to vector<8x384xf32>
    %85 = vector.extract_strided_slice %84 {offsets = [0, 0], sizes = [8, 32], strides = [1, 1]} : vector<8x384xf32> to vector<8x32xf32>
    %86 = vector.extract_strided_slice %84 {offsets = [0, 128], sizes = [8, 32], strides = [1, 1]} : vector<8x384xf32> to vector<8x32xf32>
    %87 = vector.extract_strided_slice %84 {offsets = [0, 256], sizes = [8, 32], strides = [1, 1]} : vector<8x384xf32> to vector<8x32xf32>
    %cst_37 = arith.constant dense<0.000000e+00> : vector<8x8xf32>
    %88 = tpu.matmul %85, %86, %cst_37 {dimension_numbers = #tpu.dot_dimension_numbers<[1], [1], [0], [0], [0, 0, 1, 0], [], []>} : vector<8x32xf32>, vector<8x32xf32>, vector<8x8xf32> -> vector<8x8xf32>
    %cst_38 = arith.constant 0.176776692 : f32
    %89 = vector.broadcast %cst_38 : f32 to vector<8x8xf32>
    %90 = arith.mulf %88, %89 : vector<8x8xf32>
    %cst_39 = arith.constant dense<0xFF800000> : vector<8xf32>
    %91 = vector.multi_reduction <maximumf>, %90, %cst_39 [1] : vector<8x8xf32> to vector<8xf32>
    %92 = vector.shape_cast %91 : vector<8xf32> to vector<8x1xf32>
    %93 = vector.broadcast %92 : vector<8x1xf32> to vector<8x8xf32>
    %94 = arith.subf %90, %93 : vector<8x8xf32>
    %95 = math.exp %94 : vector<8x8xf32>
    %cst_40 = arith.constant dense<0.000000e+00> : vector<8xf32>
    %96 = vector.multi_reduction <add>, %95, %cst_40 [1] : vector<8x8xf32> to vector<8xf32>
    %97 = vector.shape_cast %96 : vector<8xf32> to vector<8x1xf32>
    %98 = vector.broadcast %97 : vector<8x1xf32> to vector<8x8xf32>
    %99 = arith.divf %95, %98 : vector<8x8xf32>
    %cst_41 = arith.constant dense<0.000000e+00> : vector<8x32xf32>
    %100 = tpu.matmul %99, %87, %cst_41 {dimension_numbers = #tpu.dot_dimension_numbers<[1], [0], [0], [1], [0, 0, 1, 1], [], []>} : vector<8x8xf32>, vector<8x32xf32>, vector<8x32xf32> -> vector<8x32xf32>
    %c8 = arith.constant 8 : index
    %c0_42 = arith.constant 0 : index
    %101 = vector.load %arg19[%c8, %c0_42] : memref<16x128xf32, #tpu.memory_space<vmem>>, vector<8x32xf32>
    tpu.vector_store %arg19[%c8, %c0_42], %100 {strides = array<i32>} : memref<16x128xf32, #tpu.memory_space<vmem>>, vector<8x32xf32>,
    %102 = vector.extract_strided_slice %84 {offsets = [0, 32], sizes = [8, 32], strides = [1, 1]} : vector<8x384xf32> to vector<8x32xf32>
    %103 = vector.extract_strided_slice %84 {offsets = [0, 160], sizes = [8, 32], strides = [1, 1]} : vector<8x384xf32> to vector<8x32xf32>
    %104 = vector.extract_strided_slice %84 {offsets = [0, 288], sizes = [8, 32], strides = [1, 1]} : vector<8x384xf32> to vector<8x32xf32>
    %cst_43 = arith.constant dense<0.000000e+00> : vector<8x8xf32>
    %105 = tpu.matmul %102, %103, %cst_43 {dimension_numbers = #tpu.dot_dimension_numbers<[1], [1], [0], [0], [0, 0, 1, 0], [], []>} : vector<8x32xf32>, vector<8x32xf32>, vector<8x8xf32> -> vector<8x8xf32>
    %cst_44 = arith.constant 0.176776692 : f32
    %106 = vector.broadcast %cst_44 : f32 to vector<8x8xf32>
    %107 = arith.mulf %105, %106 : vector<8x8xf32>
    %cst_45 = arith.constant dense<0xFF800000> : vector<8xf32>
    %108 = vector.multi_reduction <maximumf>, %107, %cst_45 [1] : vector<8x8xf32> to vector<8xf32>
    %109 = vector.shape_cast %108 : vector<8xf32> to vector<8x1xf32>
    %110 = vector.broadcast %109 : vector<8x1xf32> to vector<8x8xf32>
    %111 = arith.subf %107, %110 : vector<8x8xf32>
    %112 = math.exp %111 : vector<8x8xf32>
    %cst_46 = arith.constant dense<0.000000e+00> : vector<8xf32>
    %113 = vector.multi_reduction <add>, %112, %cst_46 [1] : vector<8x8xf32> to vector<8xf32>
    %114 = vector.shape_cast %113 : vector<8xf32> to vector<8x1xf32>
    %115 = vector.broadcast %114 : vector<8x1xf32> to vector<8x8xf32>
    %116 = arith.divf %112, %115 : vector<8x8xf32>
    %cst_47 = arith.constant dense<0.000000e+00> : vector<8x32xf32>
    %117 = tpu.matmul %116, %104, %cst_47 {dimension_numbers = #tpu.dot_dimension_numbers<[1], [0], [0], [1], [0, 0, 1, 1], [], []>} : vector<8x8xf32>, vector<8x32xf32>, vector<8x32xf32> -> vector<8x32xf32>
    %c8_48 = arith.constant 8 : index
    %c32_49 = arith.constant 32 : index
    %118 = vector.load %arg19[%c8_48, %c32_49] : memref<16x128xf32, #tpu.memory_space<vmem>>, vector<8x32xf32>
    tpu.vector_store %arg19[%c8_48, %c32_49], %117 {strides = array<i32>} : memref<16x128xf32, #tpu.memory_space<vmem>>, vector<8x32xf32>,
    %119 = vector.extract_strided_slice %84 {offsets = [0, 64], sizes = [8, 32], strides = [1, 1]} : vector<8x384xf32> to vector<8x32xf32>
    %120 = vector.extract_strided_slice %84 {offsets = [0, 192], sizes = [8, 32], strides = [1, 1]} : vector<8x384xf32> to vector<8x32xf32>
    %121 = vector.extract_strided_slice %84 {offsets = [0, 320], sizes = [8, 32], strides = [1, 1]} : vector<8x384xf32> to vector<8x32xf32>
    %cst_50 = arith.constant dense<0.000000e+00> : vector<8x8xf32>
    %122 = tpu.matmul %119, %120, %cst_50 {dimension_numbers = #tpu.dot_dimension_numbers<[1], [1], [0], [0], [0, 0, 1, 0], [], []>} : vector<8x32xf32>, vector<8x32xf32>, vector<8x8xf32> -> vector<8x8xf32>
    %cst_51 = arith.constant 0.176776692 : f32
    %123 = vector.broadcast %cst_51 : f32 to vector<8x8xf32>
    %124 = arith.mulf %122, %123 : vector<8x8xf32>
    %cst_52 = arith.constant dense<0xFF800000> : vector<8xf32>
    %125 = vector.multi_reduction <maximumf>, %124, %cst_52 [1] : vector<8x8xf32> to vector<8xf32>
    %126 = vector.shape_cast %125 : vector<8xf32> to vector<8x1xf32>
    %127 = vector.broadcast %126 : vector<8x1xf32> to vector<8x8xf32>
    %128 = arith.subf %124, %127 : vector<8x8xf32>
    %129 = math.exp %128 : vector<8x8xf32>
    %cst_53 = arith.constant dense<0.000000e+00> : vector<8xf32>
    %130 = vector.multi_reduction <add>, %129, %cst_53 [1] : vector<8x8xf32> to vector<8xf32>
    %131 = vector.shape_cast %130 : vector<8xf32> to vector<8x1xf32>
    %132 = vector.broadcast %131 : vector<8x1xf32> to vector<8x8xf32>
    %133 = arith.divf %129, %132 : vector<8x8xf32>
    %cst_54 = arith.constant dense<0.000000e+00> : vector<8x32xf32>
    %134 = tpu.matmul %133, %121, %cst_54 {dimension_numbers = #tpu.dot_dimension_numbers<[1], [0], [0], [1], [0, 0, 1, 1], [], []>} : vector<8x8xf32>, vector<8x32xf32>, vector<8x32xf32> -> vector<8x32xf32>
    %c8_55 = arith.constant 8 : index
    %c64_56 = arith.constant 64 : index
    %135 = vector.load %arg19[%c8_55, %c64_56] : memref<16x128xf32, #tpu.memory_space<vmem>>, vector<8x32xf32>
    tpu.vector_store %arg19[%c8_55, %c64_56], %134 {strides = array<i32>} : memref<16x128xf32, #tpu.memory_space<vmem>>, vector<8x32xf32>,
    %136 = vector.extract_strided_slice %84 {offsets = [0, 96], sizes = [8, 32], strides = [1, 1]} : vector<8x384xf32> to vector<8x32xf32>
    %137 = vector.extract_strided_slice %84 {offsets = [0, 224], sizes = [8, 32], strides = [1, 1]} : vector<8x384xf32> to vector<8x32xf32>
    %138 = vector.extract_strided_slice %84 {offsets = [0, 352], sizes = [8, 32], strides = [1, 1]} : vector<8x384xf32> to vector<8x32xf32>
    %cst_57 = arith.constant dense<0.000000e+00> : vector<8x8xf32>
    %139 = tpu.matmul %136, %137, %cst_57 {dimension_numbers = #tpu.dot_dimension_numbers<[1], [1], [0], [0], [0, 0, 1, 0], [], []>} : vector<8x32xf32>, vector<8x32xf32>, vector<8x8xf32> -> vector<8x8xf32>
    %cst_58 = arith.constant 0.176776692 : f32
    %140 = vector.broadcast %cst_58 : f32 to vector<8x8xf32>
    %141 = arith.mulf %139, %140 : vector<8x8xf32>
    %cst_59 = arith.constant dense<0xFF800000> : vector<8xf32>
    %142 = vector.multi_reduction <maximumf>, %141, %cst_59 [1] : vector<8x8xf32> to vector<8xf32>
    %143 = vector.shape_cast %142 : vector<8xf32> to vector<8x1xf32>
    %144 = vector.broadcast %143 : vector<8x1xf32> to vector<8x8xf32>
    %145 = arith.subf %141, %144 : vector<8x8xf32>
    %146 = math.exp %145 : vector<8x8xf32>
    %cst_60 = arith.constant dense<0.000000e+00> : vector<8xf32>
    %147 = vector.multi_reduction <add>, %146, %cst_60 [1] : vector<8x8xf32> to vector<8xf32>
    %148 = vector.shape_cast %147 : vector<8xf32> to vector<8x1xf32>
    %149 = vector.broadcast %148 : vector<8x1xf32> to vector<8x8xf32>
    %150 = arith.divf %146, %149 : vector<8x8xf32>
    %cst_61 = arith.constant dense<0.000000e+00> : vector<8x32xf32>
    %151 = tpu.matmul %150, %138, %cst_61 {dimension_numbers = #tpu.dot_dimension_numbers<[1], [0], [0], [1], [0, 0, 1, 1], [], []>} : vector<8x8xf32>, vector<8x32xf32>, vector<8x32xf32> -> vector<8x32xf32>
    %c8_62 = arith.constant 8 : index
    %c96_63 = arith.constant 96 : index
    %152 = vector.load %arg19[%c8_62, %c96_63] : memref<16x128xf32, #tpu.memory_space<vmem>>, vector<8x32xf32>
    tpu.vector_store %arg19[%c8_62, %c96_63], %151 {strides = array<i32>} : memref<16x128xf32, #tpu.memory_space<vmem>>, vector<8x32xf32>,
    %c0_64 = arith.constant 0 : index
    %c0_65 = arith.constant 0 : index
    %153 = vector.load %arg19[%c0_64, %c0_65] : memref<16x128xf32, #tpu.memory_space<vmem>>, vector<16x128xf32>
    %154 = arith.truncf %153 : vector<16x128xf32> to vector<16x128xbf16>
    %c0_66 = arith.constant 0 : index
    %c0_67 = arith.constant 0 : index
    %c0_68 = arith.constant 0 : index
    %155 = vector.load %arg6[%c0_66, %c0_67, %c0_68] : memref<2x128x128xbf16, #tpu.memory_space<vmem>>, vector<1x128x128xbf16>
    %156 = vector.shape_cast %155 : vector<1x128x128xbf16> to vector<128x128xbf16>
    %cst_69 = arith.constant dense<0.000000e+00> : vector<16x128xf32>
    %157 = tpu.matmul %154, %156, %cst_69 {dimension_numbers = #tpu.dot_dimension_numbers<[1], [0], [0], [1], [0, 0, 1, 1], [], []>} : vector<16x128xbf16>, vector<128x128xbf16>, vector<16x128xf32> -> vector<16x128xf32>
    %c0_70 = arith.constant 0 : index
    %c0_71 = arith.constant 0 : index
    %c0_72 = arith.constant 0 : index
    %158 = vector.load %arg7[%c0_70, %c0_71, %c0_72] : memref<2x1x128xf32, #tpu.memory_space<vmem>>, vector<1x1x128xf32>
    %159 = vector.shape_cast %158 : vector<1x1x128xf32> to vector<1x128xf32>
    %160 = vector.broadcast %159 : vector<1x128xf32> to vector<16x128xf32>
    %161 = arith.addf %157, %160 : vector<16x128xf32>
    %162 = arith.addf %6, %161 : vector<16x128xf32>
    %c0_73 = arith.constant 0 : index
    %c0_74 = arith.constant 0 : index
    %c0_75 = arith.constant 0 : index
    %163 = vector.load %arg8[%c0_73, %c0_74, %c0_75] : memref<2x1x128xf32, #tpu.memory_space<vmem>>, vector<1x1x128xf32>
    %164 = vector.shape_cast %163 : vector<1x1x128xf32> to vector<1x128xf32>
    %c0_76 = arith.constant 0 : index
    %c0_77 = arith.constant 0 : index
    %c0_78 = arith.constant 0 : index
    %165 = vector.load %arg9[%c0_76, %c0_77, %c0_78] : memref<2x1x128xf32, #tpu.memory_space<vmem>>, vector<1x1x128xf32>
    %166 = vector.shape_cast %165 : vector<1x1x128xf32> to vector<1x128xf32>
    %cst_79 = arith.constant dense<0.000000e+00> : vector<16xf32>
    %167 = vector.multi_reduction <add>, %162, %cst_79 [1] : vector<16x128xf32> to vector<16xf32>
    %168 = vector.shape_cast %167 : vector<16xf32> to vector<16x1xf32>
    %cst_80 = arith.constant 1.280000e+02 : f32
    %169 = vector.broadcast %cst_80 : f32 to vector<16x1xf32>
    %170 = arith.divf %168, %169 : vector<16x1xf32>
    %171 = vector.broadcast %170 : vector<16x1xf32> to vector<16x128xf32>
    %172 = arith.subf %162, %171 : vector<16x128xf32>
    %173 = arith.mulf %172, %172 : vector<16x128xf32>
    %cst_81 = arith.constant dense<0.000000e+00> : vector<16xf32>
    %174 = vector.multi_reduction <add>, %173, %cst_81 [1] : vector<16x128xf32> to vector<16xf32>
    %175 = vector.shape_cast %174 : vector<16xf32> to vector<16x1xf32>
    %cst_82 = arith.constant 1.280000e+02 : f32
    %176 = vector.broadcast %cst_82 : f32 to vector<16x1xf32>
    %177 = arith.divf %175, %176 : vector<16x1xf32>
    %178 = vector.broadcast %170 : vector<16x1xf32> to vector<16x128xf32>
    %179 = arith.subf %162, %178 : vector<16x128xf32>
    %cst_83 = arith.constant 9.99999974E-6 : f32
    %180 = vector.broadcast %cst_83 : f32 to vector<16x1xf32>
    %181 = arith.addf %177, %180 : vector<16x1xf32>
    %182 = math.rsqrt %181 : vector<16x1xf32>
    %183 = vector.broadcast %182 : vector<16x1xf32> to vector<16x128xf32>
    %184 = arith.mulf %179, %183 : vector<16x128xf32>
    %185 = vector.broadcast %164 : vector<1x128xf32> to vector<16x128xf32>
    %186 = arith.mulf %184, %185 : vector<16x128xf32>
    %187 = vector.broadcast %166 : vector<1x128xf32> to vector<16x128xf32>
    %188 = arith.addf %186, %187 : vector<16x128xf32>
    %c0_84 = arith.constant 0 : index
    %c0_85 = arith.constant 0 : index
    %c0_86 = arith.constant 0 : index
    %189 = vector.load %arg10[%c0_84, %c0_85, %c0_86] : memref<2x128x256xbf16, #tpu.memory_space<vmem>>, vector<1x128x256xbf16>
    %190 = vector.shape_cast %189 : vector<1x128x256xbf16> to vector<128x256xbf16>
    %191 = arith.truncf %188 : vector<16x128xf32> to vector<16x128xbf16>
    %cst_87 = arith.constant dense<0.000000e+00> : vector<16x256xf32>
    %192 = tpu.matmul %191, %190, %cst_87 {dimension_numbers = #tpu.dot_dimension_numbers<[1], [0], [0], [1], [0, 0, 1, 1], [], []>} : vector<16x128xbf16>, vector<128x256xbf16>, vector<16x256xf32> -> vector<16x256xf32>
    %c0_88 = arith.constant 0 : index
    %c0_89 = arith.constant 0 : index
    %c0_90 = arith.constant 0 : index
    %193 = vector.load %arg11[%c0_88, %c0_89, %c0_90] : memref<2x1x256xf32, #tpu.memory_space<vmem>>, vector<1x1x256xf32>
    %194 = vector.shape_cast %193 : vector<1x1x256xf32> to vector<1x256xf32>
    %195 = vector.broadcast %194 : vector<1x256xf32> to vector<16x256xf32>
    %196 = arith.addf %192, %195 : vector<16x256xf32>
    %cst_91 = arith.constant 0.000000e+00 : f32
    %197 = vector.broadcast %cst_91 : f32 to vector<16x256xf32>
    %198 = arith.maximumf %196, %197 : vector<16x256xf32>
    %c0_92 = arith.constant 0 : index
    %c0_93 = arith.constant 0 : index
    %c0_94 = arith.constant 0 : index
    %199 = vector.load %arg12[%c0_92, %c0_93, %c0_94] : memref<2x256x128xbf16, #tpu.memory_space<vmem>>, vector<1x256x128xbf16>
    %200 = vector.shape_cast %199 : vector<1x256x128xbf16> to vector<256x128xbf16>
    %201 = arith.truncf %198 : vector<16x256xf32> to vector<16x256xbf16>
    %cst_95 = arith.constant dense<0.000000e+00> : vector<16x128xf32>
    %202 = tpu.matmul %201, %200, %cst_95 {dimension_numbers = #tpu.dot_dimension_numbers<[1], [0], [0], [1], [0, 0, 1, 1], [], []>} : vector<16x256xbf16>, vector<256x128xbf16>, vector<16x128xf32> -> vector<16x128xf32>
    %c0_96 = arith.constant 0 : index
    %c0_97 = arith.constant 0 : index
    %c0_98 = arith.constant 0 : index
    %203 = vector.load %arg13[%c0_96, %c0_97, %c0_98] : memref<2x1x128xf32, #tpu.memory_space<vmem>>, vector<1x1x128xf32>
    %204 = vector.shape_cast %203 : vector<1x1x128xf32> to vector<1x128xf32>
    %205 = vector.broadcast %204 : vector<1x128xf32> to vector<16x128xf32>
    %206 = arith.addf %202, %205 : vector<16x128xf32>
    %207 = arith.addf %188, %206 : vector<16x128xf32>
    %c0_99 = arith.constant 0 : index
    %c0_100 = arith.constant 0 : index
    %c0_101 = arith.constant 0 : index
    %208 = vector.load %arg14[%c0_99, %c0_100, %c0_101] : memref<2x1x128xf32, #tpu.memory_space<vmem>>, vector<1x1x128xf32>
    %209 = vector.shape_cast %208 : vector<1x1x128xf32> to vector<1x128xf32>
    %c0_102 = arith.constant 0 : index
    %c0_103 = arith.constant 0 : index
    %c0_104 = arith.constant 0 : index
    %210 = vector.load %arg15[%c0_102, %c0_103, %c0_104] : memref<2x1x128xf32, #tpu.memory_space<vmem>>, vector<1x1x128xf32>
    %211 = vector.shape_cast %210 : vector<1x1x128xf32> to vector<1x128xf32>
    %cst_105 = arith.constant dense<0.000000e+00> : vector<16xf32>
    %212 = vector.multi_reduction <add>, %207, %cst_105 [1] : vector<16x128xf32> to vector<16xf32>
    %213 = vector.shape_cast %212 : vector<16xf32> to vector<16x1xf32>
    %cst_106 = arith.constant 1.280000e+02 : f32
    %214 = vector.broadcast %cst_106 : f32 to vector<16x1xf32>
    %215 = arith.divf %213, %214 : vector<16x1xf32>
    %216 = vector.broadcast %215 : vector<16x1xf32> to vector<16x128xf32>
    %217 = arith.subf %207, %216 : vector<16x128xf32>
    %218 = arith.mulf %217, %217 : vector<16x128xf32>
    %cst_107 = arith.constant dense<0.000000e+00> : vector<16xf32>
    %219 = vector.multi_reduction <add>, %218, %cst_107 [1] : vector<16x128xf32> to vector<16xf32>
    %220 = vector.shape_cast %219 : vector<16xf32> to vector<16x1xf32>
    %cst_108 = arith.constant 1.280000e+02 : f32
    %221 = vector.broadcast %cst_108 : f32 to vector<16x1xf32>
    %222 = arith.divf %220, %221 : vector<16x1xf32>
    %223 = vector.broadcast %215 : vector<16x1xf32> to vector<16x128xf32>
    %224 = arith.subf %207, %223 : vector<16x128xf32>
    %cst_109 = arith.constant 9.99999974E-6 : f32
    %225 = vector.broadcast %cst_109 : f32 to vector<16x1xf32>
    %226 = arith.addf %222, %225 : vector<16x1xf32>
    %227 = math.rsqrt %226 : vector<16x1xf32>
    %228 = vector.broadcast %227 : vector<16x1xf32> to vector<16x128xf32>
    %229 = arith.mulf %224, %228 : vector<16x128xf32>
    %230 = vector.broadcast %209 : vector<1x128xf32> to vector<16x128xf32>
    %231 = arith.mulf %229, %230 : vector<16x128xf32>
    %232 = vector.broadcast %211 : vector<1x128xf32> to vector<16x128xf32>
    %233 = arith.addf %231, %232 : vector<16x128xf32>
    %c1 = arith.constant 1 : index
    %c0_110 = arith.constant 0 : index
    %c0_111 = arith.constant 0 : index
    %234 = vector.load %arg4[%c1, %c0_110, %c0_111] : memref<2x128x384xbf16, #tpu.memory_space<vmem>>, vector<1x128x384xbf16>
    %235 = vector.shape_cast %234 : vector<1x128x384xbf16> to vector<128x384xbf16>
    %236 = arith.truncf %233 : vector<16x128xf32> to vector<16x128xbf16>
    %cst_112 = arith.constant dense<0.000000e+00> : vector<16x384xf32>
    %237 = tpu.matmul %236, %235, %cst_112 {dimension_numbers = #tpu.dot_dimension_numbers<[1], [0], [0], [1], [0, 0, 1, 1], [], []>} : vector<16x128xbf16>, vector<128x384xbf16>, vector<16x384xf32> -> vector<16x384xf32>
    %c1_113 = arith.constant 1 : index
    %c0_114 = arith.constant 0 : index
    %c0_115 = arith.constant 0 : index
    %238 = vector.load %arg5[%c1_113, %c0_114, %c0_115] : memref<2x1x384xf32, #tpu.memory_space<vmem>>, vector<1x1x384xf32>
    %239 = vector.shape_cast %238 : vector<1x1x384xf32> to vector<1x384xf32>
    %240 = vector.broadcast %239 : vector<1x384xf32> to vector<16x384xf32>
    %241 = arith.addf %237, %240 : vector<16x384xf32>
    %242 = vector.extract_strided_slice %241 {offsets = [0, 0], sizes = [8, 384], strides = [1, 1]} : vector<16x384xf32> to vector<8x384xf32>
    %243 = vector.extract_strided_slice %242 {offsets = [0, 0], sizes = [8, 32], strides = [1, 1]} : vector<8x384xf32> to vector<8x32xf32>
    %244 = vector.extract_strided_slice %242 {offsets = [0, 128], sizes = [8, 32], strides = [1, 1]} : vector<8x384xf32> to vector<8x32xf32>
    %245 = vector.extract_strided_slice %242 {offsets = [0, 256], sizes = [8, 32], strides = [1, 1]} : vector<8x384xf32> to vector<8x32xf32>
    %cst_116 = arith.constant dense<0.000000e+00> : vector<8x8xf32>
    %246 = tpu.matmul %243, %244, %cst_116 {dimension_numbers = #tpu.dot_dimension_numbers<[1], [1], [0], [0], [0, 0, 1, 0], [], []>} : vector<8x32xf32>, vector<8x32xf32>, vector<8x8xf32> -> vector<8x8xf32>
    %cst_117 = arith.constant 0.176776692 : f32
    %247 = vector.broadcast %cst_117 : f32 to vector<8x8xf32>
    %248 = arith.mulf %246, %247 : vector<8x8xf32>
    %cst_118 = arith.constant dense<0xFF800000> : vector<8xf32>
    %249 = vector.multi_reduction <maximumf>, %248, %cst_118 [1] : vector<8x8xf32> to vector<8xf32>
    %250 = vector.shape_cast %249 : vector<8xf32> to vector<8x1xf32>
    %251 = vector.broadcast %250 : vector<8x1xf32> to vector<8x8xf32>
    %252 = arith.subf %248, %251 : vector<8x8xf32>
    %253 = math.exp %252 : vector<8x8xf32>
    %cst_119 = arith.constant dense<0.000000e+00> : vector<8xf32>
    %254 = vector.multi_reduction <add>, %253, %cst_119 [1] : vector<8x8xf32> to vector<8xf32>
    %255 = vector.shape_cast %254 : vector<8xf32> to vector<8x1xf32>
    %256 = vector.broadcast %255 : vector<8x1xf32> to vector<8x8xf32>
    %257 = arith.divf %253, %256 : vector<8x8xf32>
    %cst_120 = arith.constant dense<0.000000e+00> : vector<8x32xf32>
    %258 = tpu.matmul %257, %245, %cst_120 {dimension_numbers = #tpu.dot_dimension_numbers<[1], [0], [0], [1], [0, 0, 1, 1], [], []>} : vector<8x8xf32>, vector<8x32xf32>, vector<8x32xf32> -> vector<8x32xf32>
    %c0_121 = arith.constant 0 : index
    %c0_122 = arith.constant 0 : index
    %259 = vector.load %arg19[%c0_121, %c0_122] : memref<16x128xf32, #tpu.memory_space<vmem>>, vector<8x32xf32>
    tpu.vector_store %arg19[%c0_121, %c0_122], %258 {strides = array<i32>} : memref<16x128xf32, #tpu.memory_space<vmem>>, vector<8x32xf32>,
    %260 = vector.extract_strided_slice %242 {offsets = [0, 32], sizes = [8, 32], strides = [1, 1]} : vector<8x384xf32> to vector<8x32xf32>
    %261 = vector.extract_strided_slice %242 {offsets = [0, 160], sizes = [8, 32], strides = [1, 1]} : vector<8x384xf32> to vector<8x32xf32>
    %262 = vector.extract_strided_slice %242 {offsets = [0, 288], sizes = [8, 32], strides = [1, 1]} : vector<8x384xf32> to vector<8x32xf32>
    %cst_123 = arith.constant dense<0.000000e+00> : vector<8x8xf32>
    %263 = tpu.matmul %260, %261, %cst_123 {dimension_numbers = #tpu.dot_dimension_numbers<[1], [1], [0], [0], [0, 0, 1, 0], [], []>} : vector<8x32xf32>, vector<8x32xf32>, vector<8x8xf32> -> vector<8x8xf32>
    %cst_124 = arith.constant 0.176776692 : f32
    %264 = vector.broadcast %cst_124 : f32 to vector<8x8xf32>
    %265 = arith.mulf %263, %264 : vector<8x8xf32>
    %cst_125 = arith.constant dense<0xFF800000> : vector<8xf32>
    %266 = vector.multi_reduction <maximumf>, %265, %cst_125 [1] : vector<8x8xf32> to vector<8xf32>
    %267 = vector.shape_cast %266 : vector<8xf32> to vector<8x1xf32>
    %268 = vector.broadcast %267 : vector<8x1xf32> to vector<8x8xf32>
    %269 = arith.subf %265, %268 : vector<8x8xf32>
    %270 = math.exp %269 : vector<8x8xf32>
    %cst_126 = arith.constant dense<0.000000e+00> : vector<8xf32>
    %271 = vector.multi_reduction <add>, %270, %cst_126 [1] : vector<8x8xf32> to vector<8xf32>
    %272 = vector.shape_cast %271 : vector<8xf32> to vector<8x1xf32>
    %273 = vector.broadcast %272 : vector<8x1xf32> to vector<8x8xf32>
    %274 = arith.divf %270, %273 : vector<8x8xf32>
    %cst_127 = arith.constant dense<0.000000e+00> : vector<8x32xf32>
    %275 = tpu.matmul %274, %262, %cst_127 {dimension_numbers = #tpu.dot_dimension_numbers<[1], [0], [0], [1], [0, 0, 1, 1], [], []>} : vector<8x8xf32>, vector<8x32xf32>, vector<8x32xf32> -> vector<8x32xf32>
    %c0_128 = arith.constant 0 : index
    %c32_129 = arith.constant 32 : index
    %276 = vector.load %arg19[%c0_128, %c32_129] : memref<16x128xf32, #tpu.memory_space<vmem>>, vector<8x32xf32>
    tpu.vector_store %arg19[%c0_128, %c32_129], %275 {strides = array<i32>} : memref<16x128xf32, #tpu.memory_space<vmem>>, vector<8x32xf32>,
    %277 = vector.extract_strided_slice %242 {offsets = [0, 64], sizes = [8, 32], strides = [1, 1]} : vector<8x384xf32> to vector<8x32xf32>
    %278 = vector.extract_strided_slice %242 {offsets = [0, 192], sizes = [8, 32], strides = [1, 1]} : vector<8x384xf32> to vector<8x32xf32>
    %279 = vector.extract_strided_slice %242 {offsets = [0, 320], sizes = [8, 32], strides = [1, 1]} : vector<8x384xf32> to vector<8x32xf32>
    %cst_130 = arith.constant dense<0.000000e+00> : vector<8x8xf32>
    %280 = tpu.matmul %277, %278, %cst_130 {dimension_numbers = #tpu.dot_dimension_numbers<[1], [1], [0], [0], [0, 0, 1, 0], [], []>} : vector<8x32xf32>, vector<8x32xf32>, vector<8x8xf32> -> vector<8x8xf32>
    %cst_131 = arith.constant 0.176776692 : f32
    %281 = vector.broadcast %cst_131 : f32 to vector<8x8xf32>
    %282 = arith.mulf %280, %281 : vector<8x8xf32>
    %cst_132 = arith.constant dense<0xFF800000> : vector<8xf32>
    %283 = vector.multi_reduction <maximumf>, %282, %cst_132 [1] : vector<8x8xf32> to vector<8xf32>
    %284 = vector.shape_cast %283 : vector<8xf32> to vector<8x1xf32>
    %285 = vector.broadcast %284 : vector<8x1xf32> to vector<8x8xf32>
    %286 = arith.subf %282, %285 : vector<8x8xf32>
    %287 = math.exp %286 : vector<8x8xf32>
    %cst_133 = arith.constant dense<0.000000e+00> : vector<8xf32>
    %288 = vector.multi_reduction <add>, %287, %cst_133 [1] : vector<8x8xf32> to vector<8xf32>
    %289 = vector.shape_cast %288 : vector<8xf32> to vector<8x1xf32>
    %290 = vector.broadcast %289 : vector<8x1xf32> to vector<8x8xf32>
    %291 = arith.divf %287, %290 : vector<8x8xf32>
    %cst_134 = arith.constant dense<0.000000e+00> : vector<8x32xf32>
    %292 = tpu.matmul %291, %279, %cst_134 {dimension_numbers = #tpu.dot_dimension_numbers<[1], [0], [0], [1], [0, 0, 1, 1], [], []>} : vector<8x8xf32>, vector<8x32xf32>, vector<8x32xf32> -> vector<8x32xf32>
    %c0_135 = arith.constant 0 : index
    %c64_136 = arith.constant 64 : index
    %293 = vector.load %arg19[%c0_135, %c64_136] : memref<16x128xf32, #tpu.memory_space<vmem>>, vector<8x32xf32>
    tpu.vector_store %arg19[%c0_135, %c64_136], %292 {strides = array<i32>} : memref<16x128xf32, #tpu.memory_space<vmem>>, vector<8x32xf32>,
    %294 = vector.extract_strided_slice %242 {offsets = [0, 96], sizes = [8, 32], strides = [1, 1]} : vector<8x384xf32> to vector<8x32xf32>
    %295 = vector.extract_strided_slice %242 {offsets = [0, 224], sizes = [8, 32], strides = [1, 1]} : vector<8x384xf32> to vector<8x32xf32>
    %296 = vector.extract_strided_slice %242 {offsets = [0, 352], sizes = [8, 32], strides = [1, 1]} : vector<8x384xf32> to vector<8x32xf32>
    %cst_137 = arith.constant dense<0.000000e+00> : vector<8x8xf32>
    %297 = tpu.matmul %294, %295, %cst_137 {dimension_numbers = #tpu.dot_dimension_numbers<[1], [1], [0], [0], [0, 0, 1, 0], [], []>} : vector<8x32xf32>, vector<8x32xf32>, vector<8x8xf32> -> vector<8x8xf32>
    %cst_138 = arith.constant 0.176776692 : f32
    %298 = vector.broadcast %cst_138 : f32 to vector<8x8xf32>
    %299 = arith.mulf %297, %298 : vector<8x8xf32>
    %cst_139 = arith.constant dense<0xFF800000> : vector<8xf32>
    %300 = vector.multi_reduction <maximumf>, %299, %cst_139 [1] : vector<8x8xf32> to vector<8xf32>
    %301 = vector.shape_cast %300 : vector<8xf32> to vector<8x1xf32>
    %302 = vector.broadcast %301 : vector<8x1xf32> to vector<8x8xf32>
    %303 = arith.subf %299, %302 : vector<8x8xf32>
    %304 = math.exp %303 : vector<8x8xf32>
    %cst_140 = arith.constant dense<0.000000e+00> : vector<8xf32>
    %305 = vector.multi_reduction <add>, %304, %cst_140 [1] : vector<8x8xf32> to vector<8xf32>
    %306 = vector.shape_cast %305 : vector<8xf32> to vector<8x1xf32>
    %307 = vector.broadcast %306 : vector<8x1xf32> to vector<8x8xf32>
    %308 = arith.divf %304, %307 : vector<8x8xf32>
    %cst_141 = arith.constant dense<0.000000e+00> : vector<8x32xf32>
    %309 = tpu.matmul %308, %296, %cst_141 {dimension_numbers = #tpu.dot_dimension_numbers<[1], [0], [0], [1], [0, 0, 1, 1], [], []>} : vector<8x8xf32>, vector<8x32xf32>, vector<8x32xf32> -> vector<8x32xf32>
    %c0_142 = arith.constant 0 : index
    %c96_143 = arith.constant 96 : index
    %310 = vector.load %arg19[%c0_142, %c96_143] : memref<16x128xf32, #tpu.memory_space<vmem>>, vector<8x32xf32>
    tpu.vector_store %arg19[%c0_142, %c96_143], %309 {strides = array<i32>} : memref<16x128xf32, #tpu.memory_space<vmem>>, vector<8x32xf32>,
    %311 = vector.extract_strided_slice %241 {offsets = [8, 0], sizes = [8, 384], strides = [1, 1]} : vector<16x384xf32> to vector<8x384xf32>
    %312 = vector.extract_strided_slice %311 {offsets = [0, 0], sizes = [8, 32], strides = [1, 1]} : vector<8x384xf32> to vector<8x32xf32>
    %313 = vector.extract_strided_slice %311 {offsets = [0, 128], sizes = [8, 32], strides = [1, 1]} : vector<8x384xf32> to vector<8x32xf32>
    %314 = vector.extract_strided_slice %311 {offsets = [0, 256], sizes = [8, 32], strides = [1, 1]} : vector<8x384xf32> to vector<8x32xf32>
    %cst_144 = arith.constant dense<0.000000e+00> : vector<8x8xf32>
    %315 = tpu.matmul %312, %313, %cst_144 {dimension_numbers = #tpu.dot_dimension_numbers<[1], [1], [0], [0], [0, 0, 1, 0], [], []>} : vector<8x32xf32>, vector<8x32xf32>, vector<8x8xf32> -> vector<8x8xf32>
    %cst_145 = arith.constant 0.176776692 : f32
    %316 = vector.broadcast %cst_145 : f32 to vector<8x8xf32>
    %317 = arith.mulf %315, %316 : vector<8x8xf32>
    %cst_146 = arith.constant dense<0xFF800000> : vector<8xf32>
    %318 = vector.multi_reduction <maximumf>, %317, %cst_146 [1] : vector<8x8xf32> to vector<8xf32>
    %319 = vector.shape_cast %318 : vector<8xf32> to vector<8x1xf32>
    %320 = vector.broadcast %319 : vector<8x1xf32> to vector<8x8xf32>
    %321 = arith.subf %317, %320 : vector<8x8xf32>
    %322 = math.exp %321 : vector<8x8xf32>
    %cst_147 = arith.constant dense<0.000000e+00> : vector<8xf32>
    %323 = vector.multi_reduction <add>, %322, %cst_147 [1] : vector<8x8xf32> to vector<8xf32>
    %324 = vector.shape_cast %323 : vector<8xf32> to vector<8x1xf32>
    %325 = vector.broadcast %324 : vector<8x1xf32> to vector<8x8xf32>
    %326 = arith.divf %322, %325 : vector<8x8xf32>
    %cst_148 = arith.constant dense<0.000000e+00> : vector<8x32xf32>
    %327 = tpu.matmul %326, %314, %cst_148 {dimension_numbers = #tpu.dot_dimension_numbers<[1], [0], [0], [1], [0, 0, 1, 1], [], []>} : vector<8x8xf32>, vector<8x32xf32>, vector<8x32xf32> -> vector<8x32xf32>
    %c8_149 = arith.constant 8 : index
    %c0_150 = arith.constant 0 : index
    %328 = vector.load %arg19[%c8_149, %c0_150] : memref<16x128xf32, #tpu.memory_space<vmem>>, vector<8x32xf32>
    tpu.vector_store %arg19[%c8_149, %c0_150], %327 {strides = array<i32>} : memref<16x128xf32, #tpu.memory_space<vmem>>, vector<8x32xf32>,
    %329 = vector.extract_strided_slice %311 {offsets = [0, 32], sizes = [8, 32], strides = [1, 1]} : vector<8x384xf32> to vector<8x32xf32>
    %330 = vector.extract_strided_slice %311 {offsets = [0, 160], sizes = [8, 32], strides = [1, 1]} : vector<8x384xf32> to vector<8x32xf32>
    %331 = vector.extract_strided_slice %311 {offsets = [0, 288], sizes = [8, 32], strides = [1, 1]} : vector<8x384xf32> to vector<8x32xf32>
    %cst_151 = arith.constant dense<0.000000e+00> : vector<8x8xf32>
    %332 = tpu.matmul %329, %330, %cst_151 {dimension_numbers = #tpu.dot_dimension_numbers<[1], [1], [0], [0], [0, 0, 1, 0], [], []>} : vector<8x32xf32>, vector<8x32xf32>, vector<8x8xf32> -> vector<8x8xf32>
    %cst_152 = arith.constant 0.176776692 : f32
    %333 = vector.broadcast %cst_152 : f32 to vector<8x8xf32>
    %334 = arith.mulf %332, %333 : vector<8x8xf32>
    %cst_153 = arith.constant dense<0xFF800000> : vector<8xf32>
    %335 = vector.multi_reduction <maximumf>, %334, %cst_153 [1] : vector<8x8xf32> to vector<8xf32>
    %336 = vector.shape_cast %335 : vector<8xf32> to vector<8x1xf32>
    %337 = vector.broadcast %336 : vector<8x1xf32> to vector<8x8xf32>
    %338 = arith.subf %334, %337 : vector<8x8xf32>
    %339 = math.exp %338 : vector<8x8xf32>
    %cst_154 = arith.constant dense<0.000000e+00> : vector<8xf32>
    %340 = vector.multi_reduction <add>, %339, %cst_154 [1] : vector<8x8xf32> to vector<8xf32>
    %341 = vector.shape_cast %340 : vector<8xf32> to vector<8x1xf32>
    %342 = vector.broadcast %341 : vector<8x1xf32> to vector<8x8xf32>
    %343 = arith.divf %339, %342 : vector<8x8xf32>
    %cst_155 = arith.constant dense<0.000000e+00> : vector<8x32xf32>
    %344 = tpu.matmul %343, %331, %cst_155 {dimension_numbers = #tpu.dot_dimension_numbers<[1], [0], [0], [1], [0, 0, 1, 1], [], []>} : vector<8x8xf32>, vector<8x32xf32>, vector<8x32xf32> -> vector<8x32xf32>
    %c8_156 = arith.constant 8 : index
    %c32_157 = arith.constant 32 : index
    %345 = vector.load %arg19[%c8_156, %c32_157] : memref<16x128xf32, #tpu.memory_space<vmem>>, vector<8x32xf32>
    tpu.vector_store %arg19[%c8_156, %c32_157], %344 {strides = array<i32>} : memref<16x128xf32, #tpu.memory_space<vmem>>, vector<8x32xf32>,
    %346 = vector.extract_strided_slice %311 {offsets = [0, 64], sizes = [8, 32], strides = [1, 1]} : vector<8x384xf32> to vector<8x32xf32>
    %347 = vector.extract_strided_slice %311 {offsets = [0, 192], sizes = [8, 32], strides = [1, 1]} : vector<8x384xf32> to vector<8x32xf32>
    %348 = vector.extract_strided_slice %311 {offsets = [0, 320], sizes = [8, 32], strides = [1, 1]} : vector<8x384xf32> to vector<8x32xf32>
    %cst_158 = arith.constant dense<0.000000e+00> : vector<8x8xf32>
    %349 = tpu.matmul %346, %347, %cst_158 {dimension_numbers = #tpu.dot_dimension_numbers<[1], [1], [0], [0], [0, 0, 1, 0], [], []>} : vector<8x32xf32>, vector<8x32xf32>, vector<8x8xf32> -> vector<8x8xf32>
    %cst_159 = arith.constant 0.176776692 : f32
    %350 = vector.broadcast %cst_159 : f32 to vector<8x8xf32>
    %351 = arith.mulf %349, %350 : vector<8x8xf32>
    %cst_160 = arith.constant dense<0xFF800000> : vector<8xf32>
    %352 = vector.multi_reduction <maximumf>, %351, %cst_160 [1] : vector<8x8xf32> to vector<8xf32>
    %353 = vector.shape_cast %352 : vector<8xf32> to vector<8x1xf32>
    %354 = vector.broadcast %353 : vector<8x1xf32> to vector<8x8xf32>
    %355 = arith.subf %351, %354 : vector<8x8xf32>
    %356 = math.exp %355 : vector<8x8xf32>
    %cst_161 = arith.constant dense<0.000000e+00> : vector<8xf32>
    %357 = vector.multi_reduction <add>, %356, %cst_161 [1] : vector<8x8xf32> to vector<8xf32>
    %358 = vector.shape_cast %357 : vector<8xf32> to vector<8x1xf32>
    %359 = vector.broadcast %358 : vector<8x1xf32> to vector<8x8xf32>
    %360 = arith.divf %356, %359 : vector<8x8xf32>
    %cst_162 = arith.constant dense<0.000000e+00> : vector<8x32xf32>
    %361 = tpu.matmul %360, %348, %cst_162 {dimension_numbers = #tpu.dot_dimension_numbers<[1], [0], [0], [1], [0, 0, 1, 1], [], []>} : vector<8x8xf32>, vector<8x32xf32>, vector<8x32xf32> -> vector<8x32xf32>
    %c8_163 = arith.constant 8 : index
    %c64_164 = arith.constant 64 : index
    %362 = vector.load %arg19[%c8_163, %c64_164] : memref<16x128xf32, #tpu.memory_space<vmem>>, vector<8x32xf32>
    tpu.vector_store %arg19[%c8_163, %c64_164], %361 {strides = array<i32>} : memref<16x128xf32, #tpu.memory_space<vmem>>, vector<8x32xf32>,
    %363 = vector.extract_strided_slice %311 {offsets = [0, 96], sizes = [8, 32], strides = [1, 1]} : vector<8x384xf32> to vector<8x32xf32>
    %364 = vector.extract_strided_slice %311 {offsets = [0, 224], sizes = [8, 32], strides = [1, 1]} : vector<8x384xf32> to vector<8x32xf32>
    %365 = vector.extract_strided_slice %311 {offsets = [0, 352], sizes = [8, 32], strides = [1, 1]} : vector<8x384xf32> to vector<8x32xf32>
    %cst_165 = arith.constant dense<0.000000e+00> : vector<8x8xf32>
    %366 = tpu.matmul %363, %364, %cst_165 {dimension_numbers = #tpu.dot_dimension_numbers<[1], [1], [0], [0], [0, 0, 1, 0], [], []>} : vector<8x32xf32>, vector<8x32xf32>, vector<8x8xf32> -> vector<8x8xf32>
    %cst_166 = arith.constant 0.176776692 : f32
    %367 = vector.broadcast %cst_166 : f32 to vector<8x8xf32>
    %368 = arith.mulf %366, %367 : vector<8x8xf32>
    %cst_167 = arith.constant dense<0xFF800000> : vector<8xf32>
    %369 = vector.multi_reduction <maximumf>, %368, %cst_167 [1] : vector<8x8xf32> to vector<8xf32>
    %370 = vector.shape_cast %369 : vector<8xf32> to vector<8x1xf32>
    %371 = vector.broadcast %370 : vector<8x1xf32> to vector<8x8xf32>
    %372 = arith.subf %368, %371 : vector<8x8xf32>
    %373 = math.exp %372 : vector<8x8xf32>
    %cst_168 = arith.constant dense<0.000000e+00> : vector<8xf32>
    %374 = vector.multi_reduction <add>, %373, %cst_168 [1] : vector<8x8xf32> to vector<8xf32>
    %375 = vector.shape_cast %374 : vector<8xf32> to vector<8x1xf32>
    %376 = vector.broadcast %375 : vector<8x1xf32> to vector<8x8xf32>
    %377 = arith.divf %373, %376 : vector<8x8xf32>
    %cst_169 = arith.constant dense<0.000000e+00> : vector<8x32xf32>
    %378 = tpu.matmul %377, %365, %cst_169 {dimension_numbers = #tpu.dot_dimension_numbers<[1], [0], [0], [1], [0, 0, 1, 1], [], []>} : vector<8x8xf32>, vector<8x32xf32>, vector<8x32xf32> -> vector<8x32xf32>
    %c8_170 = arith.constant 8 : index
    %c96_171 = arith.constant 96 : index
    %379 = vector.load %arg19[%c8_170, %c96_171] : memref<16x128xf32, #tpu.memory_space<vmem>>, vector<8x32xf32>
    tpu.vector_store %arg19[%c8_170, %c96_171], %378 {strides = array<i32>} : memref<16x128xf32, #tpu.memory_space<vmem>>, vector<8x32xf32>,
    %c0_172 = arith.constant 0 : index
    %c0_173 = arith.constant 0 : index
    %380 = vector.load %arg19[%c0_172, %c0_173] : memref<16x128xf32, #tpu.memory_space<vmem>>, vector<16x128xf32>
    %381 = arith.truncf %380 : vector<16x128xf32> to vector<16x128xbf16>
    %c1_174 = arith.constant 1 : index
    %c0_175 = arith.constant 0 : index
    %c0_176 = arith.constant 0 : index
    %382 = vector.load %arg6[%c1_174, %c0_175, %c0_176] : memref<2x128x128xbf16, #tpu.memory_space<vmem>>, vector<1x128x128xbf16>
    %383 = vector.shape_cast %382 : vector<1x128x128xbf16> to vector<128x128xbf16>
    %cst_177 = arith.constant dense<0.000000e+00> : vector<16x128xf32>
    %384 = tpu.matmul %381, %383, %cst_177 {dimension_numbers = #tpu.dot_dimension_numbers<[1], [0], [0], [1], [0, 0, 1, 1], [], []>} : vector<16x128xbf16>, vector<128x128xbf16>, vector<16x128xf32> -> vector<16x128xf32>
    %c1_178 = arith.constant 1 : index
    %c0_179 = arith.constant 0 : index
    %c0_180 = arith.constant 0 : index
    %385 = vector.load %arg7[%c1_178, %c0_179, %c0_180] : memref<2x1x128xf32, #tpu.memory_space<vmem>>, vector<1x1x128xf32>
    %386 = vector.shape_cast %385 : vector<1x1x128xf32> to vector<1x128xf32>
    %387 = vector.broadcast %386 : vector<1x128xf32> to vector<16x128xf32>
    %388 = arith.addf %384, %387 : vector<16x128xf32>
    %389 = arith.addf %233, %388 : vector<16x128xf32>
    %c1_181 = arith.constant 1 : index
    %c0_182 = arith.constant 0 : index
    %c0_183 = arith.constant 0 : index
    %390 = vector.load %arg8[%c1_181, %c0_182, %c0_183] : memref<2x1x128xf32, #tpu.memory_space<vmem>>, vector<1x1x128xf32>
    %391 = vector.shape_cast %390 : vector<1x1x128xf32> to vector<1x128xf32>
    %c1_184 = arith.constant 1 : index
    %c0_185 = arith.constant 0 : index
    %c0_186 = arith.constant 0 : index
    %392 = vector.load %arg9[%c1_184, %c0_185, %c0_186] : memref<2x1x128xf32, #tpu.memory_space<vmem>>, vector<1x1x128xf32>
    %393 = vector.shape_cast %392 : vector<1x1x128xf32> to vector<1x128xf32>
    %cst_187 = arith.constant dense<0.000000e+00> : vector<16xf32>
    %394 = vector.multi_reduction <add>, %389, %cst_187 [1] : vector<16x128xf32> to vector<16xf32>
    %395 = vector.shape_cast %394 : vector<16xf32> to vector<16x1xf32>
    %cst_188 = arith.constant 1.280000e+02 : f32
    %396 = vector.broadcast %cst_188 : f32 to vector<16x1xf32>
    %397 = arith.divf %395, %396 : vector<16x1xf32>
    %398 = vector.broadcast %397 : vector<16x1xf32> to vector<16x128xf32>
    %399 = arith.subf %389, %398 : vector<16x128xf32>
    %400 = arith.mulf %399, %399 : vector<16x128xf32>
    %cst_189 = arith.constant dense<0.000000e+00> : vector<16xf32>
    %401 = vector.multi_reduction <add>, %400, %cst_189 [1] : vector<16x128xf32> to vector<16xf32>
    %402 = vector.shape_cast %401 : vector<16xf32> to vector<16x1xf32>
    %cst_190 = arith.constant 1.280000e+02 : f32
    %403 = vector.broadcast %cst_190 : f32 to vector<16x1xf32>
    %404 = arith.divf %402, %403 : vector<16x1xf32>
    %405 = vector.broadcast %397 : vector<16x1xf32> to vector<16x128xf32>
    %406 = arith.subf %389, %405 : vector<16x128xf32>
    %cst_191 = arith.constant 9.99999974E-6 : f32
    %407 = vector.broadcast %cst_191 : f32 to vector<16x1xf32>
    %408 = arith.addf %404, %407 : vector<16x1xf32>
    %409 = math.rsqrt %408 : vector<16x1xf32>
    %410 = vector.broadcast %409 : vector<16x1xf32> to vector<16x128xf32>
    %411 = arith.mulf %406, %410 : vector<16x128xf32>
    %412 = vector.broadcast %391 : vector<1x128xf32> to vector<16x128xf32>
    %413 = arith.mulf %411, %412 : vector<16x128xf32>
    %414 = vector.broadcast %393 : vector<1x128xf32> to vector<16x128xf32>
    %415 = arith.addf %413, %414 : vector<16x128xf32>
    %c1_192 = arith.constant 1 : index
    %c0_193 = arith.constant 0 : index
    %c0_194 = arith.constant 0 : index
    %416 = vector.load %arg10[%c1_192, %c0_193, %c0_194] : memref<2x128x256xbf16, #tpu.memory_space<vmem>>, vector<1x128x256xbf16>
    %417 = vector.shape_cast %416 : vector<1x128x256xbf16> to vector<128x256xbf16>
    %418 = arith.truncf %415 : vector<16x128xf32> to vector<16x128xbf16>
    %cst_195 = arith.constant dense<0.000000e+00> : vector<16x256xf32>
    %419 = tpu.matmul %418, %417, %cst_195 {dimension_numbers = #tpu.dot_dimension_numbers<[1], [0], [0], [1], [0, 0, 1, 1], [], []>} : vector<16x128xbf16>, vector<128x256xbf16>, vector<16x256xf32> -> vector<16x256xf32>
    %c1_196 = arith.constant 1 : index
    %c0_197 = arith.constant 0 : index
    %c0_198 = arith.constant 0 : index
    %420 = vector.load %arg11[%c1_196, %c0_197, %c0_198] : memref<2x1x256xf32, #tpu.memory_space<vmem>>, vector<1x1x256xf32>
    %421 = vector.shape_cast %420 : vector<1x1x256xf32> to vector<1x256xf32>
    %422 = vector.broadcast %421 : vector<1x256xf32> to vector<16x256xf32>
    %423 = arith.addf %419, %422 : vector<16x256xf32>
    %cst_199 = arith.constant 0.000000e+00 : f32
    %424 = vector.broadcast %cst_199 : f32 to vector<16x256xf32>
    %425 = arith.maximumf %423, %424 : vector<16x256xf32>
    %c1_200 = arith.constant 1 : index
    %c0_201 = arith.constant 0 : index
    %c0_202 = arith.constant 0 : index
    %426 = vector.load %arg12[%c1_200, %c0_201, %c0_202] : memref<2x256x128xbf16, #tpu.memory_space<vmem>>, vector<1x256x128xbf16>
    %427 = vector.shape_cast %426 : vector<1x256x128xbf16> to vector<256x128xbf16>
    %428 = arith.truncf %425 : vector<16x256xf32> to vector<16x256xbf16>
    %cst_203 = arith.constant dense<0.000000e+00> : vector<16x128xf32>
    %429 = tpu.matmul %428, %427, %cst_203 {dimension_numbers = #tpu.dot_dimension_numbers<[1], [0], [0], [1], [0, 0, 1, 1], [], []>} : vector<16x256xbf16>, vector<256x128xbf16>, vector<16x128xf32> -> vector<16x128xf32>
    %c1_204 = arith.constant 1 : index
    %c0_205 = arith.constant 0 : index
    %c0_206 = arith.constant 0 : index
    %430 = vector.load %arg13[%c1_204, %c0_205, %c0_206] : memref<2x1x128xf32, #tpu.memory_space<vmem>>, vector<1x1x128xf32>
    %431 = vector.shape_cast %430 : vector<1x1x128xf32> to vector<1x128xf32>
    %432 = vector.broadcast %431 : vector<1x128xf32> to vector<16x128xf32>
    %433 = arith.addf %429, %432 : vector<16x128xf32>
    %434 = arith.addf %415, %433 : vector<16x128xf32>
    %c1_207 = arith.constant 1 : index
    %c0_208 = arith.constant 0 : index
    %c0_209 = arith.constant 0 : index
    %435 = vector.load %arg14[%c1_207, %c0_208, %c0_209] : memref<2x1x128xf32, #tpu.memory_space<vmem>>, vector<1x1x128xf32>
    %436 = vector.shape_cast %435 : vector<1x1x128xf32> to vector<1x128xf32>
    %c1_210 = arith.constant 1 : index
    %c0_211 = arith.constant 0 : index
    %c0_212 = arith.constant 0 : index
    %437 = vector.load %arg15[%c1_210, %c0_211, %c0_212] : memref<2x1x128xf32, #tpu.memory_space<vmem>>, vector<1x1x128xf32>
    %438 = vector.shape_cast %437 : vector<1x1x128xf32> to vector<1x128xf32>
    %cst_213 = arith.constant dense<0.000000e+00> : vector<16xf32>
    %439 = vector.multi_reduction <add>, %434, %cst_213 [1] : vector<16x128xf32> to vector<16xf32>
    %440 = vector.shape_cast %439 : vector<16xf32> to vector<16x1xf32>
    %cst_214 = arith.constant 1.280000e+02 : f32
    %441 = vector.broadcast %cst_214 : f32 to vector<16x1xf32>
    %442 = arith.divf %440, %441 : vector<16x1xf32>
    %443 = vector.broadcast %442 : vector<16x1xf32> to vector<16x128xf32>
    %444 = arith.subf %434, %443 : vector<16x128xf32>
    %445 = arith.mulf %444, %444 : vector<16x128xf32>
    %cst_215 = arith.constant dense<0.000000e+00> : vector<16xf32>
    %446 = vector.multi_reduction <add>, %445, %cst_215 [1] : vector<16x128xf32> to vector<16xf32>
    %447 = vector.shape_cast %446 : vector<16xf32> to vector<16x1xf32>
    %cst_216 = arith.constant 1.280000e+02 : f32
    %448 = vector.broadcast %cst_216 : f32 to vector<16x1xf32>
    %449 = arith.divf %447, %448 : vector<16x1xf32>
    %450 = vector.broadcast %442 : vector<16x1xf32> to vector<16x128xf32>
    %451 = arith.subf %434, %450 : vector<16x128xf32>
    %cst_217 = arith.constant 9.99999974E-6 : f32
    %452 = vector.broadcast %cst_217 : f32 to vector<16x1xf32>
    %453 = arith.addf %449, %452 : vector<16x1xf32>
    %454 = math.rsqrt %453 : vector<16x1xf32>
    %455 = vector.broadcast %454 : vector<16x1xf32> to vector<16x128xf32>
    %456 = arith.mulf %451, %455 : vector<16x128xf32>
    %457 = vector.broadcast %436 : vector<1x128xf32> to vector<16x128xf32>
    %458 = arith.mulf %456, %457 : vector<16x128xf32>
    %459 = vector.broadcast %438 : vector<1x128xf32> to vector<16x128xf32>
    %460 = arith.addf %458, %459 : vector<16x128xf32>
    %c0_218 = arith.constant 0 : index
    %c0_219 = arith.constant 0 : index
    %461 = vector.load %arg16[%c0_218, %c0_219] : memref<1x128xf32, #tpu.memory_space<vmem>>, vector<1x128xf32>
    %cst_220 = arith.constant dense<0.000000e+00> : vector<1x16xf32>
    %462 = tpu.matmul %461, %460, %cst_220 {dimension_numbers = #tpu.dot_dimension_numbers<[1], [1], [0], [0], [0, 0, 1, 0], [], []>} : vector<1x128xf32>, vector<16x128xf32>, vector<1x16xf32> -> vector<1x16xf32>
    %c0_221 = arith.constant 0 : index
    %c0_222 = arith.constant 0 : index
    %463 = vector.load %arg17[%c0_221, %c0_222] : memref<1x1xf32, #tpu.memory_space<vmem>>, vector<1x1xf32>
    %464 = vector.broadcast %463 : vector<1x1xf32> to vector<1x16xf32>
    %465 = arith.addf %462, %464 : vector<1x16xf32>
    %c0_223 = arith.constant 0 : index
    %c0_224 = arith.constant 0 : index
    %466 = vector.load %arg18[%c0_223, %c0_224] : memref<1x16xf32, #tpu.memory_space<vmem>>, vector<1x16xf32>
    tpu.vector_store %arg18[%c0_223, %c0_224], %465 {strides = array<i32>} : memref<1x16xf32, #tpu.memory_space<vmem>>, vector<1x16xf32>,
    return
  }
  func.func @transform_0(%arg0: i32) -> (i32, i32) {
    %c0_i32 = arith.constant 0 : i32
    %c0_i32_0 = arith.constant 0 : i32
    %c0_i32_1 = arith.constant 0 : i32
    return %c0_i32, %c0_i32_0 : i32, i32
  }
  func.func @transform_1(%arg0: i32) -> (i32, i32) {
    %c0_i32 = arith.constant 0 : i32
    %c0_i32_0 = arith.constant 0 : i32
    %c0_i32_1 = arith.constant 0 : i32
    return %c0_i32, %c0_i32_0 : i32, i32
  }
  func.func @transform_2(%arg0: i32) -> (i32, i32) {
    %c0_i32 = arith.constant 0 : i32
    %c0_i32_0 = arith.constant 0 : i32
    %c0_i32_1 = arith.constant 0 : i32
    return %c0_i32, %c0_i32_0 : i32, i32
  }
  func.func @transform_3(%arg0: i32) -> (i32, i32, i32) {
    %c0_i32 = arith.constant 0 : i32
    %c0_i32_0 = arith.constant 0 : i32
    %c0_i32_1 = arith.constant 0 : i32
    %c0_i32_2 = arith.constant 0 : i32
    return %c0_i32, %c0_i32_0, %c0_i32_1 : i32, i32, i32
  }
  func.func @transform_4(%arg0: i32) -> (i32, i32, i32) {
    %c0_i32 = arith.constant 0 : i32
    %c0_i32_0 = arith.constant 0 : i32
    %c0_i32_1 = arith.constant 0 : i32
    %c0_i32_2 = arith.constant 0 : i32
    return %c0_i32, %c0_i32_0, %c0_i32_1 : i32, i32, i32
  }
  func.func @transform_5(%arg0: i32) -> (i32, i32, i32) {
    %c0_i32 = arith.constant 0 : i32
    %c0_i32_0 = arith.constant 0 : i32
    %c0_i32_1 = arith.constant 0 : i32
    %c0_i32_2 = arith.constant 0 : i32
    return %c0_i32, %c0_i32_0, %c0_i32_1 : i32, i32, i32
  }
  func.func @transform_6(%arg0: i32) -> (i32, i32, i32) {
    %c0_i32 = arith.constant 0 : i32
    %c0_i32_0 = arith.constant 0 : i32
    %c0_i32_1 = arith.constant 0 : i32
    %c0_i32_2 = arith.constant 0 : i32
    return %c0_i32, %c0_i32_0, %c0_i32_1 : i32, i32, i32
  }
  func.func @transform_7(%arg0: i32) -> (i32, i32, i32) {
    %c0_i32 = arith.constant 0 : i32
    %c0_i32_0 = arith.constant 0 : i32
    %c0_i32_1 = arith.constant 0 : i32
    %c0_i32_2 = arith.constant 0 : i32
    return %c0_i32, %c0_i32_0, %c0_i32_1 : i32, i32, i32
  }
  func.func @transform_8(%arg0: i32) -> (i32, i32, i32) {
    %c0_i32 = arith.constant 0 : i32
    %c0_i32_0 = arith.constant 0 : i32
    %c0_i32_1 = arith.constant 0 : i32
    %c0_i32_2 = arith.constant 0 : i32
    return %c0_i32, %c0_i32_0, %c0_i32_1 : i32, i32, i32
  }
  func.func @transform_9(%arg0: i32) -> (i32, i32, i32) {
    %c0_i32 = arith.constant 0 : i32
    %c0_i32_0 = arith.constant 0 : i32
    %c0_i32_1 = arith.constant 0 : i32
    %c0_i32_2 = arith.constant 0 : i32
    return %c0_i32, %c0_i32_0, %c0_i32_1 : i32, i32, i32
  }
  func.func @transform_10(%arg0: i32) -> (i32, i32, i32) {
    %c0_i32 = arith.constant 0 : i32
    %c0_i32_0 = arith.constant 0 : i32
    %c0_i32_1 = arith.constant 0 : i32
    %c0_i32_2 = arith.constant 0 : i32
    return %c0_i32, %c0_i32_0, %c0_i32_1 : i32, i32, i32
  }
  func.func @transform_11(%arg0: i32) -> (i32, i32, i32) {
    %c0_i32 = arith.constant 0 : i32
    %c0_i32_0 = arith.constant 0 : i32
    %c0_i32_1 = arith.constant 0 : i32
    %c0_i32_2 = arith.constant 0 : i32
    return %c0_i32, %c0_i32_0, %c0_i32_1 : i32, i32, i32
  }
  func.func @transform_12(%arg0: i32) -> (i32, i32, i32) {
    %c0_i32 = arith.constant 0 : i32
    %c0_i32_0 = arith.constant 0 : i32
    %c0_i32_1 = arith.constant 0 : i32
    %c0_i32_2 = arith.constant 0 : i32
    return %c0_i32, %c0_i32_0, %c0_i32_1 : i32, i32, i32
  }
  func.func @transform_13(%arg0: i32) -> (i32, i32, i32) {
    %c0_i32 = arith.constant 0 : i32
    %c0_i32_0 = arith.constant 0 : i32
    %c0_i32_1 = arith.constant 0 : i32
    %c0_i32_2 = arith.constant 0 : i32
    return %c0_i32, %c0_i32_0, %c0_i32_1 : i32, i32, i32
  }
  func.func @transform_14(%arg0: i32) -> (i32, i32, i32) {
    %c0_i32 = arith.constant 0 : i32
    %c0_i32_0 = arith.constant 0 : i32
    %c0_i32_1 = arith.constant 0 : i32
    %c0_i32_2 = arith.constant 0 : i32
    return %c0_i32, %c0_i32_0, %c0_i32_1 : i32, i32, i32
  }
  func.func @transform_15(%arg0: i32) -> (i32, i32) {
    %c0_i32 = arith.constant 0 : i32
    %c0_i32_0 = arith.constant 0 : i32
    %c0_i32_1 = arith.constant 0 : i32
    return %c0_i32, %c0_i32_0 : i32, i32
  }
  func.func @transform_16(%arg0: i32) -> (i32, i32) {
    %c0_i32 = arith.constant 0 : i32
    %c0_i32_0 = arith.constant 0 : i32
    %c0_i32_1 = arith.constant 0 : i32
    return %c0_i32, %c0_i32_0 : i32, i32
  }
  func.func @transform_17(%arg0: i32) -> (i32, i32) {
    %c0_i32 = arith.constant 0 : i32
    %c0_i32_0 = arith.constant 0 : i32
    %c0_i32_1 = arith.constant 0 : i32
    return %c0_i32, %c0_i32_0 : i32, i32
  }
}

</mosaic_0001>

<bundles_post_ra>
// kernel: modulo_transformer_forward.1
= control target key start
LH: loop header
LB: loop body
LE: loop exit
PB: predicated region body
PF: predicated region fallthrough
CT: control target
= control target key end

     0   :  { %vm74_vm0 = vcmask 1043456   ;;  %v5464_v0 = vmov 0.0   ;;  %vm5465_vm1 = vmmov 0   ;;  %vm70_vm2 = vcmask 64512   ;;  %s5467_s23 = smov 96   ;;  %s5468_s24 = smov 64   ;;  %s6437_s1 = inlined_call_operand.vmem [shape: bf16[8,128], index: 1, kind: input, shape index: {}]   ;;  %s6438_s0 = inlined_call_operand.vmem [shape: f32[16,8], index: 0, kind: input, shape index: {}]   ;;  %s6439_s3 = inlined_call_operand.vmem [shape: bf16[2,128,384], index: 3, kind: input, shape index: {}]   ;;  %s6440_s2 = inlined_call_operand.vmem [shape: f32[1,128], index: 2, kind: input, shape index: {}]   ;;  %s6441_s4 = inlined_call_operand.vmem [shape: f32[2,1,384], index: 4, kind: input, shape index: {}]   ;;  %s6442_s5 = inlined_call_operand.vmem [shape: bf16[2,128,128], index: 5, kind: input, shape index: {}]   ;;  %s6443_s6 = inlined_call_operand.vmem [shape: f32[2,1,128], index: 6, kind: input, shape index: {}]   ;;  %s6444_s9 = inlined_call_operand.vmem [shape: bf16[2,128,256], index: 9, kind: input, shape index: {}]   ;;  %s6445_s11 = inlined_call_operand.vmem [shape: bf16[2,256,128], index: 11, kind: input, shape index: {}]   ;;  %s6446_s7 = inlined_call_operand.vmem [shape: f32[2,1,128], index: 7, kind: input, shape index: {}]   ;;  %s6447_s8 = inlined_call_operand.vmem [shape: f32[2,1,128], index: 8, kind: input, shape index: {}]   ;;  %s6448_s10 = inlined_call_operand.vmem [shape: f32[2,1,256], index: 10, kind: input, shape index: {}]   ;;  %s6449_s12 = inlined_call_operand.vmem [shape: f32[2,1,128], index: 12, kind: input, shape index: {}]   ;;  %s6450_s13 = inlined_call_operand.vmem [shape: f32[2,1,128], index: 13, kind: input, shape index: {}]   ;;  %s6451_s14 = inlined_call_operand.vmem [shape: f32[2,1,128], index: 14, kind: input, shape index: {}]   ;;  %s6452_s16 = inlined_call_operand.<no memory space> [shape: f32[1,1], index: 16, kind: input, shape index: {}]   ;;  %s6453_s15 = inlined_call_operand.vmem [shape: f32[1,128], index: 15, kind: input, shape index: {}]   ;;  %s6454_s17 = inlined_call_operand.vmem [shape: f32[1,16], index: 17, kind: output, shape index: {}]  }
   0x1   :  { %6456 = sst [smem:[#allocation4_spill]] %s6437_s1  ;;  %4960 = vmatprep.subr.bf16.mxu0 %v5464_v0  ;;  %4962 = vmatprep.mubr.msk.bf16.mxu0 %vm5465_vm1, %v5464_v0  ;;  %v5224_v6 = vld [vmem:[%s6439_s3 + $0x4] ss:$12 sps:$4 sm:$0xff]   ;;  %v5226_v7 = vld [vmem:[%s6439_s3] ss:$12 sps:$4 sm:$0xff]   ;;  %v5466_v30 = vmov 0   ;;  %v154_v39 = vlaneseq }
   0x2   :  { %6457 = sst [smem:[#allocation5_spill]] %s6438_s0  ;;  %s6458_s26 = sld [smem:[#allocation4_spill]]  ;;  %297 = vmatprep.subr.bf16.mxu1 %v5224_v6  ;;  %v5227_v8 = vld [vmem:[%s6439_s3 + $0x8] ss:$12 sps:$4 sm:$0xff]   ;;  %v5230_v10 = vld [vmem:[%s6439_s3 + $0x18] ss:$12 sps:$4 sm:$0xff]   ;;  %329 = vmatprep.mubr.bf16.mxu1 %v5466_v30 }
   0x3   :  { %s6459_s29 = sld [smem:[#allocation5_spill]]  ;;  %298 = vmatpush1.bf16.msra.mxu1 %v5226_v7  ;;  %v5228_v9 = vld [vmem:[%s6439_s3 + $0x1c] ss:$12 sps:$4 sm:$0xff]   ;;  %v5231_v11 = vld [vmem:[%s6439_s3 + $0x20] ss:$12 sps:$4 sm:$0xff]   ;;  %5223 = vset.pattern.permute.xlu0 %v5466_v30  ;;  %v5673_v40 = vshrl.u32 %v154_v39, 7 }
   0x4   :  { %299 = vmatprep.subr.bf16.mxu1 %v5228_v9  ;;  %v5232_v12 = vld [vmem:[%s6439_s3 + $0x34] ss:$12 sps:$4 sm:$0xff]   ;;  %v5234_v13 = vld [vmem:[%s6439_s3 + $0x30] ss:$12 sps:$4 sm:$0xff]   ;;  %v5236_v14 = vld [vmem:[%s6439_s3 + $0x4c] ss:$12 sps:$4 sm:$0xff]  }
   0x5   :  { %v5235_v15 = vld [vmem:[%s6439_s3 + $0x38] ss:$12 sps:$4 sm:$0xff]   ;;  %v5238_v16 = vld [vmem:[%s6439_s3 + $0x48] ss:$12 sps:$4 sm:$0xff]   ;;  %v5239_v18 = vld [vmem:[%s6439_s3 + $0x50] ss:$12 sps:$4 sm:$0xff]  }
   0x6   :  { %v5240_v17 = vld [vmem:[%s6439_s3 + $0x64] ss:$12 sps:$4 sm:$0xff]   ;;  %v5242_v19 = vld [vmem:[%s6439_s3 + $0x60] ss:$12 sps:$4 sm:$0xff]   ;;  %v5243_v20 = vld [vmem:[%s6439_s3 + $0x68] ss:$12 sps:$4 sm:$0xff]  }
   0x7   :  { %300 = vmatpush1.bf16.msra.mxu1 %v5230_v10  ;;  %v5244_v21 = vld [vmem:[%s6439_s3 + $0x7c] ss:$12 sps:$4 sm:$0xff]   ;;  %v5246_v22 = vld [vmem:[%s6439_s3 + $0x78] ss:$12 sps:$4 sm:$0xff]   ;;  %v5248_v23 = vld [vmem:[%s6439_s3 + $0x94] ss:$12 sps:$4 sm:$0xff]  }
   0x8   :  { %v61_v1 = vld [vmem:[%s6458_s26] sm:$0xf]  ;;  %301 = vmatprep.subr.bf16.mxu1 %v5232_v12  ;;  %v5250_v25 = vld [vmem:[%s6439_s3 + $0x90] ss:$12 sps:$4 sm:$0xff]   ;;  %v5251_v26 = vld [vmem:[%s6439_s3 + $0x98] ss:$12 sps:$4 sm:$0xff]  }
   0x9   :  { %v59_v2 = vld [vmem:[%s6459_s29] sm:$0xff]  ;;  %v60_v3 = vld [vmem:[%s6459_s29 + $0x8] sm:$0xff]  ;;  %v76_v4 = vsel %vm74_vm0, %v61_v1, 0  ;;  %v5255_v29 = vld [vmem:[%s6439_s3 + $0xb0] ss:$12 sps:$4 sm:$0xff]   ;;  %v5676_v41 = vsub.s32 1, %v5673_v40 }
   0xa   :  { %v62_v5 = vpack.c.bf16 %v60_v3, %v59_v2  ;;  %4961 = vmatpush3.bf16.msra.mxu0 %v76_v4  ;;  %v5247_v24 = vld [vmem:[%s6439_s3 + $0x80] ss:$12 sps:$4 sm:$0xff]   ;;  %v5254_v28 = vld [vmem:[%s6439_s3 + $0xa8] ss:$12 sps:$4 sm:$0xff]   ;;  %v5682_v43 = vsub.s32 0, %v5673_v40  ;;  %v164_v44 = vsub.s32 2, %v5673_v40 }
   0xb   :  { %4966 = vmatprep.subr.bf16.mxu0 %v5464_v0  ;;  %302 = vmatpush1.bf16.msra.mxu1 %v5234_v13  ;;  %v5252_v27 = vld [vmem:[%s6439_s3 + $0xac] ss:$12 sps:$4 sm:$0xff]   ;;  %v4517_v31 = vld [vmem:[%s6440_s2] ss:$0 sm:$0xff]  ;;  %vm381_vm3 = vcmask 261120   ;;  %s5469_s25 = smov 32  }
   0xc   :  { %303 = vmatprep.subr.bf16.mxu1 %v5236_v14  ;;  %v152_v42 = vld [vmem:[%s6441_s4] sm:$0x7]  ;;  %vm715_vm4 = vcmask 523520   ;;  %vm887_vm5 = vcmask 785920   ;;  %vm1059_vm6 = vcmask 1048320   ;;  %vm4511_vm7 = vcmask 122880  }
   0xd   :  { %4963 = vmatmul.mubr.msk.bf16.vlgmr.msra.gmra.mrb[0].mxu0 %vm70_vm2, %v62_v5  ;;  %v161_v45 = vrot.slane %v152_v42, %v5676_v41  ;;  %v157_v48 = vrot.slane %v152_v42, %v5682_v43  ;;  %v165_v49 = vrot.slane %v152_v42, %v164_v44 }
   0xe   :  { %4967 = vmatpush3.bf16.msra.mxu0 %v5227_v8  ;;  %4982 = vmatprep.mubr.msk.bf16.mxu0 %vm5465_vm1, %v5464_v0 }
   0xf   :  { %4968 = vmatprep.subr.bf16.mxu0 %v5464_v0  ;;  %304 = vmatpush1.bf16.msra.mxu1 %v5238_v16 }
  0x10   :  { %305 = vmatprep.subr.bf16.mxu1 %v5240_v17 }
  0x12   :  { %4969 = vmatpush3.bf16.msra.mxu0 %v5231_v11 }
  0x13   :  { %4970 = vmatprep.subr.bf16.mxu0 %v5464_v0  ;;  %306 = vmatpush1.bf16.msra.mxu1 %v5242_v19 }
  0x14   :  { %307 = vmatprep.subr.bf16.mxu1 %v5244_v21 }
  0x16   :  { %4971 = vmatpush3.bf16.msra.mxu0 %v5235_v15 }
  0x17   :  { %4972 = vmatprep.subr.bf16.mxu0 %v5464_v0  ;;  %308 = vmatpush1.bf16.msra.mxu1 %v5246_v22 }
  0x18   :  { %309 = vmatprep.subr.bf16.mxu1 %v5248_v23 }
  0x1a   :  { %4973 = vmatpush3.bf16.msra.mxu0 %v5239_v18 }
  0x1b   :  { %4974 = vmatprep.subr.bf16.mxu0 %v5464_v0  ;;  %310 = vmatpush1.bf16.msra.mxu1 %v5250_v25 }
  0x1c   :  { %311 = vmatprep.subr.bf16.mxu1 %v5252_v27 }
  0x1e   :  { %4975 = vmatpush3.bf16.msra.mxu0 %v5243_v20 }
  0x1f   :  { %4976 = vmatprep.subr.bf16.mxu0 %v5464_v0  ;;  %312 = vmatpush1.bf16.msra.mxu1 %v5254_v28 }
  0x20   :  { %5016 = vmatprep.subr.mxu1 %v5464_v0 }
  0x22   :  { %4977 = vmatpush3.bf16.msra.mxu0 %v5247_v24 }
  0x23   :  { %4978 = vmatprep.subr.bf16.mxu0 %v5464_v0 }
  0x26   :  { %4979 = vmatpush3.bf16.msra.mxu0 %v5251_v26 }
  0x27   :  { %4980 = vmatprep.subr.bf16.mxu0 %v5464_v0 }
  0x2a   :  { %4981 = vmatpush3.bf16.msra.mxu0 %v5255_v29 }
  0x2b   :  { %4986 = vmatprep.subr.mxu0 %v5464_v0 }
  0xe0   :  { %v112_v32 = vpop.f32.mrb[0].mxu0 }
  0xe1   :  { %v4964_v33 = vpop.f32.mrb[1].mxu0  ;;  %v5663_v35 = vadd.f32 %v4517_v31, %v112_v32 }
  0xe2   :  { %v115_v34 = vpop.f32.mrb[2].mxu0 }
  0xe3   :  { %v5665_v36 = vadd.f32 %v4517_v31, %v115_v34  ;;  %v4965_v37 = vpop.f32.mrb[3].mxu0 }
  0xe5   :  { %v151_v38 = vpack.c.bf16 %v5665_v36, %v5663_v35 }
  0xe7   :  { %330 = vmatmul.mubr.bf16.vlgmr.msra.gmra.mrb[0].mxu1 %v151_v38  ;;  %4983 = vmatmul.mubr.bf16.vlgmr.msra.gmra.mrb[4].mxu0 %v151_v38 }
  0xe8   :  { %4988 = vmatprep.mubr.msk.f32.mxu0 %vm5465_vm1, %v5464_v0  ;;  %5018 = vmatprep.mubr.msk.f32.mxu1 %vm5465_vm1, %v5464_v0 }
 0x1ba   :  { %v331_v46 = vpop.f32.mrb[0].mxu1  ;;  %v374_v47 = vpop.f32.mrb[4].mxu0 }
 0x1bb   :  { %v333_v50 = vpop.f32.mrb[1].mxu1  ;;  %v4984_v51 = vpop.f32.mrb[5].mxu0  ;;  %v5697_v60 = vadd.f32 %v331_v46, %v157_v48  ;;  %v5700_v61 = vadd.f32 %v374_v47, %v165_v49 }
 0x1bc   :  { %v334_v52 = vadd.f32 %v333_v50, %v161_v45  ;;  %v335_v53 = vpop.f32.mrb[2].mxu1  ;;  %v377_v54 = vpop.f32.mrb[6].mxu0 }
 0x1bd   :  { %v5689_v55 = vadd.f32 %v335_v53, %v157_v48  ;;  %v5691_v56 = vadd.f32 %v377_v54, %v165_v49  ;;  %v337_v57 = vpop.f32.mrb[3].mxu1  ;;  %v4985_v58 = vpop.f32.mrb[7].mxu0 }
 0x1be   :  { %v5693_v59 = vadd.f32 %v337_v57, %v161_v45  ;;  %546 = vrot.lane.b32.xlu1 %v334_v52, %s5467_s23  ;;  %4987 = vmatpush3.xpose.msk.msra.mxu0 %vm381_vm3, %v334_v52 }
 0x1bf   :  { %4991 = vmatprep.subr.mxu0 %v5464_v0 }
 0x1c1   :  { %4989 = vmatmul.mubr.msk.f32.vlgmr.msra.gmra.mrb[8].mxu0 %vm381_vm3, %v5697_v60 }
 0x1c2   :  { %544 = vrot.lane.b32.xlu1 %v5697_v60, %s5467_s23  ;;  %4992 = vmatpush3.msra.mxu0 %v5700_v61 }
 0x1c3   :  { %4993 = vmatprep.mubr.msk.f32.mxu0 %vm5465_vm1, %v5464_v0  ;;  %4996 = vmatprep.subr.mxu0 %v5464_v0 }
 0x230   :  { %v547_v10 = vpop.permute.xlu1 %546 }
 0x234   :  { %v545_v12 = vpop.permute.xlu1 %544 }
 0x294   :  { %v454_v62 = vpop.f32.mrb[8].mxu0 }
 0x295   :  { %v458_v63 = vmul.f32 0.17677669, %v454_v62  ;;  %v4990_v1 = vpop.f32.mrb[9].mxu0 }
 0x297   :  { %v459_v2 = vsel %vm70_vm2, %v458_v63, -inf }
 0x298   :  { %460 = vmax.xlane.f32.xlu0 %v459_v2 }
 0x325   :  { %v461_v3 = vpop.xlane.xlu0 %460 }
 0x326   :  { %v462_v4 = vsub.f32 %v458_v63, %v461_v3 }
 0x328   :  { %v463_v5 = vmul.f32 1.442695, %v462_v4 }
 0x32a   :  { %5384 = vpow2.f32 %v463_v5 }
 0x334   :  { %v5385_v6 = vpop.eup %5384 }
 0x335   :  { %v465_v7 = vsel %vm70_vm2, %v5385_v6, 0.0 }
 0x336   :  { %466 = vadd.xlane.f32.xlu0 %v465_v7 }
 0x3c3   :  { %v467_v8 = vpop.xlane.xlu0 %466 }
 0x3c4   :  { %5386 = vrcp.f32 %v467_v8 }
 0x3ce   :  { %v5387_v9 = vpop.eup %5386 }
 0x3cf   :  { %v469_v11 = vmul.f32 %v5387_v9, %v5385_v6 }
 0x3d1   :  { %4994 = vmatmul.mubr.msk.f32.vlgmr.msra.gmra.mrb[10].mxu0 %vm70_vm2, %v469_v11 }
 0x3d2   :  { %4997 = vmatpush3.xpose.msk.msra.mxu0 %vm381_vm3, %v547_v10  ;;  %4998 = vmatprep.mubr.msk.f32.mxu0 %vm5465_vm1, %v5464_v0 }
 0x3d3   :  { %5001 = vmatprep.subr.mxu0 %v5464_v0 }
 0x3d5   :  { %4999 = vmatmul.mubr.msk.f32.vlgmr.msra.gmra.mrb[12].mxu0 %vm381_vm3, %v545_v12 }
 0x3d6   :  { %5003 = vmatprep.mubr.msk.f32.mxu0 %vm5465_vm1, %v5464_v0 }
 0x4a4   :  { %v539_v13 = vpop.f32.mrb[10].mxu0 }
 0x4a5   :  { %543 = vst.msk [vmem:[#allocation2] sm:$0xff] %vm381_vm3, %v539_v13  ;;  %v4995_v14 = vpop.f32.mrb[11].mxu0 }
 0x4a8   :  { %v618_v15 = vpop.f32.mrb[12].mxu0 }
 0x4a9   :  { %v622_v16 = vmul.f32 0.17677669, %v618_v15  ;;  %v5000_v17 = vpop.f32.mrb[13].mxu0 }
 0x4ab   :  { %v623_v18 = vsel %vm70_vm2, %v622_v16, -inf }
 0x4ac   :  { %624 = vmax.xlane.f32.xlu0 %v623_v18 }
 0x4c2   :  { %635 = vrot.lane.b32.xlu0 %v5700_v61, %s5467_s23 }
 0x4c6   :  { %719 = vrot.lane.b32.xlu0 %v334_v52, %s5468_s24 }
 0x4ca   :  { %717 = vrot.lane.b32.xlu0 %v5697_v60, %s5468_s24 }
 0x4ce   :  { %891 = vrot.lane.b32.xlu0 %v334_v52, %s5469_s25 }
 0x4d2   :  { %1225 = vrot.lane.b32.xlu0 %v5693_v59, %s5467_s23 }
 0x4d6   :  { %1223 = vrot.lane.b32.xlu0 %v5689_v55, %s5467_s23 }
 0x4da   :  { %1397 = vrot.lane.b32.xlu0 %v5693_v59, %s5468_s24 }
 0x4de   :  { %1395 = vrot.lane.b32.xlu0 %v5689_v55, %s5468_s24 }
 0x4e2   :  { %1566 = vrot.lane.b32.xlu0 %v5689_v55, %s5469_s25 }
 0x539   :  { %v625_v19 = vpop.xlane.xlu0 %624 }
 0x53a   :  { %v626_v20 = vsub.f32 %v622_v16, %v625_v19 }
 0x53c   :  { %v627_v21 = vmul.f32 1.442695, %v626_v20 }
 0x53d   :  { %v636_v22 = vpop.permute.xlu0 %635 }
 0x53e   :  { %5388 = vpow2.f32 %v627_v21  ;;  %5002 = vmatpush3.msra.mxu0 %v636_v22 }
 0x53f   :  { %5006 = vmatprep.subr.mxu0 %v5464_v0 }
 0x541   :  { %v720_v23 = vpop.permute.xlu0 %719 }
 0x545   :  { %v718_v24 = vpop.permute.xlu0 %717 }
 0x548   :  { %v5389_v25 = vpop.eup %5388 }
 0x549   :  { %v892_v26 = vpop.permute.xlu0 %891  ;;  %v629_v27 = vsel %vm70_vm2, %v5389_v25, 0.0 }
 0x54a   :  { %630 = vadd.xlane.f32.xlu1 %v629_v27  ;;  %5017 = vmatpush3.xpose.msk.msra.mxu1 %vm381_vm3, %v892_v26 }
 0x54b   :  { %5026 = vmatprep.subr.mxu1 %v5464_v0 }
 0x54d   :  { %v1226_v28 = vpop.permute.xlu0 %1225 }
 0x551   :  { %v1224_v31 = vpop.permute.xlu0 %1223 }
 0x555   :  { %v1398_v33 = vpop.permute.xlu0 %1397 }
 0x559   :  { %v1396_v38 = vpop.permute.xlu0 %1395 }
 0x55b   :  { %889 = vrot.lane.b32.xlu1 %v5697_v60, %s5469_s25 }
 0x55d   :  { %v1567_v42 = vpop.permute.xlu0 %1566 }
 0x55f   :  { %1568 = vrot.lane.b32.xlu1 %v5693_v59, %s5469_s25 }
 0x5d7   :  { %v631_v29 = vpop.xlane.xlu1 %630 }
 0x5d8   :  { %5390 = vrcp.f32 %v631_v29 }
 0x5db   :  { %v890_v32 = vpop.permute.xlu1 %889 }
 0x5dc   :  { %5019 = vmatmul.mubr.msk.f32.vlgmr.msra.gmra.mrb[4].mxu1 %vm381_vm3, %v890_v32 }
 0x5dd   :  { %5027 = vmatpush3.xpose.msk.msra.mxu1 %vm381_vm3, %v5693_v59  ;;  %5028 = vmatprep.mubr.msk.f32.mxu1 %vm5465_vm1, %v5464_v0 }
 0x5de   :  { %5036 = vmatprep.subr.mxu1 %v5464_v0 }
 0x5df   :  { %v1569_v39 = vpop.permute.xlu1 %1568 }
 0x5e0   :  { %5029 = vmatmul.mubr.msk.f32.vlgmr.msra.gmra.mrb[6].mxu1 %vm381_vm3, %v5689_v55 }
 0x5e1   :  { %5037 = vmatpush3.xpose.msk.msra.mxu1 %vm381_vm3, %v1226_v28  ;;  %5038 = vmatprep.mubr.msk.f32.mxu1 %vm5465_vm1, %v5464_v0 }
 0x5e2   :  { %v5391_v34 = vpop.eup %5390  ;;  %5046 = vmatprep.subr.mxu1 %v5464_v0 }
 0x5e3   :  { %v633_v37 = vmul.f32 %v5391_v34, %v5389_v25 }
 0x5e4   :  { %5039 = vmatmul.mubr.msk.f32.vlgmr.msra.gmra.mrb[8].mxu1 %vm381_vm3, %v1224_v31 }
 0x5e5   :  { %5047 = vmatpush3.xpose.msk.msra.mxu1 %vm381_vm3, %v1398_v33  ;;  %5004 = vmatmul.mubr.msk.f32.vlgmr.msra.gmra.mrb[14].mxu0 %vm70_vm2, %v633_v37 }
 0x5e6   :  { %5007 = vmatpush3.xpose.msk.msra.mxu0 %vm381_vm3, %v720_v23  ;;  %5048 = vmatprep.mubr.msk.f32.mxu1 %vm5465_vm1, %v5464_v0 }
 0x5e7   :  { %5056 = vmatprep.subr.mxu1 %v5464_v0  ;;  %5008 = vmatprep.mubr.msk.f32.mxu0 %vm5465_vm1, %v5464_v0 }
 0x5e8   :  { %5049 = vmatmul.mubr.msk.f32.vlgmr.msra.gmra.mrb[10].mxu1 %vm381_vm3, %v1396_v38  ;;  %5011 = vmatprep.subr.mxu0 %v5464_v0 }
 0x5e9   :  { %5057 = vmatpush3.xpose.msk.msra.mxu1 %vm381_vm3, %v1569_v39  ;;  %5009 = vmatmul.mubr.msk.f32.vlgmr.msra.gmra.mrb[16].mxu0 %vm381_vm3, %v718_v24 }
 0x5ea   :  { %5058 = vmatprep.mubr.msk.f32.mxu1 %vm5465_vm1, %v5464_v0  ;;  %5013 = vmatprep.mubr.msk.f32.mxu0 %vm5465_vm1, %v5464_v0 }
 0x5eb   :  { %5066 = vmatprep.subr.bf16.mxu1 %v5464_v0 }
 0x5ec   :  { %5059 = vmatmul.mubr.msk.f32.vlgmr.msra.gmra.mrb[12].mxu1 %vm381_vm3, %v1567_v42 }
 0x5ed   :  { %5082 = vmatprep.mubr.msk.bf16.mxu1 %vm5465_vm1, %v5464_v0 }
 0x6af   :  { %v963_v45 = vpop.f32.mrb[4].mxu1 }
 0x6b0   :  { %v967_v46 = vmul.f32 0.17677669, %v963_v45  ;;  %v5020_v47 = vpop.f32.mrb[5].mxu1 }
 0x6b2   :  { %v968_v48 = vsel %vm70_vm2, %v967_v46, -inf }
 0x6b3   :  { %969 = vmax.xlane.f32.xlu0 %v968_v48  ;;  %v1133_v49 = vpop.f32.mrb[6].mxu1 }
 0x6b4   :  { %v1137_v50 = vmul.f32 0.17677669, %v1133_v49  ;;  %v5030_v51 = vpop.f32.mrb[7].mxu1 }
 0x6b6   :  { %v1138_v52 = vsel %vm70_vm2, %v1137_v50, -inf }
 0x6b7   :  { %1139 = vmax.xlane.f32.xlu0 %v1138_v52  ;;  %v1297_v53 = vpop.f32.mrb[8].mxu1 }
 0x6b8   :  { %v1301_v54 = vmul.f32 0.17677669, %v1297_v53  ;;  %v5781_v55 = vpop.f32.mrb[14].mxu0  ;;  %v5040_v57 = vpop.f32.mrb[9].mxu1 }
 0x6b9   :  { %v5005_v58 = vpop.f32.mrb[15].mxu0 }
 0x6ba   :  { %v1302_v59 = vsel %vm70_vm2, %v1301_v54, -inf }
 0x6bb   :  { %1303 = vmax.xlane.f32.xlu0 %v1302_v59  ;;  %v1469_v60 = vpop.f32.mrb[10].mxu1 }
 0x6bc   :  { %v791_v62 = vpop.f32.mrb[16].mxu0  ;;  %v5050_v63 = vpop.f32.mrb[11].mxu1  ;;  %v1473_v3 = vmul.f32 0.17677669, %v1469_v60 }
 0x6bd   :  { %v795_v1 = vmul.f32 0.17677669, %v791_v62  ;;  %v5010_v2 = vpop.f32.mrb[17].mxu0 }
 0x6be   :  { %v1474_v9 = vsel %vm70_vm2, %v1473_v3, -inf }
 0x6bf   :  { %v1640_v4 = vpop.f32.mrb[12].mxu1  ;;  %v796_v5 = vsel %vm70_vm2, %v795_v1, -inf }
 0x6c0   :  { %v1644_v6 = vmul.f32 0.17677669, %v1640_v4  ;;  %v5060_v7 = vpop.f32.mrb[13].mxu1  ;;  %797 = vmax.xlane.f32.xlu1 %v796_v5 }
 0x6c2   :  { %v1645_v8 = vsel %vm70_vm2, %v1644_v6, -inf }
 0x6c3   :  { %1646 = vmax.xlane.f32.xlu0 %v1645_v8  ;;  %v5256_v8 = vld [vmem:[%s6442_s5] sm:$0xff]  }
 0x6c4   :  { %1475 = vmax.xlane.f32.xlu1 %v1474_v9  ;;  %5067 = vmatpush3.bf16.msra.mxu1 %v5256_v8  ;;  %v5257_v9 = vld [vmem:[%s6442_s5 + $0x8] sm:$0xff]  }
 0x6c5   :  { %5068 = vmatprep.subr.bf16.mxu1 %v5464_v0  ;;  %v5282_v8 = vld [vmem:[%s6444_s9 + $0x60] ss:$8 sps:$4 sm:$0xff]  }
 0x6c8   :  { %5069 = vmatpush3.bf16.msra.mxu1 %v5257_v9  ;;  %v5287_v9 = vld [vmem:[%s6444_s9 + $0x74] ss:$8 sps:$4 sm:$0xff]  }
 0x6c9   :  { %5070 = vmatprep.subr.bf16.mxu1 %v5464_v0 }
 0x740   :  { %v970_v10 = vpop.xlane.xlu0 %969 }
 0x741   :  { %v971_v11 = vsub.f32 %v967_v46, %v970_v10  ;;  %v5258_v10 = vld [vmem:[%s6442_s5 + $0x10] sm:$0xff]  }
 0x742   :  { %5071 = vmatpush3.bf16.msra.mxu1 %v5258_v10  ;;  %v5285_v10 = vld [vmem:[%s6444_s9 + $0x70] ss:$8 sps:$4 sm:$0xff]  }
 0x743   :  { %v972_v12 = vmul.f32 1.442695, %v971_v11  ;;  %v5259_v11 = vld [vmem:[%s6442_s5 + $0x18] sm:$0xff]   ;;  %5072 = vmatprep.subr.bf16.mxu1 %v5464_v0 }
 0x744   :  { %v1140_v13 = vpop.xlane.xlu0 %1139 }
 0x745   :  { %5392 = vpow2.f32 %v972_v12  ;;  %v1141_v14 = vsub.f32 %v1137_v50, %v1140_v13  ;;  %v5260_v13 = vld [vmem:[%s6442_s5 + $0x20] sm:$0xff]  }
 0x746   :  { %5073 = vmatpush3.bf16.msra.mxu1 %v5259_v11  ;;  %v5288_v11 = vld [vmem:[%s6445_s11 + $0x40] sm:$0xff]  }
 0x747   :  { %v1142_v15 = vmul.f32 1.442695, %v1141_v14  ;;  %5074 = vmatprep.subr.bf16.mxu1 %v5464_v0 }
 0x748   :  { %v1304_v16 = vpop.xlane.xlu0 %1303 }
 0x749   :  { %5394 = vpow2.f32 %v1142_v15  ;;  %v1305_v17 = vsub.f32 %v1301_v54, %v1304_v16  ;;  %v5261_v16 = vld [vmem:[%s6442_s5 + $0x28] sm:$0xff]  }
 0x74a   :  { %5075 = vmatpush3.bf16.msra.mxu1 %v5260_v13  ;;  %v5290_v13 = vld [vmem:[%s6445_s11 + $0x48] sm:$0xff]  }
 0x74b   :  { %v1306_v18 = vmul.f32 1.442695, %v1305_v17  ;;  %5076 = vmatprep.subr.bf16.mxu1 %v5464_v0 }
 0x74d   :  { %5396 = vpow2.f32 %v1306_v18  ;;  %v798_v19 = vpop.xlane.xlu1 %797 }
 0x74e   :  { %v799_v21 = vsub.f32 %v795_v1, %v798_v19  ;;  %5077 = vmatpush3.bf16.msra.mxu1 %v5261_v16  ;;  %v5262_v19 = vld [vmem:[%s6442_s5 + $0x30] sm:$0xff]  }
 0x74f   :  { %v5393_v20 = vpop.eup %5392  ;;  %5078 = vmatprep.subr.bf16.mxu1 %v5464_v0  ;;  %v5293_v16 = vld [vmem:[%s6445_s11 + $0x10] sm:$0xff]  }
 0x750   :  { %v1647_v22 = vpop.xlane.xlu0 %1646  ;;  %v974_v23 = vsel %vm70_vm2, %v5393_v20, 0.0  ;;  %v800_v29 = vmul.f32 1.442695, %v799_v21  ;;  %v5263_v21 = vld [vmem:[%s6442_s5 + $0x38] sm:$0xff]  }
 0x751   :  { %v1648_v24 = vsub.f32 %v1644_v6, %v1647_v22  ;;  %975 = vadd.xlane.f32.xlu0 %v974_v23  ;;  %v1476_v25 = vpop.xlane.xlu1 %1475 }
 0x752   :  { %v1477_v26 = vsub.f32 %v1473_v3, %v1476_v25  ;;  %5079 = vmatpush3.bf16.msra.mxu1 %v5262_v19  ;;  %v5296_v19 = vld [vmem:[%s6445_s11 + $0x60] sm:$0xff]  }
 0x753   :  { %v5395_v27 = vpop.eup %5394  ;;  %v1649_v28 = vmul.f32 1.442695, %v1648_v24  ;;  %5080 = vmatprep.subr.bf16.mxu1 %v5464_v0 }
 0x754   :  { %v1478_v31 = vmul.f32 1.442695, %v1477_v26  ;;  %v1144_v32 = vsel %vm70_vm2, %v5395_v27, 0.0 }
 0x755   :  { %5398 = vpow2.f32 %v1649_v28  ;;  %1145 = vadd.xlane.f32.xlu1 %v1144_v32 }
 0x756   :  { %5400 = vpow2.f32 %v1478_v31  ;;  %5081 = vmatpush3.bf16.msra.mxu1 %v5263_v21  ;;  %v5298_v21 = vld [vmem:[%s6445_s11 + $0x68] sm:$0xff]  }
 0x757   :  { %v5397_v33 = vpop.eup %5396  ;;  %5402 = vpow2.f32 %v800_v29  ;;  %4863 = vmatprep.subr.bf16.mxu1 %v5288_v11 }
 0x758   :  { %v1308_v34 = vsel %vm70_vm2, %v5397_v33, 0.0 }
 0x759   :  { %1309 = vadd.xlane.f32.xlu0 %v1308_v34 }
 0x75f   :  { %v5790_v37 = vpop.eup %5398 }
 0x760   :  { %v5401_v38 = vpop.eup %5400  ;;  %v1651_v39 = vsel %vm70_vm2, %v5790_v37, 0.0 }
 0x761   :  { %1652 = vadd.xlane.f32.xlu0 %v1651_v39  ;;  %v1480_v42 = vsel %vm70_vm2, %v5401_v38, 0.0  ;;  %v5403_v45 = vpop.eup %5402  ;;  %v4567_v39 = vld [vmem:[%s6443_s6] ss:$0 sm:$0xff] }
 0x762   :  { %1481 = vadd.xlane.f32.xlu1 %v1480_v42  ;;  %v802_v46 = vsel %vm70_vm2, %v5403_v45, 0.0 }
 0x766   :  { %803 = vadd.xlane.f32.xlu1 %v802_v46 }
 0x777   :  { %979 = vrot.lane.b32.xlu0 %v5700_v61, %s5469_s25  ;;  %807 = vrot.lane.b32.xlu1 %v5700_v61, %s5468_s24 }
 0x77b   :  { %712 = vrot.lane.b32.xlu0 %v5781_v55, %s5469_s25  ;;  %1314 = vrot.lane.b32.xlu1 %v5691_v56, %s5467_s23 }
 0x77f   :  { %1485 = vrot.lane.b32.xlu1 %v5691_v56, %s5468_s24 }
 0x783   :  { %1656 = vrot.lane.b32.xlu1 %v5691_v56, %s5469_s25 }
 0x7de   :  { %v976_v47 = vpop.xlane.xlu0 %975 }
 0x7e2   :  { %v1146_v49 = vpop.xlane.xlu1 %1145 }
 0x7e6   :  { %v1310_v48 = vpop.xlane.xlu0 %1309 }
 0x7ee   :  { %v1653_v50 = vpop.xlane.xlu0 %1652 }
 0x7ef   :  { %v1482_v51 = vpop.xlane.xlu1 %1481 }
 0x7f2   :  { %v980_v52 = vpop.permute.xlu0 %979 }
 0x7f3   :  { %v804_v53 = vpop.xlane.xlu1 %803 }
 0x7f4   :  { %5404 = vrcp.f32 %v804_v53  ;;  %v5266_v53 = vld [vmem:[%s6444_s9 + $0x4] ss:$8 sps:$4 sm:$0xff]  }
 0x7f5   :  { %5406 = vrcp.f32 %v976_v47 }
 0x7f6   :  { %v713_v61 = vpop.permute.xlu0 %712  ;;  %5408 = vrcp.f32 %v1146_v49 }
 0x7f7   :  { %716 = vst.msk [vmem:[#allocation2] sm:$0xff] %vm715_vm4, %v713_v61  ;;  %v808_v54 = vpop.permute.xlu1 %807  ;;  %5410 = vrcp.f32 %v1310_v48  ;;  %v5267_v61 = vld [vmem:[%s6444_s9 + $0x10] ss:$8 sps:$4 sm:$0xff]  }
 0x7f8   :  { %5012 = vmatpush3.msra.mxu0 %v808_v54  ;;  %5412 = vrcp.f32 %v1482_v51 }
 0x7f9   :  { %5021 = vmatprep.subr.mxu0 %v5464_v0  ;;  %5414 = vrcp.f32 %v1653_v50 }
 0x7fb   :  { %v1315_v62 = vpop.permute.xlu1 %1314 }
 0x7fe   :  { %v5405_v55 = vpop.eup %5404 }
 0x7ff   :  { %v806_v57 = vmul.f32 %v5405_v55, %v5403_v45  ;;  %v5407_v58 = vpop.eup %5406  ;;  %v1486_v3 = vpop.permute.xlu1 %1485 }
 0x800   :  { %v978_v59 = vmul.f32 %v5407_v58, %v5393_v20  ;;  %v5409_v60 = vpop.eup %5408 }
 0x801   :  { %5014 = vmatmul.mubr.msk.f32.vlgmr.msra.gmra.mrb[18].mxu0 %vm70_vm2, %v806_v57  ;;  %v1148_v63 = vmul.f32 %v5409_v60, %v5395_v27  ;;  %v5411_v1 = vpop.eup %5410 }
 0x802   :  { %5022 = vmatpush3.msra.mxu0 %v980_v52  ;;  %5023 = vmatprep.mubr.msk.f32.mxu0 %vm5465_vm1, %v5464_v0  ;;  %v1312_v2 = vmul.f32 %v5411_v1, %v5397_v33  ;;  %v5413_v4 = vpop.eup %5412  ;;  %v5264_v52 = vld [vmem:[%s6444_s9] ss:$8 sps:$4 sm:$0xff]  }
 0x803   :  { %5031 = vmatprep.subr.mxu0 %v5464_v0  ;;  %v5415_v5 = vpop.eup %5414  ;;  %v1657_v6 = vpop.permute.xlu1 %1656  ;;  %v5270_v1 = vld [vmem:[%s6444_s9 + $0x20] ss:$8 sps:$4 sm:$0xff]  }
 0x804   :  { %v1655_v7 = vmul.f32 %v5415_v5, %v5790_v37  ;;  %v5281_v5 = vld [vmem:[%s6444_s9 + $0x54] ss:$8 sps:$4 sm:$0xff]  }
 0x805   :  { %5024 = vmatmul.mubr.msk.f32.vlgmr.msra.gmra.mrb[20].mxu0 %vm70_vm2, %v978_v59 }
 0x806   :  { %5032 = vmatpush3.msra.mxu0 %v5691_v56  ;;  %5033 = vmatprep.mubr.msk.f32.mxu0 %vm5465_vm1, %v5464_v0  ;;  %v1484_v56 = vmul.f32 %v5413_v4, %v5401_v38  ;;  %v5278_v4 = vld [vmem:[%s6444_s9 + $0x44] ss:$8 sps:$4 sm:$0xff]  }
 0x807   :  { %5041 = vmatprep.subr.mxu0 %v5464_v0 }
 0x809   :  { %5034 = vmatmul.mubr.msk.f32.vlgmr.msra.gmra.mrb[22].mxu0 %vm70_vm2, %v1148_v63  ;;  %v5272_v63 = vld [vmem:[%s6444_s9 + $0x24] ss:$8 sps:$4 sm:$0xff]  }
 0x80a   :  { %5042 = vmatpush3.msra.mxu0 %v1315_v62  ;;  %5043 = vmatprep.mubr.msk.f32.mxu0 %vm5465_vm1, %v5464_v0 }
 0x80b   :  { %5051 = vmatprep.subr.mxu0 %v5464_v0 }
 0x80d   :  { %5044 = vmatmul.mubr.msk.f32.vlgmr.msra.gmra.mrb[24].mxu0 %vm70_vm2, %v1312_v2  ;;  %v5275_v2 = vld [vmem:[%s6444_s9 + $0x34] ss:$8 sps:$4 sm:$0xff]  }
 0x80e   :  { %5052 = vmatpush3.msra.mxu0 %v1486_v3  ;;  %5053 = vmatprep.mubr.msk.f32.mxu0 %vm5465_vm1, %v5464_v0  ;;  %v5273_v3 = vld [vmem:[%s6444_s9 + $0x30] ss:$8 sps:$4 sm:$0xff]  }
 0x80f   :  { %5061 = vmatprep.subr.mxu0 %v5464_v0 }
 0x811   :  { %5054 = vmatmul.mubr.msk.f32.vlgmr.msra.gmra.mrb[26].mxu0 %vm70_vm2, %v1484_v56  ;;  %v5276_v56 = vld [vmem:[%s6444_s9 + $0x40] ss:$8 sps:$4 sm:$0xff]  }
 0x812   :  { %5062 = vmatpush3.msra.mxu0 %v1657_v6  ;;  %5063 = vmatprep.mubr.msk.f32.mxu0 %vm5465_vm1, %v5464_v0  ;;  %v5279_v6 = vld [vmem:[%s6444_s9 + $0x50] ss:$8 sps:$4 sm:$0xff]  }
 0x813   :  { %2004 = vmatprep.subr.bf16.mxu0 %v5266_v53 }
 0x815   :  { %5064 = vmatmul.mubr.msk.f32.vlgmr.msra.gmra.mrb[28].mxu0 %vm70_vm2, %v1655_v7  ;;  %v5284_v7 = vld [vmem:[%s6444_s9 + $0x64] ss:$8 sps:$4 sm:$0xff]  }
 0x816   :  { %2036 = vmatprep.mubr.bf16.mxu0 %v5466_v30  ;;  %2005 = vmatpush1.bf16.msra.mxu0 %v5264_v52 }
 0x8d4   :  { %v879_v12 = vpop.f32.mrb[18].mxu0 }
 0x8d5   :  { %884 = vrot.lane.b32.xlu0 %v879_v12, %s5468_s24  ;;  %v5015_v14 = vpop.f32.mrb[19].mxu0  ;;  %v5289_v12 = vld [vmem:[%s6445_s11] sm:$0xff]  }
 0x8d6   :  { %v5291_v14 = vld [vmem:[%s6445_s11 + $0x8] sm:$0xff]  }
 0x8d8   :  { %v1051_v15 = vpop.f32.mrb[20].mxu0 }
 0x8d9   :  { %1056 = vrot.lane.b32.xlu0 %v1051_v15, %s5467_s23  ;;  %v5025_v17 = vpop.f32.mrb[21].mxu0  ;;  %v5292_v15 = vld [vmem:[%s6445_s11 + $0x50] sm:$0xff]  }
 0x8da   :  { %v5294_v17 = vld [vmem:[%s6445_s11 + $0x58] sm:$0xff]  }
 0x8dc   :  { %v1218_v18 = vpop.f32.mrb[22].mxu0 }
 0x8dd   :  { %1222 = vst.msk [vmem:[#allocation2 + $0x8] sm:$0xff] %vm381_vm3, %v1218_v18  ;;  %v5035_v20 = vpop.f32.mrb[23].mxu0  ;;  %v5295_v18 = vld [vmem:[%s6445_s11 + $0x18] sm:$0xff]  }
 0x8de   :  { %v5297_v20 = vld [vmem:[%s6445_s11 + $0x20] sm:$0xff]  }
 0x8e0   :  { %v1386_v22 = vpop.f32.mrb[24].mxu0 }
 0x8e1   :  { %1391 = vrot.lane.b32.xlu1 %v1386_v22, %s5469_s25  ;;  %v5045_v23 = vpop.f32.mrb[25].mxu0 }
 0x8e4   :  { %v1557_v24 = vpop.f32.mrb[26].mxu0 }
 0x8e5   :  { %1562 = vrot.lane.b32.xlu1 %v1557_v24, %s5468_s24  ;;  %v5055_v25 = vpop.f32.mrb[27].mxu0 }
 0x8e8   :  { %v1728_v26 = vpop.f32.mrb[28].mxu0 }
 0x8e9   :  { %1733 = vrot.lane.b32.xlu1 %v1728_v26, %s5467_s23  ;;  %v5065_v27 = vpop.f32.mrb[29].mxu0 }
 0x947   :  { %v885_v28 = vpop.permute.xlu0 %884 }
 0x948   :  { %888 = vst.msk [vmem:[#allocation2] sm:$0xff] %vm887_vm5, %v885_v28 }
 0x94b   :  { %v1057_v29 = vpop.permute.xlu0 %1056 }
 0x94c   :  { %1060 = vst.msk [vmem:[#allocation2] sm:$0xff] %vm1059_vm6, %v1057_v29 }
 0x953   :  { %v1392_v31 = vpop.permute.xlu1 %1391  ;;  %v1737_v34 = vld [vmem:[#allocation2] sm:$0xff] }
 0x954   :  { %1394 = vst.msk [vmem:[#allocation2 + $0x8] sm:$0xff] %vm715_vm4, %v1392_v31  ;;  %v4576_v31 = vld [vmem:[%s6446_s7] ss:$0 sm:$0xff] }
 0x957   :  { %v1563_v32 = vpop.permute.xlu1 %1562 }
 0x958   :  { %1565 = vst.msk [vmem:[#allocation2 + $0x8] sm:$0xff] %vm887_vm5, %v1563_v32 }
 0x95b   :  { %v1734_v33 = vpop.permute.xlu1 %1733 }
 0x95c   :  { %1736 = vst.msk [vmem:[#allocation2 + $0x8] sm:$0xff] %vm1059_vm6, %v1734_v33 }
 0x963   :  { %v1738_v37 = vld [vmem:[#allocation2 + $0x8] sm:$0xff] }
 0x964   :  { %v1739_v38 = vpack.c.bf16 %v1738_v37, %v1737_v34  ;;  %v4577_v37 = vld [vmem:[%s6447_s8] ss:$0 sm:$0xff] }
 0x966   :  { %5083 = vmatmul.mubr.bf16.vlgmr.msra.gmra.mrb[16].mxu1 %v1739_v38 }
 0x967   :  { %4864 = vmatpush3.bf16.msra.mxu1 %v5289_v12 }
 0x968   :  { %4865 = vmatprep.subr.bf16.mxu1 %v5290_v13 }
 0x96b   :  { %4866 = vmatpush3.bf16.msra.mxu1 %v5291_v14  ;;  %v5304_v14 = vld [vmem:[%s6439_s3 + $0xc0] ss:$12 sps:$4 sm:$0xff]  }
 0x96c   :  { %4867 = vmatprep.subr.bf16.mxu1 %v5292_v15  ;;  %v5306_v15 = vld [vmem:[%s6439_s3 + $0xc4] ss:$12 sps:$4 sm:$0xff]  }
 0x96f   :  { %4868 = vmatpush3.bf16.msra.mxu1 %v5293_v16  ;;  %v5307_v16 = vld [vmem:[%s6439_s3 + $0xc8] ss:$12 sps:$4 sm:$0xff]  }
 0x970   :  { %4869 = vmatprep.subr.bf16.mxu1 %v5294_v17  ;;  %v5310_v17 = vld [vmem:[%s6439_s3 + $0xdc] ss:$12 sps:$4 sm:$0xff]  }
 0x973   :  { %4870 = vmatpush3.bf16.msra.mxu1 %v5295_v18  ;;  %v5311_v18 = vld [vmem:[%s6439_s3 + $0xe0] ss:$12 sps:$4 sm:$0xff]  }
 0x974   :  { %4871 = vmatprep.subr.bf16.mxu1 %v5296_v19  ;;  %v5308_v19 = vld [vmem:[%s6439_s3 + $0xd8] ss:$12 sps:$4 sm:$0xff]  }
 0x977   :  { %4872 = vmatpush3.bf16.msra.mxu1 %v5297_v20 }
 0x978   :  { %4873 = vmatprep.subr.bf16.mxu1 %v5298_v21 }
 0xa39   :  { %v1845_v42 = vpop.f32.mrb[16].mxu1 }
 0xa3a   :  { %v1846_v45 = vadd.f32 %v4567_v39, %v1845_v42  ;;  %v5084_v46 = vpop.f32.mrb[17].mxu1 }
 0xa3b   :  { %v1848_v47 = vpop.f32.mrb[18].mxu1  ;;  %v5299_v46 = vld [vmem:[%s6445_s11 + $0x28] sm:$0xff]  }
 0xa3c   :  { %v1849_v48 = vadd.f32 %v4567_v39, %v1848_v47  ;;  %v5085_v49 = vpop.f32.mrb[19].mxu1  ;;  %v1852_v50 = vadd.f32 %v1846_v45, %v5663_v35  ;;  %v5269_v35 = vld [vmem:[%s6444_s9 + $0x14] ss:$8 sps:$4 sm:$0xff]   ;;  %4874 = vmatpush3.bf16.msra.mxu1 %v5299_v46  ;;  %v5327_v46 = vld [vmem:[%s6439_s3 + $0x140] ss:$12 sps:$4 sm:$0xff]  }
 0xa3d   :  { %2006 = vmatprep.subr.bf16.mxu0 %v5269_v35  ;;  %v5300_v47 = vld [vmem:[%s6445_s11 + $0x70] sm:$0xff]   ;;  %v5302_v49 = vld [vmem:[%s6445_s11 + $0x78] sm:$0xff]  }
 0xa3e   :  { %1856 = vadd.xlane.f32.xlu0 %v1852_v50  ;;  %v1853_v51 = vadd.f32 %v1849_v48, %v5665_v36  ;;  %2007 = vmatpush1.bf16.msra.mxu0 %v5267_v61  ;;  %v5301_v48 = vld [vmem:[%s6445_s11 + $0x30] sm:$0xff]  }
 0xa3f   :  { %2008 = vmatprep.subr.bf16.mxu0 %v5272_v63  ;;  %4875 = vmatprep.subr.bf16.mxu1 %v5300_v47  ;;  %v5330_v47 = vld [vmem:[%s6439_s3 + $0x154] ss:$12 sps:$4 sm:$0xff]  }
 0xa40   :  { %1858 = vadd.xlane.f32.xlu1 %v1853_v51  ;;  %4876 = vmatpush3.bf16.msra.mxu1 %v5301_v48  ;;  %v5328_v48 = vld [vmem:[%s6439_s3 + $0x150] ss:$12 sps:$4 sm:$0xff]  }
 0xa41   :  { %4877 = vmatprep.subr.bf16.mxu1 %v5302_v49  ;;  %v5331_v49 = vld [vmem:[%s6439_s3 + $0x158] ss:$12 sps:$4 sm:$0xff]  }
 0xa42   :  { %2009 = vmatpush1.bf16.msra.mxu0 %v5270_v1 }
 0xa43   :  { %2010 = vmatprep.subr.bf16.mxu0 %v5275_v2 }
 0xa46   :  { %2011 = vmatpush1.bf16.msra.mxu0 %v5273_v3 }
 0xa47   :  { %2012 = vmatprep.subr.bf16.mxu0 %v5278_v4 }
 0xa4a   :  { %2013 = vmatpush1.bf16.msra.mxu0 %v5276_v56  ;;  %v4594_v56 = vld [vmem:[%s6449_s12] ss:$0 sm:$0xff] }
 0xa4b   :  { %2014 = vmatprep.subr.bf16.mxu0 %v5281_v5 }
 0xa4e   :  { %2015 = vmatpush1.bf16.msra.mxu0 %v5279_v6 }
 0xa4f   :  { %2016 = vmatprep.subr.bf16.mxu0 %v5284_v7 }
 0xa52   :  { %2017 = vmatpush1.bf16.msra.mxu0 %v5282_v8 }
 0xa53   :  { %2018 = vmatprep.subr.bf16.mxu0 %v5287_v9 }
 0xa56   :  { %2019 = vmatpush1.bf16.msra.mxu0 %v5285_v10 }
 0xa57   :  { %2451 = vmatprep.subr.bf16.mxu0 %v5306_v15 }
 0xacb   :  { %v1857_v36 = vpop.xlane.xlu0 %1856 }
 0xacc   :  { %v1861_v54 = vmul.f32 0.0078125, %v1857_v36 }
 0xacd   :  { %v1859_v55 = vpop.xlane.xlu1 %1858 }
 0xace   :  { %v5892_v57 = vsub.f32 %v1852_v50, %v1861_v54  ;;  %v1862_v58 = vmul.f32 0.0078125, %v1859_v55  ;;  %v5303_v50 = vld [vmem:[%s6445_s11 + $0x38] sm:$0xff]  }
 0xacf   :  { %4878 = vmatpush3.bf16.msra.mxu1 %v5303_v50  ;;  %v5334_v50 = vld [vmem:[%s6439_s3 + $0x16c] ss:$12 sps:$4 sm:$0xff]  }
 0xad0   :  { %v5894_v59 = vsub.f32 %v1853_v51, %v1862_v58  ;;  %v1865_v60 = vmul.f32 %v5892_v57, %v5892_v57  ;;  %5086 = vmatprep.subr.bf16.mxu1 %v5464_v0  ;;  %v1912_v51 = vld [vmem:[%s6448_s10] sm:$0x3] }
 0xad1   :  { %v1917_v52 = vrot.slane %v1912_v51, %v5682_v43  ;;  %v1921_v53 = vrot.slane %v1912_v51, %v5676_v41  ;;  %v5332_v51 = vld [vmem:[%s6439_s3 + $0x168] ss:$12 sps:$4 sm:$0xff]  }
 0xad2   :  { %1867 = vadd.xlane.f32.xlu0 %v1865_v60  ;;  %v1866_v62 = vmul.f32 %v5894_v59, %v5894_v59 }
 0xad6   :  { %1869 = vadd.xlane.f32.xlu0 %v1866_v62 }
 0xb5f   :  { %v1868_v22 = vpop.xlane.xlu0 %1867 }
 0xb60   :  { %v1871_v23 = vmul.f32 0.0078125, %v1868_v22 }
 0xb62   :  { %v1873_v24 = vadd.f32 1e-05, %v1871_v23 }
 0xb63   :  { %v1870_v25 = vpop.xlane.xlu0 %1869 }
 0xb64   :  { %5416 = vrsqrt.f32 %v1873_v24  ;;  %v1872_v26 = vmul.f32 0.0078125, %v1870_v25 }
 0xb66   :  { %v1874_v27 = vadd.f32 1e-05, %v1872_v26 }
 0xb68   :  { %5418 = vrsqrt.f32 %v1874_v27 }
 0xb6e   :  { %v5417_v28 = vpop.eup %5416 }
 0xb6f   :  { %v1877_v29 = vmul.f32 %v5417_v28, %v5892_v57  ;;  %v5314_v28 = vld [vmem:[%s6439_s3 + $0xf4] ss:$12 sps:$4 sm:$0xff]  }
 0xb71   :  { %v1885_v34 = vmul.f32 %v4576_v31, %v1877_v29  ;;  %v5312_v29 = vld [vmem:[%s6439_s3 + $0xf0] ss:$12 sps:$4 sm:$0xff]  }
 0xb72   :  { %v5419_v32 = vpop.eup %5418 }
 0xb73   :  { %v1878_v33 = vmul.f32 %v5419_v32, %v5894_v59  ;;  %v1893_v39 = vadd.f32 %v4577_v37, %v1885_v34  ;;  %v5318_v32 = vld [vmem:[%s6439_s3 + $0x10c] ss:$12 sps:$4 sm:$0xff]   ;;  %v5319_v34 = vld [vmem:[%s6439_s3 + $0x110] ss:$12 sps:$4 sm:$0xff]  }
 0xb75   :  { %v1886_v38 = vmul.f32 %v4576_v31, %v1878_v33  ;;  %v5315_v31 = vld [vmem:[%s6439_s3 + $0xf8] ss:$12 sps:$4 sm:$0xff]   ;;  %v5316_v33 = vld [vmem:[%s6439_s3 + $0x108] ss:$12 sps:$4 sm:$0xff]  }
 0xb77   :  { %v1894_v42 = vadd.f32 %v4577_v37, %v1886_v38  ;;  %v5322_v37 = vld [vmem:[%s6439_s3 + $0x124] ss:$12 sps:$4 sm:$0xff]   ;;  %v5320_v38 = vld [vmem:[%s6439_s3 + $0x120] ss:$12 sps:$4 sm:$0xff]  }
 0xb79   :  { %v1911_v45 = vpack.c.bf16 %v1894_v42, %v1893_v39 }
 0xb7b   :  { %2037 = vmatmul.mubr.bf16.vlgmr.msra.gmra.mrb[32].mxu0 %v1911_v45  ;;  %v5324_v45 = vld [vmem:[%s6439_s3 + $0x138] ss:$12 sps:$4 sm:$0xff]  }
 0xb7c   :  { %2483 = vmatprep.mubr.bf16.mxu0 %v5466_v30  ;;  %2452 = vmatpush1.bf16.msra.mxu0 %v5304_v14 }
 0xb7d   :  { %2453 = vmatprep.subr.bf16.mxu0 %v5310_v17 }
 0xb80   :  { %2454 = vmatpush1.bf16.msra.mxu0 %v5308_v19 }
 0xb81   :  { %2455 = vmatprep.subr.bf16.mxu0 %v5314_v28 }
 0xb84   :  { %2456 = vmatpush1.bf16.msra.mxu0 %v5312_v29 }
 0xb85   :  { %2457 = vmatprep.subr.bf16.mxu0 %v5318_v32 }
 0xb88   :  { %2458 = vmatpush1.bf16.msra.mxu0 %v5316_v33 }
 0xb89   :  { %2459 = vmatprep.subr.bf16.mxu0 %v5322_v37 }
 0xb8c   :  { %2460 = vmatpush1.bf16.msra.mxu0 %v5320_v38 }
 0xc4e   :  { %v2038_v61 = vpop.f32.mrb[32].mxu0 }
 0xc4f   :  { %v2039_v35 = vadd.f32 %v2038_v61, %v1917_v52  ;;  %v2040_v36 = vpop.f32.mrb[33].mxu0 }
 0xc50   :  { %v2041_v54 = vadd.f32 %v2040_v36, %v1921_v53  ;;  %v2042_v55 = vpop.f32.mrb[34].mxu0 }
 0xc51   :  { %v2043_v57 = vadd.f32 %v2042_v55, %v1917_v52  ;;  %v2044_v58 = vpop.f32.mrb[35].mxu0  ;;  %v2047_v60 = vmax.f32 %v2039_v35, 0.0  ;;  %v5335_v52 = vld [vmem:[%s6439_s3 + $0x170] ss:$12 sps:$4 sm:$0xff]  }
 0xc52   :  { %v2045_v59 = vadd.f32 %v2044_v58, %v1921_v53  ;;  %v2048_v63 = vmax.f32 %v2041_v54, 0.0  ;;  %v4611_v58 = vld [vmem:[%s6450_s13] ss:$0 sm:$0xff] }
 0xc53   :  { %v2049_v62 = vmax.f32 %v2043_v57, 0.0 }
 0xc54   :  { %v2050_v1 = vmax.f32 %v2045_v59, 0.0 }
 0xc55   :  { %v2083_v2 = vpack.c.bf16 %v2049_v62, %v2047_v60 }
 0xc56   :  { %v2084_v3 = vpack.c.bf16 %v2050_v1, %v2048_v63  ;;  %v4612_v1 = vld [vmem:[%s6451_s14] ss:$0 sm:$0xff] }
 0xc58   :  { %2220 = vmatprep.mubr.bf16.mxu1 %v2084_v3 }
 0xc59   :  { %2221 = vmatmul.mubr.bf16.vlgmr.msra.gmra.mrb[20].mxu1 %v2083_v2 }
 0xc5a   :  { %5102 = vmatprep.mubr.msk.bf16.mxu1 %vm5465_vm1, %v5464_v0  ;;  %5087 = vmatpush3.bf16.msra.mxu1 %v5307_v16 }
 0xc5b   :  { %5088 = vmatprep.subr.bf16.mxu1 %v5464_v0 }
 0xc5e   :  { %5089 = vmatpush3.bf16.msra.mxu1 %v5311_v18 }
 0xc5f   :  { %5090 = vmatprep.subr.bf16.mxu1 %v5464_v0 }
 0xc62   :  { %5091 = vmatpush3.bf16.msra.mxu1 %v5315_v31 }
 0xc63   :  { %5092 = vmatprep.subr.bf16.mxu1 %v5464_v0 }
 0xc66   :  { %5093 = vmatpush3.bf16.msra.mxu1 %v5319_v34 }
 0xc67   :  { %5094 = vmatprep.subr.bf16.mxu1 %v5464_v0 }
 0xd2c   :  { %v4879_v4 = vpop.f32.mrb[20].mxu1 }
 0xd2d   :  { %v4880_v5 = vpop.f32.mrb[21].mxu1 }
 0xd2e   :  { %v4881_v6 = vadd.f32 %v4880_v5, %v4879_v4  ;;  %v4882_v7 = vpop.f32.mrb[22].mxu1  ;;  %v4645_v5 = vld [vmem:[%s6441_s4 + $0x3] sm:$0x7] }
 0xd2f   :  { %v4883_v8 = vpop.f32.mrb[23].mxu1 }
 0xd30   :  { %v2223_v9 = vadd.f32 %v4881_v6, %v4594_v56  ;;  %v4884_v10 = vadd.f32 %v4883_v8, %v4882_v7  ;;  %v2315_v6 = vrot.slane %v4645_v5, %v5676_v41 }
 0xd32   :  { %v2226_v11 = vadd.f32 %v4884_v10, %v4594_v56  ;;  %v2229_v12 = vadd.f32 %v2223_v9, %v1893_v39  ;;  %v5323_v39 = vld [vmem:[%s6439_s3 + $0x128] ss:$12 sps:$4 sm:$0xff]   ;;  %v2311_v9 = vrot.slane %v4645_v5, %v5682_v43  ;;  %v2319_v10 = vrot.slane %v4645_v5, %v164_v44 }
 0xd33   :  { %5095 = vmatpush3.bf16.msra.mxu1 %v5323_v39 }
 0xd34   :  { %2233 = vadd.xlane.f32.xlu0 %v2229_v12  ;;  %v2230_v13 = vadd.f32 %v2226_v11, %v1894_v42  ;;  %v5326_v42 = vld [vmem:[%s6439_s3 + $0x13c] ss:$12 sps:$4 sm:$0xff]   ;;  %5096 = vmatprep.subr.bf16.mxu1 %v5464_v0 }
 0xd35   :  { %2461 = vmatprep.subr.bf16.mxu0 %v5326_v42 }
 0xd36   :  { %2235 = vadd.xlane.f32.xlu1 %v2230_v13  ;;  %2462 = vmatpush1.bf16.msra.mxu0 %v5324_v45 }
 0xd37   :  { %5097 = vmatpush3.bf16.msra.mxu1 %v5327_v46  ;;  %2463 = vmatprep.subr.bf16.mxu0 %v5330_v47 }
 0xd38   :  { %5098 = vmatprep.subr.bf16.mxu1 %v5464_v0 }
 0xd3a   :  { %2464 = vmatpush1.bf16.msra.mxu0 %v5328_v48 }
 0xd3b   :  { %5099 = vmatpush3.bf16.msra.mxu1 %v5331_v49  ;;  %2465 = vmatprep.subr.bf16.mxu0 %v5334_v50 }
 0xd3c   :  { %5100 = vmatprep.subr.bf16.mxu1 %v5464_v0 }
 0xd3e   :  { %2466 = vmatpush1.bf16.msra.mxu0 %v5332_v51 }
 0xd3f   :  { %5101 = vmatpush3.bf16.msra.mxu1 %v5335_v52  ;;  %5106 = vmatprep.subr.mxu0 %v5464_v0 }
 0xd40   :  { %5146 = vmatprep.subr.mxu1 %v5464_v0 }
 0xdc1   :  { %v2234_v20 = vpop.xlane.xlu0 %2233 }
 0xdc2   :  { %v2237_v21 = vmul.f32 0.0078125, %v2234_v20 }
 0xdc3   :  { %v2236_v22 = vpop.xlane.xlu1 %2235 }
 0xdc4   :  { %v2239_v23 = vsub.f32 %v2229_v12, %v2237_v21  ;;  %v2238_v24 = vmul.f32 0.0078125, %v2236_v22 }
 0xdc6   :  { %v2240_v25 = vsub.f32 %v2230_v13, %v2238_v24  ;;  %v2241_v26 = vmul.f32 %v2239_v23, %v2239_v23 }
 0xdc8   :  { %2243 = vadd.xlane.f32.xlu0 %v2241_v26  ;;  %v2242_v27 = vmul.f32 %v2240_v25, %v2240_v25 }
 0xdca   :  { %2245 = vadd.xlane.f32.xlu1 %v2242_v27 }
 0xe55   :  { %v2244_v53 = vpop.xlane.xlu0 %2243 }
 0xe56   :  { %v2247_v61 = vmul.f32 0.0078125, %v2244_v53 }
 0xe57   :  { %v2246_v35 = vpop.xlane.xlu1 %2245 }
 0xe58   :  { %v2249_v36 = vadd.f32 1e-05, %v2247_v61  ;;  %v2248_v54 = vmul.f32 0.0078125, %v2246_v35 }
 0xe5a   :  { %5420 = vrsqrt.f32 %v2249_v36  ;;  %v2250_v55 = vadd.f32 1e-05, %v2248_v54 }
 0xe5c   :  { %5422 = vrsqrt.f32 %v2250_v55 }
 0xe64   :  { %v5421_v57 = vpop.eup %5420 }
 0xe65   :  { %v2253_v59 = vmul.f32 %v5421_v57, %v2239_v23 }
 0xe66   :  { %v5423_v60 = vpop.eup %5422 }
 0xe67   :  { %v2254_v62 = vmul.f32 %v5423_v60, %v2240_v25  ;;  %v2261_v63 = vmul.f32 %v4611_v58, %v2253_v59 }
 0xe69   :  { %v2262_v2 = vmul.f32 %v4611_v58, %v2254_v62  ;;  %v6091_v3 = vadd.f32 %v4612_v1, %v2261_v63 }
 0xe6b   :  { %v6093_v4 = vadd.f32 %v4612_v1, %v2262_v2 }
 0xe6d   :  { %v2304_v56 = vpack.c.bf16 %v6093_v4, %v6091_v3 }
 0xe6f   :  { %2484 = vmatmul.mubr.bf16.vlgmr.msra.gmra.mrb[36].mxu0 %v2304_v56  ;;  %5103 = vmatmul.mubr.bf16.vlgmr.msra.gmra.mrb[24].mxu1 %v2304_v56 }
 0xe70   :  { %5108 = vmatprep.mubr.msk.f32.mxu0 %vm5465_vm1, %v5464_v0  ;;  %5148 = vmatprep.mubr.msk.f32.mxu1 %vm5465_vm1, %v5464_v0 }
 0xf42   :  { %v2485_v7 = vpop.f32.mrb[36].mxu0  ;;  %v2528_v8 = vpop.f32.mrb[24].mxu1 }
 0xf43   :  { %v2487_v11 = vpop.f32.mrb[37].mxu0  ;;  %v5104_v12 = vpop.f32.mrb[25].mxu1  ;;  %v6116_v20 = vadd.f32 %v2485_v7, %v2311_v9  ;;  %v6119_v40 = vadd.f32 %v2528_v8, %v2319_v10 }
 0xf44   :  { %v6108_v13 = vadd.f32 %v2487_v11, %v2315_v6  ;;  %v2489_v14 = vpop.f32.mrb[38].mxu0  ;;  %v2531_v15 = vpop.f32.mrb[26].mxu1 }
 0xf45   :  { %v6110_v16 = vadd.f32 %v2531_v15, %v2319_v10  ;;  %v2491_v17 = vpop.f32.mrb[39].mxu0  ;;  %v5105_v18 = vpop.f32.mrb[27].mxu1  ;;  %v6123_v44 = vadd.f32 %v2489_v14, %v2311_v9 }
 0xf46   :  { %v6112_v19 = vadd.f32 %v2491_v17, %v2315_v6  ;;  %5107 = vmatpush3.xpose.msk.msra.mxu0 %vm381_vm3, %v6108_v13 }
 0xf47   :  { %5111 = vmatprep.subr.mxu0 %v5464_v0 }
 0xf48   :  { %5147 = vmatpush3.xpose.msk.msra.mxu1 %vm381_vm3, %v6112_v19 }
 0xf49   :  { %5109 = vmatmul.mubr.msk.f32.vlgmr.msra.gmra.mrb[30].mxu0 %vm381_vm3, %v6116_v20  ;;  %5156 = vmatprep.subr.mxu1 %v5464_v0 }
 0xf4a   :  { %5112 = vmatpush3.msra.mxu0 %v6119_v40  ;;  %5113 = vmatprep.mubr.msk.f32.mxu0 %vm5465_vm1, %v5464_v0 }
 0xf4b   :  { %5149 = vmatmul.mubr.msk.f32.vlgmr.msra.gmra.mrb[14].mxu1 %vm381_vm3, %v6123_v44  ;;  %5116 = vmatprep.subr.mxu0 %v5464_v0 }
 0xf4c   :  { %5158 = vmatprep.mubr.msk.f32.mxu1 %vm5465_vm1, %v5464_v0 }
0x101c   :  { %v2607_v21 = vpop.f32.mrb[30].mxu0 }
0x101d   :  { %v2611_v22 = vmul.f32 0.17677669, %v2607_v21  ;;  %v5110_v23 = vpop.f32.mrb[31].mxu0 }
0x101e   :  { %v6136_v24 = vpop.f32.mrb[14].mxu1 }
0x101f   :  { %v5150_v25 = vpop.f32.mrb[15].mxu1  ;;  %v2612_v26 = vsel %vm70_vm2, %v2611_v22, -inf  ;;  %v3287_v56 = vmul.f32 0.17677669, %v6136_v24 }
0x1020   :  { %2613 = vmax.xlane.f32.xlu0 %v2612_v26 }
0x1021   :  { %v3288_v5 = vsel %vm70_vm2, %v3287_v56, -inf }
0x1036   :  { %2699 = vrot.lane.b32.xlu0 %v6108_v13, %s5467_s23 }
0x10ad   :  { %v2614_v27 = vpop.xlane.xlu0 %2613 }
0x10ae   :  { %v2615_v28 = vsub.f32 %v2611_v22, %v2614_v27 }
0x10b0   :  { %v2616_v29 = vmul.f32 1.442695, %v2615_v28 }
0x10b1   :  { %v2700_v38 = vpop.permute.xlu0 %2699 }
0x10b2   :  { %5424 = vpow2.f32 %v2616_v29 }
0x10bc   :  { %v5425_v31 = vpop.eup %5424 }
0x10bd   :  { %v2618_v32 = vsel %vm70_vm2, %v5425_v31, 0.0 }
0x10be   :  { %2619 = vadd.xlane.f32.xlu1 %v2618_v32 }
0x10cf   :  { %2697 = vrot.lane.b32.xlu1 %v6116_v20, %s5467_s23 }
0x114b   :  { %v2620_v33 = vpop.xlane.xlu1 %2619 }
0x114c   :  { %5426 = vrcp.f32 %v2620_v33 }
0x114f   :  { %v2698_v39 = vpop.permute.xlu1 %2697 }
0x1156   :  { %v5427_v34 = vpop.eup %5426 }
0x1157   :  { %v2622_v37 = vmul.f32 %v5427_v34, %v5425_v31 }
0x1159   :  { %5114 = vmatmul.mubr.msk.f32.vlgmr.msra.gmra.mrb[40].mxu0 %vm70_vm2, %v2622_v37 }
0x115a   :  { %5117 = vmatpush3.xpose.msk.msra.mxu0 %vm381_vm3, %v2700_v38  ;;  %5118 = vmatprep.mubr.msk.f32.mxu0 %vm5465_vm1, %v5464_v0 }
0x115b   :  { %5121 = vmatprep.subr.mxu0 %v5464_v0 }
0x115d   :  { %5119 = vmatmul.mubr.msk.f32.vlgmr.msra.gmra.mrb[42].mxu0 %vm381_vm3, %v2698_v39 }
0x115e   :  { %5123 = vmatprep.mubr.msk.f32.mxu0 %vm5465_vm1, %v5464_v0 }
0x122c   :  { %v2692_v42 = vpop.f32.mrb[40].mxu0 }
0x122d   :  { %2696 = vst.msk [vmem:[#allocation2] sm:$0xff] %vm381_vm3, %v2692_v42  ;;  %v5115_v45 = vpop.f32.mrb[41].mxu0 }
0x1230   :  { %v2771_v46 = vpop.f32.mrb[42].mxu0 }
0x1231   :  { %v2775_v47 = vmul.f32 0.17677669, %v2771_v46  ;;  %v5120_v48 = vpop.f32.mrb[43].mxu0 }
0x1233   :  { %v2776_v49 = vsel %vm70_vm2, %v2775_v47, -inf }
0x1234   :  { %2777 = vmax.xlane.f32.xlu1 %v2776_v49 }
0x1245   :  { %2871 = vrot.lane.b32.xlu1 %v6108_v13, %s5468_s24 }
0x1249   :  { %2869 = vrot.lane.b32.xlu1 %v6116_v20, %s5468_s24 }
0x12c1   :  { %v2778_v50 = vpop.xlane.xlu1 %2777 }
0x12c2   :  { %v2779_v51 = vsub.f32 %v2775_v47, %v2778_v50 }
0x12c4   :  { %v2780_v52 = vmul.f32 1.442695, %v2779_v51 }
0x12c5   :  { %v2872_v55 = vpop.permute.xlu1 %2871 }
0x12c6   :  { %5428 = vpow2.f32 %v2780_v52 }
0x12c9   :  { %v2870_v58 = vpop.permute.xlu1 %2869 }
0x12d0   :  { %v5429_v53 = vpop.eup %5428 }
0x12d1   :  { %v2782_v61 = vsel %vm70_vm2, %v5429_v53, 0.0 }
0x12d2   :  { %2783 = vadd.xlane.f32.xlu0 %v2782_v61 }
0x12e8   :  { %2788 = vrot.lane.b32.xlu0 %v6119_v40, %s5467_s23 }
0x135f   :  { %v2784_v35 = vpop.xlane.xlu0 %2783 }
0x1360   :  { %5430 = vrcp.f32 %v2784_v35 }
0x1363   :  { %v2789_v36 = vpop.permute.xlu0 %2788 }
0x1364   :  { %5122 = vmatpush3.msra.mxu0 %v2789_v36 }
0x1365   :  { %5126 = vmatprep.subr.mxu0 %v5464_v0 }
0x136a   :  { %v5431_v54 = vpop.eup %5430 }
0x136b   :  { %v2786_v57 = vmul.f32 %v5431_v54, %v5429_v53 }
0x136d   :  { %5124 = vmatmul.mubr.msk.f32.vlgmr.msra.gmra.mrb[44].mxu0 %vm70_vm2, %v2786_v57 }
0x136e   :  { %5127 = vmatpush3.xpose.msk.msra.mxu0 %vm381_vm3, %v2872_v55  ;;  %5128 = vmatprep.mubr.msk.f32.mxu0 %vm5465_vm1, %v5464_v0 }
0x136f   :  { %5131 = vmatprep.subr.mxu0 %v5464_v0 }
0x1371   :  { %5129 = vmatmul.mubr.msk.f32.vlgmr.msra.gmra.mrb[46].mxu0 %vm381_vm3, %v2870_v58 }
0x1372   :  { %5133 = vmatprep.mubr.msk.f32.mxu0 %vm5465_vm1, %v5464_v0 }
0x1440   :  { %v6170_v59 = vpop.f32.mrb[44].mxu0 }
0x1441   :  { %v5125_v60 = vpop.f32.mrb[45].mxu0 }
0x1444   :  { %v2943_v62 = vpop.f32.mrb[46].mxu0 }
0x1445   :  { %v2947_v63 = vmul.f32 0.17677669, %v2943_v62  ;;  %v5130_v1 = vpop.f32.mrb[47].mxu0 }
0x1447   :  { %v2948_v2 = vsel %vm70_vm2, %v2947_v63, -inf }
0x1448   :  { %2949 = vmax.xlane.f32.xlu1 %v2948_v2 }
0x1459   :  { %3042 = vrot.lane.b32.xlu1 %v6108_v13, %s5469_s25 }
0x145d   :  { %3040 = vrot.lane.b32.xlu1 %v6116_v20, %s5469_s25 }
0x1461   :  { %3373 = vrot.lane.b32.xlu1 %v6123_v44, %s5467_s23 }
0x1465   :  { %3545 = vrot.lane.b32.xlu1 %v6123_v44, %s5468_s24 }
0x1469   :  { %3716 = vrot.lane.b32.xlu1 %v6123_v44, %s5469_s25 }
0x148d   :  { %3289 = vmax.xlane.f32.xlu1 %v3288_v5 }
0x14d5   :  { %v2950_v6 = vpop.xlane.xlu1 %2949 }
0x14d6   :  { %v2951_v7 = vsub.f32 %v2947_v63, %v2950_v6 }
0x14d8   :  { %v2952_v8 = vmul.f32 1.442695, %v2951_v7 }
0x14d9   :  { %v3043_v11 = vpop.permute.xlu1 %3042 }
0x14da   :  { %5432 = vpow2.f32 %v2952_v8 }
0x14dd   :  { %v3041_v13 = vpop.permute.xlu1 %3040 }
0x14e1   :  { %v3374_v15 = vpop.permute.xlu1 %3373 }
0x14e4   :  { %v5433_v9 = vpop.eup %5432 }
0x14e5   :  { %v2954_v10 = vsel %vm70_vm2, %v5433_v9, 0.0 }
0x14e6   :  { %2955 = vadd.xlane.f32.xlu0 %v2954_v10 }
0x14fc   :  { %2959 = vrot.lane.b32.xlu0 %v6119_v40, %s5468_s24 }
0x1500   :  { %3375 = vrot.lane.b32.xlu0 %v6112_v19, %s5467_s23 }
0x1504   :  { %3547 = vrot.lane.b32.xlu0 %v6112_v19, %s5468_s24 }
0x1508   :  { %3718 = vrot.lane.b32.xlu0 %v6112_v19, %s5469_s25  ;;  %v3546_v19 = vpop.permute.xlu1 %3545 }
0x150c   :  { %v3717_v22 = vpop.permute.xlu1 %3716 }
0x151a   :  { %v3290_v24 = vpop.xlane.xlu1 %3289 }
0x151b   :  { %v3291_v28 = vsub.f32 %v3287_v56, %v3290_v24 }
0x151d   :  { %v3292_v37 = vmul.f32 1.442695, %v3291_v28 }
0x1573   :  { %v2956_v12 = vpop.xlane.xlu0 %2955 }
0x1574   :  { %5434 = vrcp.f32 %v2956_v12 }
0x1575   :  { %5436 = vpow2.f32 %v3292_v37  ;;  %v5341_v37 = vld [vmem:[%s6442_s5 + $0x68] sm:$0xff]  }
0x1577   :  { %v2960_v14 = vpop.permute.xlu0 %2959 }
0x1578   :  { %5132 = vmatpush3.msra.mxu0 %v2960_v14 }
0x1579   :  { %5136 = vmatprep.subr.mxu0 %v5464_v0 }
0x157b   :  { %v3376_v17 = vpop.permute.xlu0 %3375 }
0x157c   :  { %5157 = vmatpush3.xpose.msk.msra.mxu1 %vm381_vm3, %v3376_v17 }
0x157d   :  { %5166 = vmatprep.subr.mxu1 %v5464_v0 }
0x157e   :  { %v5435_v18 = vpop.eup %5434 }
0x157f   :  { %v2958_v20 = vmul.f32 %v5435_v18, %v5433_v9  ;;  %v3548_v44 = vpop.permute.xlu0 %3547  ;;  %5159 = vmatmul.mubr.msk.f32.vlgmr.msra.gmra.mrb[28].mxu1 %vm381_vm3, %v3374_v15  ;;  %v5437_v51 = vpop.eup %5436 }
0x1580   :  { %5167 = vmatpush3.xpose.msk.msra.mxu1 %vm381_vm3, %v3548_v44  ;;  %5168 = vmatprep.mubr.msk.f32.mxu1 %vm5465_vm1, %v5464_v0  ;;  %v3294_v52 = vsel %vm70_vm2, %v5437_v51, 0.0 }
0x1581   :  { %5134 = vmatmul.mubr.msk.f32.vlgmr.msra.gmra.mrb[48].mxu0 %vm70_vm2, %v2958_v20  ;;  %5176 = vmatprep.subr.mxu1 %v5464_v0 }
0x1582   :  { %5137 = vmatpush3.xpose.msk.msra.mxu0 %vm381_vm3, %v3043_v11  ;;  %5138 = vmatprep.mubr.msk.f32.mxu0 %vm5465_vm1, %v5464_v0 }
0x1583   :  { %v3719_v21 = vpop.permute.xlu0 %3718  ;;  %5169 = vmatmul.mubr.msk.f32.vlgmr.msra.gmra.mrb[30].mxu1 %vm381_vm3, %v3546_v19  ;;  %5141 = vmatprep.subr.mxu0 %v5464_v0 }
0x1584   :  { %5177 = vmatpush3.xpose.msk.msra.mxu1 %vm381_vm3, %v3719_v21  ;;  %5178 = vmatprep.mubr.msk.f32.mxu1 %vm5465_vm1, %v5464_v0 }
0x1585   :  { %5139 = vmatmul.mubr.msk.f32.vlgmr.msra.gmra.mrb[50].mxu0 %vm381_vm3, %v3041_v13  ;;  %5186 = vmatprep.subr.bf16.mxu1 %v5464_v0 }
0x1586   :  { %5143 = vmatprep.mubr.msk.f32.mxu0 %vm5465_vm1, %v5464_v0 }
0x1587   :  { %5179 = vmatmul.mubr.msk.f32.vlgmr.msra.gmra.mrb[32].mxu1 %vm381_vm3, %v3717_v22 }
0x1588   :  { %5202 = vmatprep.mubr.msk.bf16.mxu1 %vm5465_vm1, %v5464_v0 }
0x1652   :  { %v3447_v23 = vpop.f32.mrb[28].mxu1 }
0x1653   :  { %v5160_v25 = vpop.f32.mrb[29].mxu1  ;;  %v3451_v39 = vmul.f32 0.17677669, %v3447_v23 }
0x1654   :  { %v3031_v26 = vpop.f32.mrb[48].mxu0 }
0x1655   :  { %v5135_v27 = vpop.f32.mrb[49].mxu0  ;;  %v3452_v47 = vsel %vm70_vm2, %v3451_v39, -inf }
0x1656   :  { %v3619_v29 = vpop.f32.mrb[30].mxu1 }
0x1657   :  { %v5170_v31 = vpop.f32.mrb[31].mxu1  ;;  %v3623_v46 = vmul.f32 0.17677669, %v3619_v29  ;;  %v5336_v29 = vld [vmem:[%s6442_s5 + $0x40] sm:$0xff]  }
0x1658   :  { %v3114_v32 = vpop.f32.mrb[50].mxu0  ;;  %5187 = vmatpush3.bf16.msra.mxu1 %v5336_v29  ;;  %v5337_v31 = vld [vmem:[%s6442_s5 + $0x48] sm:$0xff]  }
0x1659   :  { %v3118_v33 = vmul.f32 0.17677669, %v3114_v32  ;;  %v5140_v34 = vpop.f32.mrb[51].mxu0  ;;  %v3624_v49 = vsel %vm70_vm2, %v3623_v46, -inf  ;;  %5188 = vmatprep.subr.bf16.mxu1 %v5464_v0  ;;  %v5338_v32 = vld [vmem:[%s6442_s5 + $0x50] sm:$0xff]   ;;  %v5371_v29 = vld [vmem:[%s6445_s11 + $0x88] sm:$0xff]  }
0x165a   :  { %v3790_v38 = vpop.f32.mrb[32].mxu1 }
0x165b   :  { %v5180_v42 = vpop.f32.mrb[33].mxu1  ;;  %v3119_v45 = vsel %vm70_vm2, %v3118_v33, -inf  ;;  %v3794_v48 = vmul.f32 0.17677669, %v3790_v38 }
0x165c   :  { %3120 = vmax.xlane.f32.xlu0 %v3119_v45  ;;  %5189 = vmatpush3.bf16.msra.mxu1 %v5337_v31  ;;  %v5342_v42 = vld [vmem:[%s6442_s5 + $0x70] sm:$0xff]  }
0x165d   :  { %v3795_v50 = vsel %vm70_vm2, %v3794_v48, -inf  ;;  %5190 = vmatprep.subr.bf16.mxu1 %v5464_v0  ;;  %v5372_v31 = vld [vmem:[%s6445_s11 + $0xd0] sm:$0xff]  }
0x1660   :  { %3453 = vmax.xlane.f32.xlu0 %v3452_v47  ;;  %5191 = vmatpush3.bf16.msra.mxu1 %v5338_v32  ;;  %v5373_v32 = vld [vmem:[%s6445_s11 + $0x90] sm:$0xff]  }
0x1661   :  { %5192 = vmatprep.subr.bf16.mxu1 %v5464_v0 }
0x1664   :  { %3625 = vmax.xlane.f32.xlu0 %v3624_v49 }
0x1668   :  { %3796 = vmax.xlane.f32.xlu0 %v3795_v50 }
0x166c   :  { %3295 = vadd.xlane.f32.xlu0 %v3294_v52 }
0x16e9   :  { %v3121_v53 = vpop.xlane.xlu0 %3120 }
0x16ea   :  { %v3122_v57 = vsub.f32 %v3118_v33, %v3121_v53  ;;  %v5340_v33 = vld [vmem:[%s6442_s5 + $0x60] sm:$0xff]  }
0x16ec   :  { %v3123_v63 = vmul.f32 1.442695, %v3122_v57 }
0x16ed   :  { %v3454_v61 = vpop.xlane.xlu0 %3453 }
0x16ee   :  { %v3455_v35 = vsub.f32 %v3451_v39, %v3454_v61 }
0x16f0   :  { %v3456_v36 = vmul.f32 1.442695, %v3455_v35 }
0x16f1   :  { %v3626_v54 = vpop.xlane.xlu0 %3625 }
0x16f2   :  { %5438 = vpow2.f32 %v3456_v36  ;;  %v3627_v55 = vsub.f32 %v3623_v46, %v3626_v54  ;;  %v5343_v46 = vld [vmem:[%s6442_s5 + $0x78] sm:$0xff]  }
0x16f4   :  { %v3628_v58 = vmul.f32 1.442695, %v3627_v55 }
0x16f5   :  { %v3797_v60 = vpop.xlane.xlu0 %3796 }
0x16f6   :  { %5440 = vpow2.f32 %v3628_v58  ;;  %v3798_v62 = vsub.f32 %v3794_v48, %v3797_v60  ;;  %v4711_v58 = vld [vmem:[%s6443_s6 + $0x1] ss:$0 sm:$0xff] }
0x16f8   :  { %v3799_v1 = vmul.f32 1.442695, %v3798_v62 }
0x16f9   :  { %v3296_v11 = vpop.xlane.xlu0 %3295 }
0x16fa   :  { %5442 = vpow2.f32 %v3799_v1 }
0x16fb   :  { %5444 = vpow2.f32 %v3123_v63 }
0x16fc   :  { %v5439_v2 = vpop.eup %5438 }
0x16fd   :  { %v3458_v56 = vsel %vm70_vm2, %v5439_v2, 0.0 }
0x16fe   :  { %3459 = vadd.xlane.f32.xlu1 %v3458_v56 }
0x1700   :  { %v5441_v5 = vpop.eup %5440 }
0x1701   :  { %v3630_v6 = vsel %vm70_vm2, %v5441_v5, 0.0 }
0x1702   :  { %3631 = vadd.xlane.f32.xlu0 %v3630_v6 }
0x1704   :  { %v5443_v7 = vpop.eup %5442 }
0x1705   :  { %v3801_v8 = vsel %vm70_vm2, %v5443_v7, 0.0  ;;  %v5445_v9 = vpop.eup %5444 }
0x1706   :  { %3802 = vadd.xlane.f32.xlu1 %v3801_v8  ;;  %v3125_v10 = vsel %vm70_vm2, %v5445_v9, 0.0  ;;  %v5346_v8 = vld [vmem:[%s6444_s9 + $0x84] ss:$8 sps:$4 sm:$0xff]  }
0x170a   :  { %3126 = vadd.xlane.f32.xlu1 %v3125_v10 }
0x1718   :  { %3130 = vrot.lane.b32.xlu0 %v6119_v40, %s5469_s25 }
0x171b   :  { %3464 = vrot.lane.b32.xlu1 %v6110_v16, %s5467_s23 }
0x171c   :  { %2865 = vrot.lane.b32.xlu0 %v6170_v59, %s5469_s25 }
0x171f   :  { %3635 = vrot.lane.b32.xlu1 %v6110_v16, %s5468_s24 }
0x1720   :  { %3036 = vrot.lane.b32.xlu0 %v3031_v26, %s5468_s24 }
0x1723   :  { %3806 = vrot.lane.b32.xlu1 %v6110_v16, %s5469_s25 }
0x178b   :  { %v3460_v12 = vpop.xlane.xlu1 %3459 }
0x178f   :  { %v3632_v13 = vpop.xlane.xlu0 %3631 }
0x1793   :  { %v3803_v14 = vpop.xlane.xlu1 %3802  ;;  %v3131_v15 = vpop.permute.xlu0 %3130 }
0x1794   :  { %5142 = vmatpush3.msra.mxu0 %v3131_v15 }
0x1795   :  { %5151 = vmatprep.subr.mxu0 %v5464_v0 }
0x1797   :  { %v3127_v40 = vpop.xlane.xlu1 %3126  ;;  %v2866_v17 = vpop.permute.xlu0 %2865 }
0x1798   :  { %5446 = vrcp.f32 %v3127_v40  ;;  %2868 = vst.msk [vmem:[#allocation2] sm:$0xff] %vm715_vm4, %v2866_v17  ;;  %v5352_v17 = vld [vmem:[%s6444_s9 + $0xa4] ss:$8 sps:$4 sm:$0xff]  }
0x1799   :  { %5448 = vrcp.f32 %v3296_v11 }
0x179a   :  { %5450 = vrcp.f32 %v3460_v12 }
0x179b   :  { %v3037_v59 = vpop.permute.xlu0 %3036  ;;  %5452 = vrcp.f32 %v3632_v13  ;;  %v3465_v19 = vpop.permute.xlu1 %3464 }
0x179c   :  { %3039 = vst.msk [vmem:[#allocation2] sm:$0xff] %vm887_vm5, %v3037_v59  ;;  %5454 = vrcp.f32 %v3803_v14  ;;  %v5350_v59 = vld [vmem:[%s6444_s9 + $0xa0] ss:$8 sps:$4 sm:$0xff]  }
0x179f   :  { %v3636_v24 = vpop.permute.xlu1 %3635 }
0x17a2   :  { %v5447_v18 = vpop.eup %5446 }
0x17a3   :  { %v3129_v20 = vmul.f32 %v5447_v18, %v5445_v9  ;;  %v5449_v44 = vpop.eup %5448  ;;  %v3807_v27 = vpop.permute.xlu1 %3806  ;;  %v5349_v9 = vld [vmem:[%s6444_s9 + $0x94] ss:$8 sps:$4 sm:$0xff]  }
0x17a4   :  { %v3298_v21 = vmul.f32 %v5449_v44, %v5437_v51  ;;  %v5451_v22 = vpop.eup %5450  ;;  %v5355_v18 = vld [vmem:[%s6444_s9 + $0xb4] ss:$8 sps:$4 sm:$0xff]   ;;  %v5358_v44 = vld [vmem:[%s6444_s9 + $0xc4] ss:$8 sps:$4 sm:$0xff]  }
0x17a5   :  { %5144 = vmatmul.mubr.msk.f32.vlgmr.msra.gmra.mrb[52].mxu0 %vm70_vm2, %v3129_v20  ;;  %v3462_v23 = vmul.f32 %v5451_v22, %v5439_v2  ;;  %v5453_v25 = vpop.eup %5452  ;;  %v5353_v20 = vld [vmem:[%s6444_s9 + $0xb0] ss:$8 sps:$4 sm:$0xff]  }
0x17a6   :  { %5152 = vmatpush3.msra.mxu0 %v6110_v16  ;;  %5153 = vmatprep.mubr.msk.f32.mxu0 %vm5465_vm1, %v5464_v0  ;;  %v3634_v16 = vmul.f32 %v5453_v25, %v5441_v5  ;;  %v5455_v26 = vpop.eup %5454  ;;  %v5359_v22 = vld [vmem:[%s6444_s9 + $0xd0] ss:$8 sps:$4 sm:$0xff]   ;;  %v5367_v25 = vld [vmem:[%s6444_s9 + $0xf4] ss:$8 sps:$4 sm:$0xff]  }
0x17a7   :  { %5161 = vmatprep.subr.mxu0 %v5464_v0  ;;  %v3805_v28 = vmul.f32 %v5455_v26, %v5443_v7  ;;  %v5344_v7 = vld [vmem:[%s6444_s9 + $0x80] ss:$8 sps:$4 sm:$0xff]  }
0x17a8   :  { %v5368_v26 = vld [vmem:[%s6445_s11 + $0xc0] sm:$0xff]  }
0x17a9   :  { %5154 = vmatmul.mubr.msk.f32.vlgmr.msra.gmra.mrb[54].mxu0 %vm70_vm2, %v3298_v21  ;;  %v5361_v21 = vld [vmem:[%s6444_s9 + $0xd4] ss:$8 sps:$4 sm:$0xff]  }
0x17aa   :  { %5162 = vmatpush3.msra.mxu0 %v3465_v19  ;;  %5163 = vmatprep.mubr.msk.f32.mxu0 %vm5465_vm1, %v5464_v0  ;;  %v5356_v19 = vld [vmem:[%s6444_s9 + $0xc0] ss:$8 sps:$4 sm:$0xff]  }
0x17ab   :  { %5171 = vmatprep.subr.mxu0 %v5464_v0 }
0x17ad   :  { %5164 = vmatmul.mubr.msk.f32.vlgmr.msra.gmra.mrb[56].mxu0 %vm70_vm2, %v3462_v23  ;;  %v5364_v23 = vld [vmem:[%s6444_s9 + $0xe4] ss:$8 sps:$4 sm:$0xff]  }
0x17ae   :  { %5172 = vmatpush3.msra.mxu0 %v3636_v24  ;;  %5173 = vmatprep.mubr.msk.f32.mxu0 %vm5465_vm1, %v5464_v0  ;;  %v5362_v24 = vld [vmem:[%s6444_s9 + $0xe0] ss:$8 sps:$4 sm:$0xff]  }
0x17af   :  { %5181 = vmatprep.subr.mxu0 %v5464_v0 }
0x17b1   :  { %5174 = vmatmul.mubr.msk.f32.vlgmr.msra.gmra.mrb[58].mxu0 %vm70_vm2, %v3634_v16  ;;  %v5365_v16 = vld [vmem:[%s6444_s9 + $0xf0] ss:$8 sps:$4 sm:$0xff]  }
0x17b2   :  { %5182 = vmatpush3.msra.mxu0 %v3807_v27  ;;  %5183 = vmatprep.mubr.msk.f32.mxu0 %vm5465_vm1, %v5464_v0  ;;  %v5369_v27 = vld [vmem:[%s6445_s11 + $0x80] sm:$0xff]  }
0x17b3   :  { %4159 = vmatprep.subr.bf16.mxu0 %v5346_v8 }
0x17b5   :  { %5184 = vmatmul.mubr.msk.f32.vlgmr.msra.gmra.mrb[60].mxu0 %vm70_vm2, %v3805_v28  ;;  %v5370_v28 = vld [vmem:[%s6445_s11 + $0xc8] sm:$0xff]  }
0x17b6   :  { %4191 = vmatprep.mubr.bf16.mxu0 %v5466_v30  ;;  %v5339_v30 = vld [vmem:[%s6442_s5 + $0x58] sm:$0xff]   ;;  %4160 = vmatpush1.bf16.msra.mxu0 %v5344_v7 }
0x17b7   :  { %5193 = vmatpush3.bf16.msra.mxu1 %v5339_v30  ;;  %4161 = vmatprep.subr.bf16.mxu0 %v5349_v9  ;;  %v5374_v30 = vld [vmem:[%s6445_s11 + $0xd8] sm:$0xff]  }
0x17b8   :  { %5194 = vmatprep.subr.bf16.mxu1 %v5464_v0 }
0x17bb   :  { %5195 = vmatpush3.bf16.msra.mxu1 %v5340_v33  ;;  %v5375_v33 = vld [vmem:[%s6445_s11 + $0x98] sm:$0xff]  }
0x17bc   :  { %5196 = vmatprep.subr.bf16.mxu1 %v5464_v0 }
0x17bf   :  { %5197 = vmatpush3.bf16.msra.mxu1 %v5341_v37  ;;  %v5377_v37 = vld [vmem:[%s6445_s11 + $0xa0] sm:$0xff]  }
0x17c0   :  { %5198 = vmatprep.subr.bf16.mxu1 %v5464_v0 }
0x17c3   :  { %5199 = vmatpush3.bf16.msra.mxu1 %v5342_v42 }
0x17c4   :  { %5200 = vmatprep.subr.bf16.mxu1 %v5464_v0 }
0x17c7   :  { %5201 = vmatpush3.bf16.msra.mxu1 %v5343_v46 }
0x17c8   :  { %4935 = vmatprep.subr.bf16.mxu1 %v5368_v26 }
0x1878   :  { %v3202_v34 = vpop.f32.mrb[52].mxu0 }
0x1879   :  { %3207 = vrot.lane.b32.xlu0 %v3202_v34, %s5467_s23  ;;  %v5145_v38 = vpop.f32.mrb[53].mxu0  ;;  %v5376_v34 = vld [vmem:[%s6445_s11 + $0xe0] sm:$0xff]  }
0x187a   :  { %v5378_v38 = vld [vmem:[%s6445_s11 + $0xe8] sm:$0xff]  }
0x187c   :  { %v3368_v39 = vpop.f32.mrb[54].mxu0 }
0x187d   :  { %3372 = vst.msk [vmem:[#allocation2 + $0x8] sm:$0xff] %vm381_vm3, %v3368_v39  ;;  %v5155_v45 = vpop.f32.mrb[55].mxu0 }
0x1880   :  { %v3536_v47 = vpop.f32.mrb[56].mxu0 }
0x1881   :  { %3541 = vrot.lane.b32.xlu1 %v3536_v47, %s5469_s25  ;;  %v5165_v48 = vpop.f32.mrb[57].mxu0 }
0x1884   :  { %v3707_v49 = vpop.f32.mrb[58].mxu0 }
0x1885   :  { %3712 = vrot.lane.b32.xlu1 %v3707_v49, %s5468_s24  ;;  %v5175_v50 = vpop.f32.mrb[59].mxu0 }
0x1888   :  { %v3878_v51 = vpop.f32.mrb[60].mxu0 }
0x1889   :  { %3883 = vrot.lane.b32.xlu1 %v3878_v51, %s5467_s23  ;;  %v5185_v52 = vpop.f32.mrb[61].mxu0  ;;  %v4722_v51 = vld [vmem:[%s6446_s7 + $0x1] ss:$0 sm:$0xff] }
0x18eb   :  { %v3208_v53 = vpop.permute.xlu0 %3207 }
0x18ec   :  { %3210 = vst.msk [vmem:[#allocation2] sm:$0xff] %vm1059_vm6, %v3208_v53 }
0x18f3   :  { %v3542_v61 = vpop.permute.xlu1 %3541  ;;  %v3887_v54 = vld [vmem:[#allocation2] sm:$0xff] }
0x18f4   :  { %3544 = vst.msk [vmem:[#allocation2 + $0x8] sm:$0xff] %vm715_vm4, %v3542_v61 }
0x18f7   :  { %v3713_v35 = vpop.permute.xlu1 %3712 }
0x18f8   :  { %3715 = vst.msk [vmem:[#allocation2 + $0x8] sm:$0xff] %vm887_vm5, %v3713_v35  ;;  %v4723_v35 = vld [vmem:[%s6447_s8 + $0x1] ss:$0 sm:$0xff] }
0x18fb   :  { %v3884_v36 = vpop.permute.xlu1 %3883 }
0x18fc   :  { %3886 = vst.msk [vmem:[#allocation2 + $0x8] sm:$0xff] %vm1059_vm6, %v3884_v36 }
0x1903   :  { %v3888_v55 = vld [vmem:[#allocation2 + $0x8] sm:$0xff] }
0x1904   :  { %v3889_v57 = vpack.c.bf16 %v3888_v55, %v3887_v54 }
0x1906   :  { %5203 = vmatmul.mubr.bf16.vlgmr.msra.gmra.mrb[36].mxu1 %v3889_v57 }
0x1907   :  { %4936 = vmatpush3.bf16.msra.mxu1 %v5369_v27 }
0x1908   :  { %4937 = vmatprep.subr.bf16.mxu1 %v5370_v28 }
0x190b   :  { %4938 = vmatpush3.bf16.msra.mxu1 %v5371_v29 }
0x190c   :  { %4939 = vmatprep.subr.bf16.mxu1 %v5372_v31 }
0x190f   :  { %4940 = vmatpush3.bf16.msra.mxu1 %v5373_v32 }
0x1910   :  { %4941 = vmatprep.subr.bf16.mxu1 %v5374_v30  ;;  %v5470_v30 = vmov 0.0|0.0  }
0x1913   :  { %4942 = vmatpush3.bf16.msra.mxu1 %v5375_v33  ;;  %v22_v33 = vstv %s6452_s16 }
0x1914   :  { %4943 = vmatprep.subr.bf16.mxu1 %v5376_v34  ;;  %23 = vst [vmem:[#allocation3] sm:$0x1] %v22_v33 }
0x1917   :  { %4944 = vmatpush3.bf16.msra.mxu1 %v5377_v37 }
0x1918   :  { %4945 = vmatprep.subr.bf16.mxu1 %v5378_v38 }
0x191b   :  { %v4431_v34 = vld [vmem:[#allocation3] sm:$0x1] }
0x19d9   :  { %v3997_v60 = vpop.f32.mrb[36].mxu1 }
0x19da   :  { %v3998_v62 = vadd.f32 %v4711_v58, %v3997_v60  ;;  %v5204_v63 = vpop.f32.mrb[37].mxu1  ;;  %v5380_v60 = vld [vmem:[%s6445_s11 + $0xf0] sm:$0xff]  }
0x19db   :  { %v4000_v1 = vpop.f32.mrb[38].mxu1  ;;  %v5382_v63 = vld [vmem:[%s6445_s11 + $0xf8] sm:$0xff]  }
0x19dc   :  { %v4001_v2 = vadd.f32 %v4711_v58, %v4000_v1  ;;  %v5205_v56 = vpop.f32.mrb[39].mxu1  ;;  %v4004_v5 = vadd.f32 %v3998_v62, %v6091_v3  ;;  %v5347_v3 = vld [vmem:[%s6444_s9 + $0x90] ss:$8 sps:$4 sm:$0xff]   ;;  %v5379_v58 = vld [vmem:[%s6445_s11 + $0xa8] sm:$0xff]   ;;  %v4740_v1 = vld [vmem:[%s6448_s10 + $0x2] sm:$0x3] }
0x19dd   :  { %4162 = vmatpush1.bf16.msra.mxu0 %v5347_v3  ;;  %4946 = vmatpush3.bf16.msra.mxu1 %v5379_v58  ;;  %v5381_v62 = vld [vmem:[%s6445_s11 + $0xb0] sm:$0xff]   ;;  %v4076_v56 = vrot.slane %v4740_v1, %v5676_v41  ;;  %v4790_v41 = vld [vmem:[%s6449_s12 + $0x1] ss:$0 sm:$0xff] }
0x19de   :  { %4010 = vadd.xlane.f32.xlu0 %v4004_v5  ;;  %v4005_v6 = vadd.f32 %v4001_v2, %v6093_v4  ;;  %4163 = vmatprep.subr.bf16.mxu0 %v5352_v17  ;;  %v4072_v2 = vrot.slane %v4740_v1, %v5682_v43 }
0x19df   :  { %4947 = vmatprep.subr.bf16.mxu1 %v5380_v60 }
0x19e0   :  { %4012 = vadd.xlane.f32.xlu1 %v4005_v6 }
0x19e1   :  { %4164 = vmatpush1.bf16.msra.mxu0 %v5350_v59  ;;  %4948 = vmatpush3.bf16.msra.mxu1 %v5381_v62 }
0x19e2   :  { %4165 = vmatprep.subr.bf16.mxu0 %v5355_v18  ;;  %4949 = vmatprep.subr.bf16.mxu1 %v5382_v63 }
0x19e5   :  { %4166 = vmatpush1.bf16.msra.mxu0 %v5353_v20 }
0x19e6   :  { %4167 = vmatprep.subr.bf16.mxu0 %v5358_v44 }
0x19e9   :  { %4168 = vmatpush1.bf16.msra.mxu0 %v5356_v19 }
0x19ea   :  { %4169 = vmatprep.subr.bf16.mxu0 %v5361_v21 }
0x19ed   :  { %4170 = vmatpush1.bf16.msra.mxu0 %v5359_v22 }
0x19ee   :  { %4171 = vmatprep.subr.bf16.mxu0 %v5364_v23 }
0x19f1   :  { %4172 = vmatpush1.bf16.msra.mxu0 %v5362_v24 }
0x19f2   :  { %4173 = vmatprep.subr.bf16.mxu0 %v5367_v25 }
0x19f5   :  { %4174 = vmatpush1.bf16.msra.mxu0 %v5365_v16 }
0x19f6   :  { %5213 = vmatprep.subr.bf16.mxu0 %v5470_v30 }
0x1a6b   :  { %v4011_v4 = vpop.xlane.xlu0 %4010 }
0x1a6c   :  { %v4014_v10 = vmul.f32 0.0078125, %v4011_v4 }
0x1a6d   :  { %v4013_v11 = vpop.xlane.xlu1 %4012 }
0x1a6e   :  { %v4016_v12 = vsub.f32 %v4004_v5, %v4014_v10  ;;  %v4015_v13 = vmul.f32 0.0078125, %v4013_v11 }
0x1a70   :  { %v6316_v14 = vsub.f32 %v4005_v6, %v4015_v13  ;;  %v4018_v15 = vmul.f32 %v4016_v12, %v4016_v12 }
0x1a72   :  { %4020 = vadd.xlane.f32.xlu0 %v4018_v15  ;;  %v4019_v40 = vmul.f32 %v6316_v14, %v6316_v14 }
0x1a76   :  { %4022 = vadd.xlane.f32.xlu0 %v4019_v40 }
0x1aff   :  { %v4021_v39 = vpop.xlane.xlu0 %4020 }
0x1b00   :  { %v4024_v42 = vmul.f32 0.0078125, %v4021_v39 }
0x1b02   :  { %v4026_v45 = vadd.f32 1e-05, %v4024_v42 }
0x1b03   :  { %v4023_v46 = vpop.xlane.xlu0 %4022 }
0x1b04   :  { %5456 = vrsqrt.f32 %v4026_v45  ;;  %v4025_v47 = vmul.f32 0.0078125, %v4023_v46 }
0x1b06   :  { %v4027_v48 = vadd.f32 1e-05, %v4025_v47 }
0x1b08   :  { %5458 = vrsqrt.f32 %v4027_v48  ;;  %v4809_v48 = vld [vmem:[%s6450_s13 + $0x1] ss:$0 sm:$0xff] }
0x1b0e   :  { %v5457_v49 = vpop.eup %5456 }
0x1b0f   :  { %v4030_v50 = vmul.f32 %v5457_v49, %v4016_v12 }
0x1b11   :  { %v4038_v61 = vmul.f32 %v4722_v51, %v4030_v50 }
0x1b12   :  { %v5459_v52 = vpop.eup %5458 }
0x1b13   :  { %v4031_v53 = vmul.f32 %v5459_v52, %v6316_v14  ;;  %v4046_v54 = vadd.f32 %v4723_v35, %v4038_v61 }
0x1b15   :  { %v4039_v36 = vmul.f32 %v4722_v51, %v4031_v53  ;;  %v4810_v53 = vld [vmem:[%s6451_s14 + $0x1] ss:$0 sm:$0xff] }
0x1b17   :  { %v4047_v55 = vadd.f32 %v4723_v35, %v4039_v36 }
0x1b19   :  { %v4065_v57 = vpack.c.bf16 %v4047_v55, %v4046_v54 }
0x1b1b   :  { %4192 = vmatmul.mubr.bf16.vlgmr.msra.gmra.mrb[64].mxu0 %v4065_v57 }
0x1b1c   :  { %5210 = vmatprep.mubr.msk.f32.mxu0 %vm5465_vm1, %v5464_v0  ;;  %v5383_v0 = vld [vmem:[%s6445_s11 + $0xb8] sm:$0xff]  }
0x1b1d   :  { %4950 = vmatpush3.bf16.msra.mxu1 %v5383_v0 }
0x1bee   :  { %v4193_v5 = vpop.f32.mrb[64].mxu0 }
0x1bef   :  { %v4194_v6 = vadd.f32 %v4193_v5, %v4072_v2  ;;  %v4195_v7 = vpop.f32.mrb[65].mxu0 }
0x1bf0   :  { %v4196_v8 = vadd.f32 %v4195_v7, %v4076_v56  ;;  %v4197_v9 = vpop.f32.mrb[66].mxu0 }
0x1bf1   :  { %v4198_v3 = vadd.f32 %v4197_v9, %v4072_v2  ;;  %v4199_v4 = vpop.f32.mrb[67].mxu0  ;;  %v4202_v11 = vmax.f32 %v4194_v6, 0.0 }
0x1bf2   :  { %v4200_v10 = vadd.f32 %v4199_v4, %v4076_v56  ;;  %v4203_v13 = vmax.f32 %v4196_v8, 0.0 }
0x1bf3   :  { %v4204_v12 = vmax.f32 %v4198_v3, 0.0 }
0x1bf4   :  { %v4205_v14 = vmax.f32 %v4200_v10, 0.0 }
0x1bf5   :  { %v4239_v15 = vpack.c.bf16 %v4204_v12, %v4202_v11 }
0x1bf6   :  { %v4240_v40 = vpack.c.bf16 %v4205_v14, %v4203_v13 }
0x1bf8   :  { %4377 = vmatprep.mubr.bf16.mxu1 %v4240_v40 }
0x1bf9   :  { %4378 = vmatmul.mubr.bf16.vlgmr.msra.gmra.mrb[40].mxu1 %v4239_v15 }
0x1ccc   :  { %v4951_v17 = vpop.f32.mrb[40].mxu1 }
0x1ccd   :  { %v4952_v59 = vpop.f32.mrb[41].mxu1 }
0x1cce   :  { %v4953_v18 = vadd.f32 %v4952_v59, %v4951_v17  ;;  %v4954_v20 = vpop.f32.mrb[42].mxu1 }
0x1ccf   :  { %v4955_v44 = vpop.f32.mrb[43].mxu1 }
0x1cd0   :  { %v4380_v19 = vadd.f32 %v4953_v18, %v4790_v41  ;;  %v4956_v21 = vadd.f32 %v4955_v44, %v4954_v20 }
0x1cd2   :  { %v4383_v22 = vadd.f32 %v4956_v21, %v4790_v41  ;;  %v4386_v23 = vadd.f32 %v4380_v19, %v4046_v54 }
0x1cd4   :  { %4392 = vadd.xlane.f32.xlu0 %v4386_v23  ;;  %v4387_v24 = vadd.f32 %v4383_v22, %v4047_v55  ;;  %v4430_v55 = vld [vmem:[%s6453_s15] sm:$0x1] }
0x1cd6   :  { %4394 = vadd.xlane.f32.xlu1 %v4387_v24 }
0x1d61   :  { %v4393_v25 = vpop.xlane.xlu0 %4392 }
0x1d62   :  { %v4396_v16 = vmul.f32 0.0078125, %v4393_v25 }
0x1d63   :  { %v4395_v26 = vpop.xlane.xlu1 %4394 }
0x1d64   :  { %v4398_v27 = vsub.f32 %v4386_v23, %v4396_v16  ;;  %v4397_v28 = vmul.f32 0.0078125, %v4395_v26 }
0x1d66   :  { %v4399_v29 = vsub.f32 %v4387_v24, %v4397_v28  ;;  %v4400_v31 = vmul.f32 %v4398_v27, %v4398_v27 }
0x1d68   :  { %4402 = vadd.xlane.f32.xlu0 %v4400_v31  ;;  %v4401_v32 = vmul.f32 %v4399_v29, %v4399_v29 }
0x1d6a   :  { %4404 = vadd.xlane.f32.xlu1 %v4401_v32 }
0x1d7e   :  { %4434 = vperm.xlu0 %5223, %v4431_v34  }
0x1df5   :  { %v4403_v37 = vpop.xlane.xlu0 %4402 }
0x1df6   :  { %v4406_v38 = vmul.f32 0.0078125, %v4403_v37 }
0x1df7   :  { %v4405_v39 = vpop.xlane.xlu1 %4404 }
0x1df8   :  { %v4408_v42 = vadd.f32 1e-05, %v4406_v38  ;;  %v4407_v45 = vmul.f32 0.0078125, %v4405_v39 }
0x1dfa   :  { %5460 = vrsqrt.f32 %v4408_v42  ;;  %v4409_v46 = vadd.f32 1e-05, %v4407_v45 }
0x1dfc   :  { %5462 = vrsqrt.f32 %v4409_v46 }
0x1dfd   :  { %v4435_v57 = vpop.permute.xlu0 %4434 }
0x1dfe   :  { %v4440_v58 = vrot.slane %v4435_v57, %v5682_v43 }
0x1e04   :  { %v5461_v47 = vpop.eup %5460 }
0x1e05   :  { %v4412_v49 = vmul.f32 %v5461_v47, %v4398_v27 }
0x1e06   :  { %v5463_v50 = vpop.eup %5462 }
0x1e07   :  { %v4413_v51 = vmul.f32 %v5463_v50, %v4399_v29  ;;  %v4420_v52 = vmul.f32 %v4809_v48, %v4412_v49 }
0x1e09   :  { %v4421_v61 = vmul.f32 %v4809_v48, %v4413_v51  ;;  %v4428_v35 = vadd.f32 %v4810_v53, %v4420_v52 }
0x1e0b   :  { %v4429_v36 = vadd.f32 %v4810_v53, %v4421_v61 }
0x1e0d   :  { %v5214_v54 = vpack.c.bf16 %v4429_v36, %v4428_v35 }
0x1e0f   :  { %5215 = vmatpush3.bf16.xpose.msra.mxu0 %v5214_v54 }
0x1e16   :  { %5211 = vmatmul.mubr.f32.vlgmr.msra.gmra.mrb[62].mxu0 %v4430_v55 }
0x1ee9   :  { %v4507_v60 = vpop.f32.mrb[62].mxu0 }
0x1eea   :  { %v4508_v62 = vadd.f32 %v4507_v60, %v4440_v58  ;;  %v5212_v63 = vpop.f32.mrb[63].mxu0 }
0x1eec   :  { %4512 = vst.msk [vmem:[%s6454_s17] sm:$0x1] %vm4511_vm7, %v4508_v62 }

</bundles_post_ra>
